<compile_context>
chip_gen: v7x
topology: tpu7x:2x2x1
jax: 0.10.0
libtpu: 0.0.40
codegen_flags: <defaults>
</compile_context>

<pallas_src>
import functools

import jax
import jax.numpy as jnp
from jax.experimental import pallas as pl
from jax.experimental.pallas import tpu as pltpu

EPS = 1e-5          # nn.GroupNorm default eps
NORM_GROUPS = 4
NFILTERS_INIT = 32
NFILTERS_EMBED = 32
NCLASSES = 2
MBCONV_EXPANSION = 4


def _gelu(x):
    # TODO(synk): PyTorch nn.GELU defaults to exact erf; tanh approximation used here.
    return jax.nn.gelu(x, approximate=True)


# ---------------------------------------------------------------------------
# Fused kernel: stem + stage + temporal mean + segmentation head, one batch
# element per grid step.  All tensors channels-first: (C, positions).
# ---------------------------------------------------------------------------
def fused_kernel(x_ref, grp_ref,
                 w_stem_ref, stem_cols_ref,
                 w_exp_ref, b_exp_ref, w_proj_ref,
                 w_h1_ref, b_h1_ref, w_h2_ref, b_h2_ref,
                 o_ref, *, t_dim, hw):
    # ---- features stem: 1x1x1 conv (Cin -> Cemb); bias folded into GN shift ----
    x = x_ref[0].astype(jnp.bfloat16)                               # (Cin, THW)
    h = jnp.dot(w_stem_ref[...], x,
                preferred_element_type=jnp.float32)                 # (Cemb, THW) f32
    n_pos = float(h.shape[1])

    cols = stem_cols_ref[...]                                       # (Cemb, 4) f32
    b_stem = cols[:, 0:1]
    g_stem = cols[:, 1:2]
    be_stem = cols[:, 2:3]
    b_proj = cols[:, 3:4]

    # ---- GroupNorm: single-pass per-channel stats (f32), bias correction on columns
    sum_c = jnp.sum(h, axis=1, keepdims=True)                       # (Cemb, 1)
    sumsq_c = jnp.sum(h * h, axis=1, keepdims=True)                 # (Cemb, 1)
    sum_b = sum_c + n_pos * b_stem
    sumsq_b = sumsq_c + 2.0 * b_stem * sum_c + n_pos * b_stem * b_stem
    stats = jnp.concatenate([sum_b, sumsq_b], axis=1)               # (Cemb, 2)
    # grp_ref: block-diagonal ones pre-divided by (n_pos * channels_per_group)
    agg = jnp.dot(grp_ref[...], stats,
                  preferred_element_type=jnp.float32)               # (Cemb, 2)
    mu = agg[:, 0:1]
    var = agg[:, 1:2] - mu * mu
    inv_std = jax.lax.rsqrt(var + EPS)
    scale = g_stem * inv_std                                        # (Cemb, 1)
    shift = (b_stem - mu) * scale + be_stem                         # (Cemb, 1)
    feats = _gelu(h * scale + shift)                                # single full-width FMA

    # ---- head3D[0]: MBConv-style expand(4x) -> GELU -> project + residual ------
    e = _gelu(jnp.dot(w_exp_ref[...], feats.astype(jnp.bfloat16),
                      preferred_element_type=jnp.float32)
              + b_exp_ref[...])                                     # (Cexp, THW)
    p = jnp.dot(w_proj_ref[...], e.astype(jnp.bfloat16),
                preferred_element_type=jnp.float32)                 # (Cemb, THW)
    y = feats + p                                                   # b_proj applied post-pool

    # ---- head3D[1]: Lambda(x.mean(dim=2)) — temporal mean (static small T) -----
    pooled = y[:, 0:hw]
    for t in range(1, t_dim):
        pooled = pooled + y[:, t * hw:(t + 1) * hw]
    pooled = pooled * (1.0 / t_dim) + b_proj                        # (Cemb, HW)

    # ---- head3D[2]: head_cmtsk — 1x1 conv + GELU + 1x1 conv + sigmoid ----------
    h1 = _gelu(jnp.dot(w_h1_ref[...], pooled.astype(jnp.bfloat16),
                       preferred_element_type=jnp.float32)
               + b_h1_ref[...])                                     # (Nf, HW)
    logits = jnp.dot(w_h2_ref[...], h1.astype(jnp.bfloat16),
                     preferred_element_type=jnp.float32)
    logits = logits + b_h2_ref[...]                                 # (NCl, HW)
    o_ref[0] = jax.nn.sigmoid(logits)                               # lane-dense store


# ---------------------------------------------------------------------------
# Wrapper
# ---------------------------------------------------------------------------
def _bspec(shape):
    return pl.BlockSpec(shape, lambda b: (0,) * len(shape))


def ptavit3d_dn_forward(x_ncthw, params, *, groups=NORM_GROUPS):
    B, Cin, T, H, W = x_ncthw.shape
    THW = T * H * W
    HW = H * W
    Cemb = params["w_stem"].shape[0]
    Cexp = params["w_exp"].shape[0]
    Nf = params["w_h1"].shape[0]
    NCl = params["w_h2"].shape[0]
    cg = Cemb // groups

    # Free reshape: channels stay leading, positions flattened (no transpose).
    x = x_ncthw.reshape(B, Cin, THW)

    # bf16 weights for the MXU (tiny one-time converts; f32 accumulation in-kernel).
    w_stem = params["w_stem"].astype(jnp.bfloat16)
    w_exp = params["w_exp"].astype(jnp.bfloat16)
    w_proj = params["w_proj"].astype(jnp.bfloat16)
    w_h1 = params["w_h1"].astype(jnp.bfloat16)
    w_h2 = params["w_h2"].astype(jnp.bfloat16)

    # Block-diagonal group-aggregation matrix, pre-divided by the element count.
    # Built once here (resident constant) instead of per grid step in-kernel.
    row = jnp.arange(Cemb)[:, None] // cg
    col = jnp.arange(Cemb)[None, :] // cg
    grp = (row == col).astype(jnp.float32) / float(THW * cg)        # (Cemb, Cemb)

    # Stem bias, GN gamma/beta and projection bias packed into one (Cemb, 4) tile.
    stem_cols = jnp.concatenate(
        [params["b_stem"], params["g_stem"], params["be_stem"], params["b_proj"]],
        axis=1)

    out = pl.pallas_call(
        functools.partial(fused_kernel, t_dim=T, hw=HW),
        out_shape=jax.ShapeDtypeStruct((B, NCl, HW), jnp.float32),
        grid=(B,),
        in_specs=[
            pl.BlockSpec((1, Cin, THW), lambda b: (b, 0, 0)),
            _bspec((Cemb, Cemb)),
            _bspec((Cemb, Cin)), _bspec((Cemb, 4)),
            _bspec((Cexp, Cemb)), _bspec((Cexp, 1)),
            _bspec((Cemb, Cexp)),
            _bspec((Nf, Cemb)), _bspec((Nf, 1)),
            _bspec((NCl, Nf)), _bspec((NCl, 1)),
        ],
        out_specs=pl.BlockSpec((1, NCl, HW), lambda b: (b, 0, 0)),
        compiler_params=pltpu.CompilerParams(dimension_semantics=("parallel",)),
    )(x, grp, w_stem, stem_cols,
      w_exp, params["b_exp"], w_proj,
      w_h1, params["b_h1"], w_h2, params["b_h2"])

    # Free reshape: already channels-first -> PyTorch NCHW predictions.
    return out.reshape(B, NCl, H, W)


def init_params(key, cin, cemb, nfilters, nclasses, expansion):
    ks = jax.random.split(key, 5)

    def w(k, shape, fan_in):
        return (jax.random.normal(k, shape, jnp.float32) / jnp.sqrt(fan_in)).astype(jnp.float32)

    cexp = cemb * expansion
    # Weights stored PyTorch-conv style: (C_out, C_in); biases as (C, 1) columns.
    return dict(
        w_stem=w(ks[0], (cemb, cin), cin),
        b_stem=jnp.zeros((cemb, 1), jnp.float32),
        g_stem=jnp.ones((cemb, 1), jnp.float32),
        be_stem=jnp.zeros((cemb, 1), jnp.float32),
        w_exp=w(ks[1], (cexp, cemb), cemb),
        b_exp=jnp.zeros((cexp, 1), jnp.float32),
        w_proj=w(ks[2], (cemb, cexp), cexp),
        b_proj=jnp.zeros((cemb, 1), jnp.float32),
        w_h1=w(ks[3], (nfilters, cemb), cemb),
        b_h1=jnp.zeros((nfilters, 1), jnp.float32),
        w_h2=w(ks[4], (nclasses, nfilters), nfilters),
        b_h2=jnp.zeros((nclasses, 1), jnp.float32),
    )


if __name__ == "__main__":
    key = jax.random.PRNGKey(0)
    kx, kp = jax.random.split(key)

    # small shapes consistent with the module's forward (B, C, T, H, W)
    B, Cin, T, H, W = 2, 4, 4, 16, 16
    x = jax.random.normal(kx, (B, Cin, T, H, W), dtype=jnp.float32)
    params = init_params(kp, Cin, NFILTERS_EMBED, NFILTERS_INIT, NCLASSES, MBCONV_EXPANSION)

    out = ptavit3d_dn_forward(x, params)
    out = jax.block_until_ready(out)
    assert out.shape == (B, NCLASSES, H, W), out.shape
    assert bool(jnp.all(jnp.isfinite(out)))
    print("KERNEL_OK")
</pallas_src>

<mosaic_0001>
module attributes {stable_mosaic.version = 11 : i64} {
  func.func @fused_kernel(%arg0: i32, %arg1: memref<1x4x1024xf32, #tpu.memory_space<vmem>>, %arg2: memref<32x32xf32, #tpu.memory_space<vmem>>, %arg3: memref<32x4xbf16, #tpu.memory_space<vmem>>, %arg4: memref<32x4xf32, #tpu.memory_space<vmem>>, %arg5: memref<128x32xbf16, #tpu.memory_space<vmem>>, %arg6: memref<128x1xf32, #tpu.memory_space<vmem>>, %arg7: memref<32x128xbf16, #tpu.memory_space<vmem>>, %arg8: memref<32x32xbf16, #tpu.memory_space<vmem>>, %arg9: memref<32x1xf32, #tpu.memory_space<vmem>>, %arg10: memref<2x32xbf16, #tpu.memory_space<vmem>>, %arg11: memref<2x1xf32, #tpu.memory_space<vmem>>, %arg12: memref<1x2x256xf32, #tpu.memory_space<vmem>>) attributes {dimension_semantics = [#tpu.dimension_semantics<parallel>], iteration_bounds = array<i64: 2>, scalar_prefetch = 0 : i64, scratch_operands = 0 : i64, tpu.core_type = #tpu.core_type<tc>, window_params = [{transform_indices = @transform_0, window_bounds = array<i64: 1, 4, 1024>}, {pipeline_mode = #tpu.pipeline_mode<synchronous>, transform_indices = @transform_1, window_bounds = array<i64: 32, 32>}, {pipeline_mode = #tpu.pipeline_mode<synchronous>, transform_indices = @transform_2, window_bounds = array<i64: 32, 4>}, {pipeline_mode = #tpu.pipeline_mode<synchronous>, transform_indices = @transform_3, window_bounds = array<i64: 32, 4>}, {pipeline_mode = #tpu.pipeline_mode<synchronous>, transform_indices = @transform_4, window_bounds = array<i64: 128, 32>}, {pipeline_mode = #tpu.pipeline_mode<synchronous>, transform_indices = @transform_5, window_bounds = array<i64: 128, 1>}, {pipeline_mode = #tpu.pipeline_mode<synchronous>, transform_indices = @transform_6, window_bounds = array<i64: 32, 128>}, {pipeline_mode = #tpu.pipeline_mode<synchronous>, transform_indices = @transform_7, window_bounds = array<i64: 32, 32>}, {pipeline_mode = #tpu.pipeline_mode<synchronous>, transform_indices = @transform_8, window_bounds = array<i64: 32, 1>}, {pipeline_mode = #tpu.pipeline_mode<synchronous>, transform_indices = @transform_9, window_bounds = array<i64: 2, 32>}, {pipeline_mode = #tpu.pipeline_mode<synchronous>, transform_indices = @transform_10, window_bounds = array<i64: 2, 1>}, {transform_indices = @transform_11, window_bounds = array<i64: 1, 2, 256>}]} {
    %c0 = arith.constant 0 : index
    %c0_0 = arith.constant 0 : index
    %c0_1 = arith.constant 0 : index
    %0 = vector.load %arg1[%c0, %c0_0, %c0_1] : memref<1x4x1024xf32, #tpu.memory_space<vmem>>, vector<1x4x1024xf32>
    %1 = vector.shape_cast %0 : vector<1x4x1024xf32> to vector<4x1024xf32>
    %2 = arith.truncf %1 : vector<4x1024xf32> to vector<4x1024xbf16>
    %c0_2 = arith.constant 0 : index
    %c0_3 = arith.constant 0 : index
    %3 = vector.load %arg3[%c0_2, %c0_3] : memref<32x4xbf16, #tpu.memory_space<vmem>>, vector<32x4xbf16>
    %cst = arith.constant dense<0.000000e+00> : vector<32x1024xf32>
    %4 = tpu.matmul %3, %2, %cst {dimension_numbers = #tpu.dot_dimension_numbers<[1], [0], [0], [1], [0, 0, 1, 1], [], []>} : vector<32x4xbf16>, vector<4x1024xbf16>, vector<32x1024xf32> -> vector<32x1024xf32>
    %c0_4 = arith.constant 0 : index
    %c0_5 = arith.constant 0 : index
    %5 = vector.load %arg4[%c0_4, %c0_5] : memref<32x4xf32, #tpu.memory_space<vmem>>, vector<32x4xf32>
    %6 = vector.extract_strided_slice %5 {offsets = [0, 0], sizes = [32, 1], strides = [1, 1]} : vector<32x4xf32> to vector<32x1xf32>
    %7 = vector.extract_strided_slice %5 {offsets = [0, 1], sizes = [32, 1], strides = [1, 1]} : vector<32x4xf32> to vector<32x1xf32>
    %8 = vector.extract_strided_slice %5 {offsets = [0, 2], sizes = [32, 1], strides = [1, 1]} : vector<32x4xf32> to vector<32x1xf32>
    %9 = vector.extract_strided_slice %5 {offsets = [0, 3], sizes = [32, 1], strides = [1, 1]} : vector<32x4xf32> to vector<32x1xf32>
    %cst_6 = arith.constant dense<0.000000e+00> : vector<32xf32>
    %10 = vector.multi_reduction <add>, %4, %cst_6 [1] : vector<32x1024xf32> to vector<32xf32>
    %11 = vector.shape_cast %10 : vector<32xf32> to vector<32x1xf32>
    %12 = arith.mulf %4, %4 : vector<32x1024xf32>
    %cst_7 = arith.constant dense<0.000000e+00> : vector<32xf32>
    %13 = vector.multi_reduction <add>, %12, %cst_7 [1] : vector<32x1024xf32> to vector<32xf32>
    %14 = vector.shape_cast %13 : vector<32xf32> to vector<32x1xf32>
    %cst_8 = arith.constant 1.024000e+03 : f32
    %15 = vector.broadcast %cst_8 : f32 to vector<32x1xf32>
    %16 = arith.mulf %15, %6 : vector<32x1xf32>
    %17 = arith.addf %11, %16 : vector<32x1xf32>
    %cst_9 = arith.constant 2.000000e+00 : f32
    %18 = vector.broadcast %cst_9 : f32 to vector<32x1xf32>
    %19 = arith.mulf %18, %6 : vector<32x1xf32>
    %20 = arith.mulf %19, %11 : vector<32x1xf32>
    %21 = arith.addf %14, %20 : vector<32x1xf32>
    %cst_10 = arith.constant 1.024000e+03 : f32
    %22 = vector.broadcast %cst_10 : f32 to vector<32x1xf32>
    %23 = arith.mulf %22, %6 : vector<32x1xf32>
    %24 = arith.mulf %23, %6 : vector<32x1xf32>
    %25 = arith.addf %21, %24 : vector<32x1xf32>
    %26 = tpu.concatenate %17, %25 in 1 : vector<32x1xf32>, vector<32x1xf32> -> vector<32x2xf32>
    %c0_11 = arith.constant 0 : index
    %c0_12 = arith.constant 0 : index
    %27 = vector.load %arg2[%c0_11, %c0_12] : memref<32x32xf32, #tpu.memory_space<vmem>>, vector<32x32xf32>
    %cst_13 = arith.constant dense<0.000000e+00> : vector<32x2xf32>
    %28 = tpu.matmul %27, %26, %cst_13 {dimension_numbers = #tpu.dot_dimension_numbers<[1], [0], [0], [1], [0, 0, 1, 1], [], []>} : vector<32x32xf32>, vector<32x2xf32>, vector<32x2xf32> -> vector<32x2xf32>
    %29 = vector.extract_strided_slice %28 {offsets = [0, 0], sizes = [32, 1], strides = [1, 1]} : vector<32x2xf32> to vector<32x1xf32>
    %30 = vector.extract_strided_slice %28 {offsets = [0, 1], sizes = [32, 1], strides = [1, 1]} : vector<32x2xf32> to vector<32x1xf32>
    %31 = arith.mulf %29, %29 : vector<32x1xf32>
    %32 = arith.subf %30, %31 : vector<32x1xf32>
    %cst_14 = arith.constant 9.99999974E-6 : f32
    %33 = vector.broadcast %cst_14 : f32 to vector<32x1xf32>
    %34 = arith.addf %32, %33 : vector<32x1xf32>
    %35 = math.rsqrt %34 : vector<32x1xf32>
    %36 = arith.mulf %7, %35 : vector<32x1xf32>
    %37 = arith.subf %6, %29 : vector<32x1xf32>
    %38 = arith.mulf %37, %36 : vector<32x1xf32>
    %39 = arith.addf %38, %8 : vector<32x1xf32>
    %40 = vector.broadcast %36 : vector<32x1xf32> to vector<32x1024xf32>
    %41 = arith.mulf %4, %40 : vector<32x1024xf32>
    %42 = vector.broadcast %39 : vector<32x1xf32> to vector<32x1024xf32>
    %43 = arith.addf %41, %42 : vector<32x1024xf32>
    %44 = arith.mulf %43, %43 : vector<32x1024xf32>
    %45 = arith.mulf %43, %44 : vector<32x1024xf32>
    %cst_15 = arith.constant 4.471500e-02 : f32
    %46 = vector.broadcast %cst_15 : f32 to vector<32x1024xf32>
    %47 = arith.mulf %46, %45 : vector<32x1024xf32>
    %48 = arith.addf %43, %47 : vector<32x1024xf32>
    %cst_16 = arith.constant 0.797884583 : f32
    %49 = vector.broadcast %cst_16 : f32 to vector<32x1024xf32>
    %50 = arith.mulf %49, %48 : vector<32x1024xf32>
    %51 = math.tanh %50 : vector<32x1024xf32>
    %cst_17 = arith.constant 1.000000e+00 : f32
    %52 = vector.broadcast %cst_17 : f32 to vector<32x1024xf32>
    %53 = arith.addf %52, %51 : vector<32x1024xf32>
    %cst_18 = arith.constant 5.000000e-01 : f32
    %54 = vector.broadcast %cst_18 : f32 to vector<32x1024xf32>
    %55 = arith.mulf %54, %53 : vector<32x1024xf32>
    %56 = arith.mulf %43, %55 : vector<32x1024xf32>
    %c0_19 = arith.constant 0 : index
    %c0_20 = arith.constant 0 : index
    %57 = vector.load %arg5[%c0_19, %c0_20] : memref<128x32xbf16, #tpu.memory_space<vmem>>, vector<128x32xbf16>
    %58 = arith.truncf %56 : vector<32x1024xf32> to vector<32x1024xbf16>
    %cst_21 = arith.constant dense<0.000000e+00> : vector<128x1024xf32>
    %59 = tpu.matmul %57, %58, %cst_21 {dimension_numbers = #tpu.dot_dimension_numbers<[1], [0], [0], [1], [0, 0, 1, 1], [], []>} : vector<128x32xbf16>, vector<32x1024xbf16>, vector<128x1024xf32> -> vector<128x1024xf32>
    %c0_22 = arith.constant 0 : index
    %c0_23 = arith.constant 0 : index
    %60 = vector.load %arg6[%c0_22, %c0_23] : memref<128x1xf32, #tpu.memory_space<vmem>>, vector<128x1xf32>
    %61 = vector.broadcast %60 : vector<128x1xf32> to vector<128x1024xf32>
    %62 = arith.addf %59, %61 : vector<128x1024xf32>
    %63 = arith.mulf %62, %62 : vector<128x1024xf32>
    %64 = arith.mulf %62, %63 : vector<128x1024xf32>
    %cst_24 = arith.constant 4.471500e-02 : f32
    %65 = vector.broadcast %cst_24 : f32 to vector<128x1024xf32>
    %66 = arith.mulf %65, %64 : vector<128x1024xf32>
    %67 = arith.addf %62, %66 : vector<128x1024xf32>
    %cst_25 = arith.constant 0.797884583 : f32
    %68 = vector.broadcast %cst_25 : f32 to vector<128x1024xf32>
    %69 = arith.mulf %68, %67 : vector<128x1024xf32>
    %70 = math.tanh %69 : vector<128x1024xf32>
    %cst_26 = arith.constant 1.000000e+00 : f32
    %71 = vector.broadcast %cst_26 : f32 to vector<128x1024xf32>
    %72 = arith.addf %71, %70 : vector<128x1024xf32>
    %cst_27 = arith.constant 5.000000e-01 : f32
    %73 = vector.broadcast %cst_27 : f32 to vector<128x1024xf32>
    %74 = arith.mulf %73, %72 : vector<128x1024xf32>
    %75 = arith.mulf %62, %74 : vector<128x1024xf32>
    %c0_28 = arith.constant 0 : index
    %c0_29 = arith.constant 0 : index
    %76 = vector.load %arg7[%c0_28, %c0_29] : memref<32x128xbf16, #tpu.memory_space<vmem>>, vector<32x128xbf16>
    %77 = arith.truncf %75 : vector<128x1024xf32> to vector<128x1024xbf16>
    %cst_30 = arith.constant dense<0.000000e+00> : vector<32x1024xf32>
    %78 = tpu.matmul %76, %77, %cst_30 {dimension_numbers = #tpu.dot_dimension_numbers<[1], [0], [0], [1], [0, 0, 1, 1], [], []>} : vector<32x128xbf16>, vector<128x1024xbf16>, vector<32x1024xf32> -> vector<32x1024xf32>
    %79 = arith.addf %56, %78 : vector<32x1024xf32>
    %80 = vector.extract_strided_slice %79 {offsets = [0, 0], sizes = [32, 256], strides = [1, 1]} : vector<32x1024xf32> to vector<32x256xf32>
    %81 = vector.extract_strided_slice %79 {offsets = [0, 256], sizes = [32, 256], strides = [1, 1]} : vector<32x1024xf32> to vector<32x256xf32>
    %82 = arith.addf %80, %81 : vector<32x256xf32>
    %83 = vector.extract_strided_slice %79 {offsets = [0, 512], sizes = [32, 256], strides = [1, 1]} : vector<32x1024xf32> to vector<32x256xf32>
    %84 = arith.addf %82, %83 : vector<32x256xf32>
    %85 = vector.extract_strided_slice %79 {offsets = [0, 768], sizes = [32, 256], strides = [1, 1]} : vector<32x1024xf32> to vector<32x256xf32>
    %86 = arith.addf %84, %85 : vector<32x256xf32>
    %cst_31 = arith.constant 2.500000e-01 : f32
    %87 = vector.broadcast %cst_31 : f32 to vector<32x256xf32>
    %88 = arith.mulf %86, %87 : vector<32x256xf32>
    %89 = vector.broadcast %9 : vector<32x1xf32> to vector<32x256xf32>
    %90 = arith.addf %88, %89 : vector<32x256xf32>
    %c0_32 = arith.constant 0 : index
    %c0_33 = arith.constant 0 : index
    %91 = vector.load %arg8[%c0_32, %c0_33] : memref<32x32xbf16, #tpu.memory_space<vmem>>, vector<32x32xbf16>
    %92 = arith.truncf %90 : vector<32x256xf32> to vector<32x256xbf16>
    %cst_34 = arith.constant dense<0.000000e+00> : vector<32x256xf32>
    %93 = tpu.matmul %91, %92, %cst_34 {dimension_numbers = #tpu.dot_dimension_numbers<[1], [0], [0], [1], [0, 0, 1, 1], [], []>} : vector<32x32xbf16>, vector<32x256xbf16>, vector<32x256xf32> -> vector<32x256xf32>
    %c0_35 = arith.constant 0 : index
    %c0_36 = arith.constant 0 : index
    %94 = vector.load %arg9[%c0_35, %c0_36] : memref<32x1xf32, #tpu.memory_space<vmem>>, vector<32x1xf32>
    %95 = vector.broadcast %94 : vector<32x1xf32> to vector<32x256xf32>
    %96 = arith.addf %93, %95 : vector<32x256xf32>
    %97 = arith.mulf %96, %96 : vector<32x256xf32>
    %98 = arith.mulf %96, %97 : vector<32x256xf32>
    %cst_37 = arith.constant 4.471500e-02 : f32
    %99 = vector.broadcast %cst_37 : f32 to vector<32x256xf32>
    %100 = arith.mulf %99, %98 : vector<32x256xf32>
    %101 = arith.addf %96, %100 : vector<32x256xf32>
    %cst_38 = arith.constant 0.797884583 : f32
    %102 = vector.broadcast %cst_38 : f32 to vector<32x256xf32>
    %103 = arith.mulf %102, %101 : vector<32x256xf32>
    %104 = math.tanh %103 : vector<32x256xf32>
    %cst_39 = arith.constant 1.000000e+00 : f32
    %105 = vector.broadcast %cst_39 : f32 to vector<32x256xf32>
    %106 = arith.addf %105, %104 : vector<32x256xf32>
    %cst_40 = arith.constant 5.000000e-01 : f32
    %107 = vector.broadcast %cst_40 : f32 to vector<32x256xf32>
    %108 = arith.mulf %107, %106 : vector<32x256xf32>
    %109 = arith.mulf %96, %108 : vector<32x256xf32>
    %c0_41 = arith.constant 0 : index
    %c0_42 = arith.constant 0 : index
    %110 = vector.load %arg10[%c0_41, %c0_42] : memref<2x32xbf16, #tpu.memory_space<vmem>>, vector<2x32xbf16>
    %111 = arith.truncf %109 : vector<32x256xf32> to vector<32x256xbf16>
    %cst_43 = arith.constant dense<0.000000e+00> : vector<2x256xf32>
    %112 = tpu.matmul %110, %111, %cst_43 {dimension_numbers = #tpu.dot_dimension_numbers<[1], [0], [0], [1], [0, 0, 1, 1], [], []>} : vector<2x32xbf16>, vector<32x256xbf16>, vector<2x256xf32> -> vector<2x256xf32>
    %c0_44 = arith.constant 0 : index
    %c0_45 = arith.constant 0 : index
    %113 = vector.load %arg11[%c0_44, %c0_45] : memref<2x1xf32, #tpu.memory_space<vmem>>, vector<2x1xf32>
    %114 = vector.broadcast %113 : vector<2x1xf32> to vector<2x256xf32>
    %115 = arith.addf %112, %114 : vector<2x256xf32>
    %116 = arith.negf %115 : vector<2x256xf32>
    %117 = math.exp %116 : vector<2x256xf32>
    %cst_46 = arith.constant 1.000000e+00 : f32
    %118 = vector.broadcast %cst_46 : f32 to vector<2x256xf32>
    %119 = arith.addf %118, %117 : vector<2x256xf32>
    %120 = arith.divf %118, %119 : vector<2x256xf32>
    %c0_47 = arith.constant 0 : index
    %c0_48 = arith.constant 0 : index
    %c0_49 = arith.constant 0 : index
    %121 = vector.load %arg12[%c0_47, %c0_48, %c0_49] : memref<1x2x256xf32, #tpu.memory_space<vmem>>, vector<1x2x256xf32>
    %122 = vector.shape_cast %121 : vector<1x2x256xf32> to vector<2x256xf32>
    %123 = vector.shape_cast %120 : vector<2x256xf32> to vector<1x2x256xf32>
    tpu.vector_store %arg12[%c0_47, %c0_48, %c0_49], %123 {strides = array<i32>} : memref<1x2x256xf32, #tpu.memory_space<vmem>>, vector<1x2x256xf32>,
    return
  }
  func.func @transform_0(%arg0: i32) -> (i32, i32, i32) {
    %c0_i32 = arith.constant 0 : i32
    %c0_i32_0 = arith.constant 0 : i32
    %c0_i32_1 = arith.constant 0 : i32
    return %arg0, %c0_i32, %c0_i32_0 : i32, i32, i32
  }
  func.func @transform_1(%arg0: i32) -> (i32, i32) {
    %c0_i32 = arith.constant 0 : i32
    %c0_i32_0 = arith.constant 0 : i32
    %c0_i32_1 = arith.constant 0 : i32
    return %c0_i32, %c0_i32_0 : i32, i32
  }
  func.func @transform_2(%arg0: i32) -> (i32, i32) {
    %c0_i32 = arith.constant 0 : i32
    %c0_i32_0 = arith.constant 0 : i32
    %c0_i32_1 = arith.constant 0 : i32
    return %c0_i32, %c0_i32_0 : i32, i32
  }
  func.func @transform_3(%arg0: i32) -> (i32, i32) {
    %c0_i32 = arith.constant 0 : i32
    %c0_i32_0 = arith.constant 0 : i32
    %c0_i32_1 = arith.constant 0 : i32
    return %c0_i32, %c0_i32_0 : i32, i32
  }
  func.func @transform_4(%arg0: i32) -> (i32, i32) {
    %c0_i32 = arith.constant 0 : i32
    %c0_i32_0 = arith.constant 0 : i32
    %c0_i32_1 = arith.constant 0 : i32
    return %c0_i32, %c0_i32_0 : i32, i32
  }
  func.func @transform_5(%arg0: i32) -> (i32, i32) {
    %c0_i32 = arith.constant 0 : i32
    %c0_i32_0 = arith.constant 0 : i32
    %c0_i32_1 = arith.constant 0 : i32
    return %c0_i32, %c0_i32_0 : i32, i32
  }
  func.func @transform_6(%arg0: i32) -> (i32, i32) {
    %c0_i32 = arith.constant 0 : i32
    %c0_i32_0 = arith.constant 0 : i32
    %c0_i32_1 = arith.constant 0 : i32
    return %c0_i32, %c0_i32_0 : i32, i32
  }
  func.func @transform_7(%arg0: i32) -> (i32, i32) {
    %c0_i32 = arith.constant 0 : i32
    %c0_i32_0 = arith.constant 0 : i32
    %c0_i32_1 = arith.constant 0 : i32
    return %c0_i32, %c0_i32_0 : i32, i32
  }
  func.func @transform_8(%arg0: i32) -> (i32, i32) {
    %c0_i32 = arith.constant 0 : i32
    %c0_i32_0 = arith.constant 0 : i32
    %c0_i32_1 = arith.constant 0 : i32
    return %c0_i32, %c0_i32_0 : i32, i32
  }
  func.func @transform_9(%arg0: i32) -> (i32, i32) {
    %c0_i32 = arith.constant 0 : i32
    %c0_i32_0 = arith.constant 0 : i32
    %c0_i32_1 = arith.constant 0 : i32
    return %c0_i32, %c0_i32_0 : i32, i32
  }
  func.func @transform_10(%arg0: i32) -> (i32, i32) {
    %c0_i32 = arith.constant 0 : i32
    %c0_i32_0 = arith.constant 0 : i32
    %c0_i32_1 = arith.constant 0 : i32
    return %c0_i32, %c0_i32_0 : i32, i32
  }
  func.func @transform_11(%arg0: i32) -> (i32, i32, i32) {
    %c0_i32 = arith.constant 0 : i32
    %c0_i32_0 = arith.constant 0 : i32
    %c0_i32_1 = arith.constant 0 : i32
    return %arg0, %c0_i32, %c0_i32_0 : i32, i32, i32
  }
}

</mosaic_0001>

<bundles_post_ra>
// kernel: tpu_custom_call.1
= control target key start
LH: loop header
LB: loop body
LE: loop exit
PB: predicated region body
PF: predicated region fallthrough
CT: control target
= control target key end

     0   :  { %s7576_s0 = inlined_call_operand.vmem [shape: f32[2,4,1024], index: 0, kind: input, shape index: {}]   ;;  %s7577_s1 = inlined_call_operand.vmem [shape: f32[32,32], index: 1, kind: input, shape index: {}]   ;;  %s7578_s2 = inlined_call_operand.vmem [shape: bf16[32,4], index: 2, kind: input, shape index: {}]   ;;  %s7579_s3 = inlined_call_operand.vmem [shape: f32[32,4], index: 3, kind: input, shape index: {}]   ;;  %s7580_s4 = inlined_call_operand.vmem [shape: bf16[128,32], index: 4, kind: input, shape index: {}]   ;;  %s7581_s5 = inlined_call_operand.vmem [shape: f32[128,1], index: 5, kind: input, shape index: {}]   ;;  %s7582_s6 = inlined_call_operand.vmem [shape: bf16[32,128], index: 6, kind: input, shape index: {}]   ;;  %s7583_s7 = inlined_call_operand.vmem [shape: bf16[32,32], index: 7, kind: input, shape index: {}]   ;;  %s7584_s8 = inlined_call_operand.vmem [shape: f32[32,1], index: 8, kind: input, shape index: {}]   ;;  %s7585_s9 = inlined_call_operand.vmem [shape: bf16[2,32], index: 9, kind: input, shape index: {}]   ;;  %s7586_s10 = inlined_call_operand.vmem [shape: f32[2,1], index: 10, kind: input, shape index: {}]   ;;  %s7587_s11 = inlined_call_operand.hbm [shape: f32[2,2,256], index: 11, kind: output, shape index: {}]  }
   0x1   :  { %7684 = sst [smem:[#allocation126_spill]] %s7576_s0 }
   0x2   :  { %16 = vsyncpa [#allocation3], 0 }
   0x3   :  { %18 = vsyncpa [#allocation3 + $0x1], 0  ;;  %s4639_s17 = smov 0   ;;  %s4641_s18 = smov 0  }
   0x4   :  { %s4643_s19 = smov 0   ;;  %s4645_s20 = smov 0  }
   0x5 LB: > { %s4660_s21 = sadd.s32 4294967295, %s4570_s20   ;;  %s3897_s22 = sadd.s32 4294967294, %s4570_s20   ;;  %s4570_s20 = sphi %s4645_s20, %s8061_s20   ;;  %s4566_s19 = sphi %s4643_s19, %s8060_s19   ;;  %s4562_s18 = sphi %s4641_s18, %s8059_s18   ;;  %s4558_s17 = sphi %s4639_s17, %s8058_s17  }
   0x6   : > { %s4664_s23 = sadd.s32 1, %s4570_s20   ;;  %s267_s24 = sadd.s32 1, %s4566_s19 }
   0x7   : > { %s264_s25 = ssub.s32 %s4570_s20, %s4664_s23  ;;  %p277_p0 = scmp.ne.s32.totalorder %s4566_s19, %s4562_s18 }
   0x8   : > { %p265_p1 = scmp.eq.s32.totalorder %s264_s25, 0  ;;  %p278_p2 = scmp.eq.s32.totalorder %s4660_s21, 1 }
   0x9   : > { %p283_p3 = scmp.ne.s32.totalorder %s4562_s18, %s4558_s17  ;;  %p284_p4 = scmp.eq.s32.totalorder %s3897_s22, 1 }
   0xa   : > { %s4675_s26 = scalar_select %p265_p1, %s4566_s19, %s267_s24  }
   0xb   : > { %p4677_p5 = por %p278_p2, %p277_p0  ;;  %p4681_p6 = por %p284_p4, %p283_p3 }
   0xc   : > { %p3900_p7 = scmp.ge.s32.totalorder %s4570_s20, 1  ;;  %p340_p8 = scmp.lt.s32.totalorder %s4570_s20, 3 }
   0xe   : > { %p341_p9 = pnand %p3900_p7, %p340_p8 }
  0x10   : > { %344 = sbr.rel (%p341_p9) target bundleno = 2519 (0x9d7), region = 64 }
  0x17   : > { %p380_p10 = scmp.lt.s32.totalorder %s4660_s21, 1  ;;  %v7588_v0 = vmov 0   ;;  %s7687_s0 = sld [smem:[#allocation126_spill]]  ;;  %vm431_vm0 = vcmask 1041408   ;;  %vm424_vm1 = vcmask 31744   ;;  %v4134_v15 = vld [vmem:[%s7578_s2] sm:$0xff]  }
  0x18   : > { %488 = vmatprep.mubr.bf16.mxu0 %v7588_v0  ;;  %541 = vmatprep.mubr.bf16.mxu1 %v7588_v0  ;;  %v4135_v22 = vld [vmem:[%s7578_s2 + $0x8] sm:$0xff]   ;;  %s4573_s22 = smov 1   ;;  %vm829_vm2 = vcmask 261120   ;;  %vm820_vm3 = vcmask 7168   ;;  %s4574_s16 = smov 126  }
  0x19   : > { %s381_s29 = scalar_select %p380_p10, %s4660_s21, 1 }
  0x1a   : > { %s377_s24 = sand.u32 1, %s4562_s18  }
  0x1b   : > { %s3977_s30 = sshll.u32 %s381_s29, 5  ;;  %s3901_s25 = sshll.u32 %s377_s24, 2 }
  0x1c   : > { %s3978_s29 = sshll.u32 %s4660_s21, 6  ;;  %s4578_s21 = smov [#allocation2]  }
  0x1d   : > { %s384_s14 = scalar_lea.vmem %s7687_s0, %s3977_s30  ;;  %s379_s30 = scalar_lea.vmem [#allocation2], %s3901_s25 }
  0x1e   : > { %v386_v1 = vld [vmem:[%s384_s14] sm:$0xff]  ;;  %v387_v2 = vld [vmem:[%s384_s14 + $0x8] sm:$0xff]  ;;  %v388_v3 = vld [vmem:[%s384_s14 + $0x10] sm:$0xff]  ;;  %s3838_s12 = sshll.u32 %s379_s30, 4  ;;  %s7534_s15 = scalar_lea.hbm %s7587_s11, %s3978_s29  ;;  %s7536_s12 = int_to_ptr.vmem [resolvable:$true] %s3838_s12 }
  0x1f   : > { %v394_v4 = vcombine.high %v386_v1, %v386_v1  ;;  %v402_v5 = vpack.c.bf16 %v386_v1, %v386_v1  ;;  %v395_v6 = vcombine.high %v387_v2, %v387_v2  ;;  %v404_v7 = vpack.c.bf16 %v387_v2, %v387_v2  ;;  %v389_v8 = vld [vmem:[%s384_s14 + $0x18] sm:$0xff]  ;;  %s4512_s25 = sshll.u32 %s4578_s21, 4  ;;  %s4513_s25 = int_to_ptr.vmem [resolvable:$false] %s4512_s25 }
  0x20   : > { %v396_v9 = vcombine.high %v388_v3, %v388_v3  ;;  %v397_v10 = vcombine.high %v389_v8, %v389_v8  ;;  %v406_v17 = vpack.c.bf16 %v388_v3, %v388_v3  ;;  %v408_v19 = vpack.c.bf16 %v389_v8, %v389_v8  ;;  %s4514_s0 = scalar_lea.vmem %s4513_s25, 128  ;;  %p4515_p0 = scmp.lt.s32.totalorder %s7536_s12, %s4513_s25 }
  0x21   : > { %v403_v11 = vpack.c.bf16 %v394_v4, %v394_v4  ;;  %v433_v12 = vsel %vm431_vm0, %v402_v5, 0  ;;  %v405_v13 = vpack.c.bf16 %v395_v6, %v395_v6  ;;  %v439_v14 = vsel %vm431_vm0, %v404_v7, 0 }
  0x22   : > { %v407_v16 = vpack.c.bf16 %v396_v9, %v396_v9  ;;  %v409_v18 = vpack.c.bf16 %v397_v10, %v397_v10  ;;  %v445_v20 = vsel %vm431_vm0, %v406_v17, 0  ;;  %v451_v21 = vsel %vm431_vm0, %v408_v19, 0 }
  0x23   : > { %3906 = vmatprep.subr.msk.bf16.mxu0 %vm431_vm0, %v403_v11  ;;  %3909 = vmatprep.subr.msk.bf16.mxu1 %vm431_vm0, %v405_v13 }
  0x24   : > { %457 = vmatpush1.bf16.msra.mxu0 %v433_v12  ;;  %510 = vmatpush1.bf16.msra.mxu1 %v439_v14 }
  0x25   : > { %3912 = vmatprep.subr.msk.bf16.mxu0 %vm431_vm0, %v407_v16  ;;  %3915 = vmatprep.subr.msk.bf16.mxu1 %vm431_vm0, %v409_v18 }
  0x27   : > { %3907 = vmatmul.mubr.msk.bf16.vlgmr.msra.gmra.mrb[0].mxu0 %vm424_vm1, %v4134_v15  ;;  %3910 = vmatmul.mubr.msk.bf16.vlgmr.msra.gmra.mrb[0].mxu1 %vm424_vm1, %v4134_v15 }
  0x28   : > { %498 = vmatprep.mubr.bf16.mxu0 %v7588_v0  ;;  %551 = vmatprep.mubr.bf16.mxu1 %v7588_v0 }
  0x29   : > { %563 = vmatpush1.bf16.msra.mxu0 %v445_v20  ;;  %616 = vmatpush1.bf16.msra.mxu1 %v451_v21 }
  0x2f   : > { %3908 = vmatmul.mubr.msk.bf16.gmra.mrb[4].mxu0 %vm424_vm1, %v4135_v22  ;;  %3911 = vmatmul.mubr.msk.bf16.gmra.mrb[4].mxu1 %vm424_vm1, %v4135_v22 }
  0x30   : > { %594 = vmatprep.mubr.bf16.mxu0 %v7588_v0  ;;  %647 = vmatprep.mubr.bf16.mxu1 %v7588_v0 }
  0x37   : > { %3913 = vmatmul.mubr.msk.bf16.vlgmr.msra.gmra.mrb[8].mxu0 %vm424_vm1, %v4134_v15  ;;  %3916 = vmatmul.mubr.msk.bf16.vlgmr.msra.gmra.mrb[8].mxu1 %vm424_vm1, %v4134_v15 }
  0x38   : > { %604 = vmatprep.mubr.bf16.mxu0 %v7588_v0  ;;  %657 = vmatprep.mubr.bf16.mxu1 %v7588_v0 }
  0x3f   : > { %3914 = vmatmul.mubr.msk.bf16.gmra.mrb[12].mxu0 %vm424_vm1, %v4135_v22  ;;  %3917 = vmatmul.mubr.msk.bf16.gmra.mrb[12].mxu1 %vm424_vm1, %v4135_v22 }
  0x40   : > { %1669 = vmatprep.mubr.bf16.mxu1 %v7588_v0 }
  0xfa   : > { %v4723_v23 = vpop.f32.mrb[0].mxu0  ;;  %v4725_v24 = vpop.f32.mrb[0].mxu1 }
  0xfb   : > { %v708_v25 = vmul.f32 %v4723_v23, %v4723_v23  ;;  %v4729_v26 = vpop.f32.mrb[1].mxu0  ;;  %v4731_v27 = vpop.f32.mrb[1].mxu1  ;;  %v710_v30 = vmul.f32 %v4725_v24, %v4725_v24 }
  0xfc   : > { %v672_v28 = vadd.f32 %v4729_v26, %v4723_v23  ;;  %v709_v29 = vmul.f32 %v4729_v26, %v4729_v26  ;;  %v4739_v31 = vpop.f32.mrb[2].mxu0  ;;  %v4741_v32 = vpop.f32.mrb[2].mxu1  ;;  %v711_v34 = vmul.f32 %v4731_v27, %v4731_v27 }
  0xfd   : > { %v716_v33 = vmul.f32 %v4739_v31, %v4739_v31  ;;  %v4747_v35 = vpop.f32.mrb[3].mxu0  ;;  %v718_v36 = vmul.f32 %v4741_v32, %v4741_v32  ;;  %v4751_v37 = vpop.f32.mrb[3].mxu1 }
  0xfe   : > { %v740_v38 = vadd.f32 %v709_v29, %v708_v25  ;;  %v673_v39 = vadd.f32 %v672_v28, %v4725_v24  ;;  %v681_v40 = vadd.f32 %v4747_v35, %v4739_v31  ;;  %v717_v41 = vmul.f32 %v4747_v35, %v4747_v35 }
  0xff   : > { %v719_v49 = vmul.f32 %v4751_v37, %v4751_v37 }
 0x100   : > { %v741_v42 = vadd.f32 %v740_v38, %v710_v30  ;;  %v674_v43 = vadd.f32 %v673_v39, %v4731_v27  ;;  %v749_v44 = vadd.f32 %v717_v41, %v716_v33  ;;  %v682_v45 = vadd.f32 %v681_v40, %v4741_v32 }
 0x102   : > { %v742_v46 = vadd.f32 %v741_v42, %v711_v34  ;;  %v750_v47 = vadd.f32 %v749_v44, %v718_v36  ;;  %v683_v48 = vadd.f32 %v682_v45, %v4751_v37  ;;  %v4763_v50 = vpop.f32.mrb[4].mxu0  ;;  %v4765_v51 = vpop.f32.mrb[4].mxu1 }
 0x103   : > { %v724_v52 = vmul.f32 %v4763_v50, %v4763_v50  ;;  %v4769_v53 = vpop.f32.mrb[5].mxu0  ;;  %v4771_v54 = vpop.f32.mrb[5].mxu1  ;;  %v726_v58 = vmul.f32 %v4765_v51, %v4765_v51 }
 0x104   : > { %v751_v55 = vadd.f32 %v750_v47, %v719_v49  ;;  %v690_v56 = vadd.f32 %v4769_v53, %v4763_v50  ;;  %v725_v57 = vmul.f32 %v4769_v53, %v4769_v53  ;;  %v4779_v59 = vpop.f32.mrb[6].mxu0  ;;  %v4781_v60 = vpop.f32.mrb[6].mxu1  ;;  %v727_v62 = vmul.f32 %v4771_v54, %v4771_v54 }
 0x105   : > { %v732_v61 = vmul.f32 %v4779_v59, %v4779_v59  ;;  %v4787_v63 = vpop.f32.mrb[7].mxu0  ;;  %v734_v1 = vmul.f32 %v4781_v60, %v4781_v60  ;;  %v4791_v2 = vpop.f32.mrb[7].mxu1 }
 0x106   : > { %v758_v3 = vadd.f32 %v725_v57, %v724_v52  ;;  %v691_v4 = vadd.f32 %v690_v56, %v4765_v51  ;;  %v699_v5 = vadd.f32 %v4787_v63, %v4779_v59  ;;  %v733_v6 = vmul.f32 %v4787_v63, %v4787_v63 }
 0x107   : > { %v735_v14 = vmul.f32 %v4791_v2, %v4791_v2 }
 0x108   : > { %v759_v7 = vadd.f32 %v758_v3, %v726_v58  ;;  %v692_v8 = vadd.f32 %v691_v4, %v4771_v54  ;;  %v767_v9 = vadd.f32 %v733_v6, %v732_v61  ;;  %v700_v10 = vadd.f32 %v699_v5, %v4781_v60 }
 0x10a   : > { %v760_v11 = vadd.f32 %v759_v7, %v727_v62  ;;  %v768_v12 = vadd.f32 %v767_v9, %v734_v1  ;;  %v701_v13 = vadd.f32 %v700_v10, %v4791_v2  ;;  %v4803_v15 = vpop.f32.mrb[8].mxu0  ;;  %v4805_v16 = vpop.f32.mrb[8].mxu1 }
 0x10b   : > { %v675_v17 = vadd.f32 %v674_v43, %v4803_v15  ;;  %v712_v18 = vmul.f32 %v4803_v15, %v4803_v15  ;;  %v4810_v19 = vpop.f32.mrb[9].mxu0  ;;  %v4812_v20 = vpop.f32.mrb[9].mxu1  ;;  %v714_v25 = vmul.f32 %v4805_v16, %v4805_v16 }
 0x10c   : > { %v769_v21 = vadd.f32 %v768_v12, %v735_v14  ;;  %v713_v22 = vmul.f32 %v4810_v19, %v4810_v19  ;;  %v4818_v28 = vpop.f32.mrb[10].mxu0  ;;  %v4820_v29 = vpop.f32.mrb[10].mxu1  ;;  %v715_v45 = vmul.f32 %v4812_v20, %v4812_v20 }
 0x10d   : > { %v743_v30 = vadd.f32 %v742_v46, %v712_v18  ;;  %v676_v33 = vadd.f32 %v675_v17, %v4810_v19  ;;  %v684_v34 = vadd.f32 %v683_v48, %v4818_v28  ;;  %v720_v36 = vmul.f32 %v4818_v28, %v4818_v28  ;;  %v4826_v38 = vpop.f32.mrb[11].mxu0  ;;  %v4828_v39 = vpop.f32.mrb[11].mxu1 }
 0x10e   : > { %v721_v40 = vmul.f32 %v4826_v38, %v4826_v38  ;;  %v722_v52 = vmul.f32 %v4820_v29, %v4820_v29  ;;  %v723_v3 = vmul.f32 %v4828_v39, %v4828_v39 }
 0x10f   : > { %v752_v41 = vadd.f32 %v751_v55, %v720_v36  ;;  %v685_v42 = vadd.f32 %v684_v34, %v4826_v38  ;;  %v677_v43 = vadd.f32 %v676_v33, %v4805_v16  ;;  %v744_v44 = vadd.f32 %v743_v30, %v713_v22 }
 0x111   : > { %v678_v46 = vadd.f32 %v677_v43, %v4812_v20  ;;  %v745_v47 = vadd.f32 %v744_v44, %v714_v25  ;;  %v686_v48 = vadd.f32 %v685_v42, %v4820_v29  ;;  %v753_v49 = vadd.f32 %v752_v41, %v721_v40 }
 0x112   : > { %v4840_v56 = vpop.f32.mrb[12].mxu0  ;;  %v4842_v55 = vpop.f32.mrb[12].mxu1 }
 0x113   : > { %v693_v57 = vadd.f32 %v692_v8, %v4840_v56  ;;  %v728_v58 = vmul.f32 %v4840_v56, %v4840_v56  ;;  %679 = vadd.xlane.f32.xlu0 %v678_v46  ;;  %v4847_v61 = vpop.f32.mrb[13].mxu0  ;;  %v4849_v62 = vpop.f32.mrb[13].mxu1  ;;  %v746_v1 = vadd.f32 %v745_v47, %v715_v45  ;;  %v730_v4 = vmul.f32 %v4842_v55, %v4842_v55 }
 0x114   : > { %v729_v5 = vmul.f32 %v4847_v61, %v4847_v61  ;;  %v4857_v6 = vpop.f32.mrb[14].mxu0  ;;  %v4859_v7 = vpop.f32.mrb[14].mxu1  ;;  %v687_v8 = vadd.f32 %v686_v48, %v4828_v39  ;;  %v754_v9 = vadd.f32 %v753_v49, %v722_v52  ;;  %v731_v40 = vmul.f32 %v4849_v62, %v4849_v62  ;;  %v4886_v49 = vld [vmem:[%s7579_s3] sm:$0xff] }
 0x115   : > { %v761_v10 = vadd.f32 %v760_v11, %v728_v58  ;;  %v694_v12 = vadd.f32 %v693_v57, %v4847_v61  ;;  %v702_v14 = vadd.f32 %v701_v13, %v4857_v6  ;;  %v736_v17 = vmul.f32 %v4857_v6, %v4857_v6  ;;  %747 = vadd.xlane.f32.xlu1 %v746_v1  ;;  %v4866_v18 = vpop.f32.mrb[15].mxu0  ;;  %v4868_v22 = vpop.f32.mrb[15].mxu1  ;;  %v4892_v57 = vld [vmem:[%s7579_s3 + $0x8] sm:$0xff] }
 0x116   : > { %v737_v25 = vmul.f32 %v4866_v18, %v4866_v18  ;;  %v755_v30 = vadd.f32 %v754_v9, %v723_v3  ;;  %v738_v13 = vmul.f32 %v4859_v7, %v4859_v7  ;;  %v739_v46 = vmul.f32 %v4868_v22, %v4868_v22 }
 0x117   : > { %v770_v33 = vadd.f32 %v769_v21, %v736_v17  ;;  %v703_v34 = vadd.f32 %v702_v14, %v4866_v18  ;;  %688 = vadd.xlane.f32.xlu0 %v687_v8  ;;  %v695_v11 = vadd.f32 %v694_v12, %v4842_v55  ;;  %v762_v36 = vadd.f32 %v761_v10, %v729_v5  ;;  %v4900_v10 = vld [vmem:[%s7579_s3 + $0x10] sm:$0xff] }
 0x118   : > { %v784_v52 = vmul.f32 2.0, %v4886_v49  ;;  %v785_v3 = vmul.f32 2.0, %v4892_v57  ;;  %v776_v5 = vmul.f32 1024.0, %v4886_v49  ;;  %v777_v8 = vmul.f32 1024.0, %v4892_v57 }
 0x119   : > { %756 = vadd.xlane.f32.xlu1 %v755_v30  ;;  %v696_v41 = vadd.f32 %v695_v11, %v4849_v62  ;;  %v704_v42 = vadd.f32 %v703_v34, %v4859_v7  ;;  %v763_v43 = vadd.f32 %v762_v36, %v730_v4  ;;  %v771_v44 = vadd.f32 %v770_v33, %v737_v25  ;;  %v4907_v33 = vld [vmem:[%s7579_s3 + $0x18] sm:$0xff] }
 0x11a   : > { %v796_v12 = vmul.f32 %v776_v5, %v4886_v49  ;;  %v797_v25 = vmul.f32 %v777_v8, %v4892_v57  ;;  %v786_v11 = vmul.f32 2.0, %v4900_v10 }
 0x11b   : > { %697 = vadd.xlane.f32.xlu0 %v696_v41  ;;  %v705_v21 = vadd.f32 %v704_v42, %v4868_v22  ;;  %v764_v45 = vadd.f32 %v763_v43, %v731_v40  ;;  %v772_v47 = vadd.f32 %v771_v44, %v738_v13  ;;  %v787_v41 = vmul.f32 2.0, %v4907_v33 }
 0x11c   : > { %v778_v43 = vmul.f32 1024.0, %v4900_v10 }
 0x11d   : > { %706 = vadd.xlane.f32.xlu1 %v705_v21  ;;  %v773_v48 = vadd.f32 %v772_v47, %v739_v46  ;;  %v779_v21 = vmul.f32 1024.0, %v4907_v33 }
 0x11f   : > { %765 = vadd.xlane.f32.xlu0 %v764_v45 }
 0x121   : > { %774 = vadd.xlane.f32.xlu1 %v773_v48  ;;  %v798_v48 = vmul.f32 %v778_v43, %v4900_v10 }
 0x1a0   : > { %v680_v58 = vpop.xlane.xlu0 %679 }
 0x1a1   : > { %v788_v1 = vmul.f32 %v784_v52, %v680_v58 }
 0x1a2   : > { %v748_v4 = vpop.xlane.xlu1 %747 }
 0x1a3   : > { %v792_v14 = vadd.f32 %v788_v1, %v748_v4  ;;  %v799_v1 = vmul.f32 %v779_v21, %v4907_v33  ;;  %v825_v4 = vld [vmem:[%s7577_s1] sm:$0xff] }
 0x1a4   : > { %v689_v9 = vpop.xlane.xlu0 %688  ;;  %3995 = vmatprep.mubr.msk.f32.mxu0 %vm829_vm2, %v825_v4 }
 0x1a5   : > { %v789_v17 = vmul.f32 %v785_v3, %v689_v9  ;;  %v800_v13 = vadd.f32 %v796_v12, %v792_v14 }
 0x1a6   : > { %v757_v30 = vpop.xlane.xlu1 %756 }
 0x1a7   : > { %v793_v34 = vadd.f32 %v789_v17, %v757_v30 }
 0x1a8   : > { %v698_v36 = vpop.xlane.xlu0 %697 }
 0x1a9   : > { %v801_v40 = vadd.f32 %v797_v25, %v793_v34  ;;  %v790_v44 = vmul.f32 %v786_v11, %v698_v36  ;;  %v780_v34 = vadd.f32 %v776_v5, %v680_v58  ;;  %v781_v11 = vadd.f32 %v777_v8, %v689_v9  ;;  %v826_v5 = vld [vmem:[%s7577_s1 + $0x8] sm:$0xff]  ;;  %v827_v8 = vld [vmem:[%s7577_s1 + $0x10] sm:$0xff]  ;;  %v828_v9 = vld [vmem:[%s7577_s1 + $0x18] sm:$0xff] }
 0x1aa   : > { %v707_v42 = vpop.xlane.xlu1 %706 }
 0x1ab   : > { %v4114_v45 = vpack.i.bf16 %v801_v40, %v800_v13  ;;  %v791_v47 = vmul.f32 %v787_v41, %v707_v42 }
 0x1ac   : > { %v766_v46 = vpop.xlane.xlu0 %765 }
 0x1ad   : > { %v794_v52 = vadd.f32 %v790_v44, %v766_v46  ;;  %4115 = vrot.lane.b32.xlu0 %v4114_v45, %s4573_s22 }
 0x1ae   : > { %v775_v3 = vpop.xlane.xlu1 %774 }
 0x1af   : > { %v795_v12 = vadd.f32 %v791_v47, %v775_v3  ;;  %v802_v14 = vadd.f32 %v798_v48, %v794_v52  ;;  %v782_v47 = vadd.f32 %v778_v43, %v698_v36  ;;  %v783_v48 = vadd.f32 %v779_v21, %v707_v42 }
 0x1b1   : > { %v803_v17 = vadd.f32 %v799_v1, %v795_v12 }
 0x1b3   : > { %v4119_v25 = vpack.i.bf16 %v803_v17, %v802_v14 }
 0x1b5   : > { %4120 = vrot.lane.b32.xlu1 %v4119_v25, %s4573_s22 }
 0x21f   : > { %v4116_v30 = vpop.permute.xlu0 %4115 }
 0x220   : > { %v4118_v13 = vunpack.i.h.bf16 %v4116_v30  ;;  %v4117_v40 = vunpack.i.l.bf16 %v4116_v30  ;;  %v4575_v30 = vmov 1  }
 0x221   : > { %4125 = vset.pattern.permute.xlu1 %v4575_v30  ;;  %4124 = vset.pattern.permute.xlu0 %v4575_v30 }
 0x222   : > { %v821_v41 = vsel %vm820_vm3, %v780_v34, %v4117_v40  ;;  %v822_v44 = vsel %vm820_vm3, %v781_v11, %v4118_v13 }
 0x223   : > { %v4001_v45 = vpack.c.bf16 %v822_v44, %v821_v41 }
 0x225   : > { %4002 = vmatprep.subr.bf16.mxu0 %v4001_v45 }
 0x226   : > { %4004 = vmatpush3.bf16.msra.mxu0 %v4001_v45 }
 0x227   : > { %v4121_v46 = vpop.permute.xlu1 %4120 }
 0x228   : > { %v4123_v52 = vunpack.i.h.bf16 %v4121_v46  ;;  %v4122_v1 = vunpack.i.l.bf16 %v4121_v46 }
 0x22a   : > { %v823_v3 = vsel %vm820_vm3, %v782_v47, %v4122_v1  ;;  %v824_v4 = vsel %vm820_vm3, %v783_v48, %v4123_v52 }
 0x22b   : > { %v4005_v58 = vpack.c.bf16 %v824_v4, %v823_v3 }
 0x22d   : > { %4006 = vmatprep.subr.bf16.mxu0 %v4005_v58 }
 0x22e   : > { %4008 = vmatpush3.bf16.msra.mxu0 %v4005_v58 }
 0x231   : > { %3996 = vmatmul.mubr.msk.f32.vlgmr.msra.gmra.mrb[16].mxu0 %vm829_vm2, %v826_v5 }
 0x232   : > { %3998 = vmatprep.mubr.msk.f32.mxu0 %vm829_vm2, %v827_v8 }
 0x235   : > { %3999 = vmatmul.mubr.msk.f32.gmra.mrb[18].mxu0 %vm829_vm2, %v828_v9 }
 0x236   : > { %1619 = vmatprep.mubr.bf16.mxu0 %v7588_v0 }
 0x304   : > { %v3997_v36 = vpop.f32.mrb[16].mxu0 }
 0x305   : > { %v928_v42 = vmul.f32 %v3997_v36, %v3997_v36  ;;  %v908_v43 = vpop.f32.mrb[17].mxu0  ;;  %v964_v30 = vsub.f32 %v4892_v57, %v3997_v36 }
 0x306   : > { %v927_v12 = vmul.f32 %v908_v43, %v908_v43 }
 0x307   : > { %937 = vrot.lane.b32.xlu1 %v928_v42, %s4573_s22 }
 0x308   : > { %v4939_v21 = vpop.f32.mrb[18].mxu0 }
 0x309   : > { %v4941_v14 = vpop.f32.mrb[19].mxu0  ;;  %v930_v25 = vmul.f32 %v4939_v21, %v4939_v21 }
 0x30a   : > { %v929_v17 = vmul.f32 %v4941_v14, %v4941_v14 }
 0x30b   : > { %935 = vrot.lane.b32.xlu1 %v927_v12, %s4573_s22 }
 0x30c   : > { %939 = vrot.lane.b32.xlu0 %v929_v17, %s4573_s22 }
 0x30f   : > { %941 = vrot.lane.b32.xlu1 %v930_v25, %s4573_s22  ;;  %s4576_s22 = smov 127  }
 0x310   : > { %991 = vrot.lane.b32.xlu0 %v4886_v49, %s4574_s16 }
 0x313   : > { %993 = vrot.lane.b32.xlu1 %v4892_v57, %s4574_s16 }
 0x379   : > { %v938_v34 = vpop.permute.xlu1 %937 }
 0x37a   : > { %v948_v11 = vsub.f32 %v3997_v36, %v938_v34 }
 0x37c   : > { %v952_v13 = vadd.f32 1e-05, %v948_v11 }
 0x37d   : > { %v936_v40 = vpop.permute.xlu1 %935 }
 0x37e   : > { %4150 = vrsqrt.f32 %v952_v13  ;;  %v947_v41 = vsub.f32 %v908_v43, %v936_v40  ;;  %v940_v44 = vpop.permute.xlu0 %939  ;;  %v963_v40 = vsub.f32 %v4886_v49, %v908_v43  ;;  %v1429_v43 = vld [vmem:[%s7581_s5 + $0x10] sm:$0xff] }
 0x37f   : > { %v949_v45 = vsub.f32 %v4941_v14, %v940_v44 }
 0x380   : > { %v951_v46 = vadd.f32 1e-05, %v947_v41 }
 0x381   : > { %v953_v47 = vadd.f32 1e-05, %v949_v45  ;;  %v942_v48 = vpop.permute.xlu1 %941 }
 0x382   : > { %4152 = vrsqrt.f32 %v951_v46  ;;  %v950_v52 = vsub.f32 %v4939_v21, %v942_v48  ;;  %v992_v25 = vpop.permute.xlu0 %991  ;;  %v966_v48 = vsub.f32 %v4907_v33, %v4939_v21  ;;  %v1432_v21 = vld [vmem:[%s7581_s5 + $0x28] sm:$0xff] }
 0x383   : > { %4154 = vrsqrt.f32 %v953_v47 }
 0x384   : > { %v954_v1 = vadd.f32 1e-05, %v950_v52  ;;  %v965_v52 = vsub.f32 %v4900_v10, %v4941_v14  ;;  %v1431_v14 = vld [vmem:[%s7581_s5 + $0x20] sm:$0xff] }
 0x385   : > { %v994_v17 = vpop.permute.xlu1 %993 }
 0x386   : > { %4156 = vrsqrt.f32 %v954_v1 }
 0x388   : > { %v4151_v3 = vpop.eup %4150 }
 0x389   : > { %v960_v4 = vmul.f32 %v4151_v3, %v4892_v57 }
 0x38b   : > { %973 = vrot.lane.b32.xlu1 %v960_v4, %s4576_s22 }
 0x38c   : > { %v4153_v58 = vpop.eup %4152 }
 0x38d   : > { %v959_v5 = vmul.f32 %v4153_v58, %v4886_v49  ;;  %v4155_v8 = vpop.eup %4154  ;;  %v1428_v49 = vld [vmem:[%s7581_s5 + $0x8] sm:$0xff] }
 0x38e   : > { %v961_v12 = vmul.f32 %v4155_v8, %v4900_v10  ;;  %v1433_v8 = vld [vmem:[%s7581_s5 + $0x30] sm:$0xff] }
 0x38f   : > { %971 = vrot.lane.b32.xlu0 %v959_v5, %s4576_s22 }
 0x390   : > { %v4157_v9 = vpop.eup %4156 }
 0x391   : > { %v962_v42 = vmul.f32 %v4157_v9, %v4907_v33 }
 0x393   : > { %977 = vrot.lane.b32.xlu1 %v962_v42, %s4576_s22  ;;  %975 = vrot.lane.b32.xlu0 %v961_v12, %s4576_s22  ;;  %s4508_s22 = scalar_lea.vmem %s7536_s12, 64 }
 0x394   : > { %p4509_p11 = scmp.ne.s32.totalorder %s7536_s12, %s4508_s22  ;;  %p4516_p1 = scmp.lt.s32.totalorder %s4514_s0, %s4508_s22 }
 0x396   : > { %p4510_p12 = pnand %p4509_p11, %p4677_p5  ;;  %p4517_p2 = por %p4516_p1, %p4515_p0 }
 0x397   : > { %997 = vrot.lane.b32.xlu1 %v4907_v33, %s4574_s16  ;;  %995 = vrot.lane.b32.xlu0 %v4900_v10, %s4574_s16  ;;  %v1427_v33 = vld [vmem:[%s7581_s5] sm:$0xff]  ;;  %v1430_v10 = vld [vmem:[%s7581_s5 + $0x18] sm:$0xff]  ;;  %s3824_s16 = scalar_lea.sflag [#allocation3], %s377_s24 }
 0x398   : > { %p4511_p13 = pneg %p4510_p12 }
 0x39a   : > { %p4518_p3 = pnand %p4517_p2, %p4511_p13 }
 0x39b   : > { %1012 = vperm.xlu1 %4125, %v960_v4   ;;  %1008 = vperm.xlu0 %4124, %v959_v5   ;;  %v1434_v5 = vld [vmem:[%s7581_s5 + $0x38] sm:$0xff] }
 0x39f   : > { %1020 = vperm.xlu1 %4125, %v962_v42   ;;  %4126 = vset.pattern.permute.xlu0 %v7588_v0  ;;  %v1436_v42 = vld [vmem:[%s7581_s5 + $0x48] sm:$0xff] }
 0x3a3   : > { %1016 = vperm.xlu1 %4125, %v961_v12   ;;  %v1435_v12 = vld [vmem:[%s7581_s5 + $0x40] sm:$0xff] }
 0x3a7   : > { %4127 = vset.pattern.permute.xlu1 %v7588_v0 }
 0x3fd   : > { %v974_v34 = vpop.permute.xlu1 %973 }
 0x3fe   : > { %v984_v11 = vmul.f32 %v974_v34, %v964_v30  ;;  %v1437_v30 = vld [vmem:[%s7581_s5 + $0x50] sm:$0xff] }
 0x400   : > { %v1004_v13 = vadd.f32 %v994_v17, %v984_v11 }
 0x401   : > { %v972_v41 = vpop.permute.xlu0 %971 }
 0x402   : > { %v983_v44 = vmul.f32 %v972_v41, %v963_v40  ;;  %1062 = vperm.xlu0 %4126, %v1004_v13   ;;  %v1440_v13 = vld [vmem:[%s7581_s5 + $0x68] sm:$0xff]  ;;  %v1439_v40 = vld [vmem:[%s7581_s5 + $0x60] sm:$0xff] }
 0x404   : > { %v1003_v45 = vadd.f32 %v992_v25, %v983_v44  ;;  %v1438_v25 = vld [vmem:[%s7581_s5 + $0x58] sm:$0xff] }
 0x405   : > { %v978_v46 = vpop.permute.xlu1 %977  ;;  %v976_v47 = vpop.permute.xlu0 %975 }
 0x406   : > { %1057 = vperm.xlu1 %4127, %v1003_v45   ;;  %v986_v1 = vmul.f32 %v978_v46, %v966_v48  ;;  %v985_v57 = vmul.f32 %v976_v47, %v965_v52 }
 0x409   : > { %v998_v36 = vpop.permute.xlu1 %997  ;;  %v996_v3 = vpop.permute.xlu0 %995 }
 0x40a   : > { %v1006_v4 = vadd.f32 %v998_v36, %v986_v1  ;;  %v1005_v58 = vadd.f32 %v996_v3, %v985_v57 }
 0x40c   : > { %1072 = vperm.xlu1 %4127, %v1006_v4   ;;  %1067 = vperm.xlu0 %4126, %v1005_v58  }
 0x410   : > { %1450 = vperm.xlu1 %4127, %v1428_v49   ;;  %1445 = vperm.xlu0 %4126, %v1427_v33  }
 0x414   : > { %1460 = vperm.xlu1 %4127, %v1430_v10   ;;  %1455 = vperm.xlu0 %4126, %v1429_v43  }
 0x418   : > { %1470 = vperm.xlu1 %4127, %v1432_v21   ;;  %1465 = vperm.xlu0 %4126, %v1431_v14  }
 0x41a   : > { %v1013_v9 = vpop.permute.xlu1 %1012  ;;  %v1009_v41 = vpop.permute.xlu0 %1008 }
 0x41b   : > { %v1024_v44 = vmul.f32 %v1009_v41, %v4729_v26  ;;  %v1032_v45 = vmul.f32 %v1013_v9, %v4747_v35  ;;  %v1023_v46 = vmul.f32 %v1009_v41, %v4723_v23  ;;  %v1031_v47 = vmul.f32 %v1013_v9, %v4739_v31 }
 0x41c   : > { %1480 = vperm.xlu1 %4127, %v1434_v5   ;;  %1475 = vperm.xlu0 %4126, %v1433_v8   ;;  %v1026_v48 = vmul.f32 %v1009_v41, %v4731_v27  ;;  %v1034_v52 = vmul.f32 %v1013_v9, %v4751_v37  ;;  %v1028_v1 = vmul.f32 %v1009_v41, %v4810_v19 }
 0x41d   : > { %v1036_v57 = vmul.f32 %v1013_v9, %v4826_v38  ;;  %v5035_v36 = vmul.f32 %v1009_v41, %v4725_v24  ;;  %v1033_v3 = vmul.f32 %v1013_v9, %v4741_v32  ;;  %v5039_v35 = vmul.f32 %v1009_v41, %v4803_v15 }
 0x41e   : > { %v1021_v17 = vpop.permute.xlu1 %1020  ;;  %v1035_v23 = vmul.f32 %v1013_v9, %v4818_v28  ;;  %v5043_v31 = vmul.f32 %v1009_v41, %v4812_v20  ;;  %v1038_v27 = vmul.f32 %v1013_v9, %v4828_v39  ;;  %v5056_v32 = vmul.f32 %v1009_v41, %v4805_v16 }
 0x41f   : > { %v5009_v34 = vmul.f32 %v1021_v17, %v4868_v22  ;;  %v5012_v11 = vmul.f32 %v1021_v17, %v4859_v7  ;;  %v1442_v22 = vld [vmem:[%s7581_s5 + $0x78] sm:$0xff]  ;;  %v1441_v7 = vld [vmem:[%s7581_s5 + $0x70] sm:$0xff]  ;;  %v5047_v37 = vmul.f32 %v1021_v17, %v4787_v63  ;;  %v5050_v19 = vmul.f32 %v1021_v17, %v4779_v59 }
 0x420   : > { %1490 = vperm.xlu1 %4127, %v1436_v42   ;;  %1485 = vperm.xlu0 %4126, %v1435_v12   ;;  %v5053_v24 = vmul.f32 %v1021_v17, %v4791_v2  ;;  %v5059_v15 = vmul.f32 %v1021_v17, %v4866_v18  ;;  %v5062_v20 = vmul.f32 %v1021_v17, %v4781_v60 }
 0x421   : > { %v5065_v28 = vmul.f32 %v1021_v17, %v4857_v6  ;;  %v1037_v63 = vmul.f32 %v1013_v9, %v4820_v29 }
 0x422   : > { %v1017_v26 = vpop.permute.xlu1 %1016 }
 0x423   : > { %v1040_v59 = vmul.f32 %v1017_v26, %v4769_v53  ;;  %v1039_v38 = vmul.f32 %v1017_v26, %v4763_v50  ;;  %v5071_v2 = vmul.f32 %v1017_v26, %v4771_v54  ;;  %v5074_v16 = vmul.f32 %v1017_v26, %v4847_v61 }
 0x424   : > { %1500 = vperm.xlu1 %4127, %v1438_v25   ;;  %1495 = vperm.xlu0 %4126, %v1437_v30   ;;  %v5077_v18 = vmul.f32 %v1017_v26, %v4765_v51  ;;  %v5080_v60 = vmul.f32 %v1017_v26, %v4840_v56  ;;  %v5083_v6 = vmul.f32 %v1017_v26, %v4849_v62 }
 0x425   : > { %v5086_v53 = vmul.f32 %v1017_v26, %v4842_v55 }
 0x428   : > { %1510 = vperm.xlu1 %4127, %v1440_v13   ;;  %1505 = vperm.xlu0 %4126, %v1439_v40  }
 0x42c   : > { %1520 = vperm.xlu1 %4127, %v1442_v22   ;;  %1515 = vperm.xlu0 %4126, %v1441_v7  }
 0x481   : > { %v1063_v39 = vpop.permute.xlu0 %1062 }
 0x482   : > { %v5088_v50 = vadd.f32 %v1063_v39, %v1032_v45  ;;  %v5090_v54 = vadd.f32 %v1063_v39, %v1031_v47  ;;  %v5092_v29 = vadd.f32 %v1063_v39, %v1034_v52  ;;  %v5094_v61 = vadd.f32 %v1063_v39, %v1036_v57 }
 0x483   : > { %v5096_v4 = vadd.f32 %v1063_v39, %v1033_v3  ;;  %v5098_v51 = vadd.f32 %v1063_v39, %v1035_v23  ;;  %v5100_v56 = vadd.f32 %v1063_v39, %v1038_v27  ;;  %v5102_v58 = vadd.f32 %v1063_v39, %v1037_v63 }
 0x484   : > { %v1116_v55 = vmul.f32 %v5088_v50, %v5088_v50  ;;  %v1115_v62 = vmul.f32 %v5090_v54, %v5090_v54  ;;  %v1118_v49 = vmul.f32 %v5092_v29, %v5092_v29  ;;  %v1120_v33 = vmul.f32 %v5094_v61, %v5094_v61 }
 0x485   : > { %v5112_v10 = vpop.permute.xlu1 %1057  ;;  %v5116_v43 = vmul.f32 %v5096_v4, %v5096_v4  ;;  %v5120_v21 = vmul.f32 %v5098_v51, %v5098_v51  ;;  %v5124_v14 = vmul.f32 %v5100_v56, %v5100_v56  ;;  %v5128_v5 = vmul.f32 %v5102_v58, %v5102_v58 }
 0x486   : > { %v5131_v8 = vadd.f32 %v5112_v10, %v1024_v44  ;;  %v1148_v9 = vmul.f32 %v1116_v55, %v5088_v50  ;;  %v5135_v42 = vadd.f32 %v5112_v10, %v1023_v46  ;;  %v1147_v12 = vmul.f32 %v1115_v62, %v5090_v54 }
 0x487   : > { %v5139_v17 = vadd.f32 %v5112_v10, %v1026_v48  ;;  %v1150_v25 = vmul.f32 %v1118_v49, %v5092_v29  ;;  %v5143_v30 = vadd.f32 %v5112_v10, %v1028_v1  ;;  %v1152_v13 = vmul.f32 %v1120_v33, %v5094_v61 }
 0x488   : > { %v1108_v40 = vmul.f32 %v5131_v8, %v5131_v8  ;;  %v1180_v22 = vmul.f32 0.044715, %v1148_v9  ;;  %v1107_v7 = vmul.f32 %v5135_v42, %v5135_v42  ;;  %v1179_v41 = vmul.f32 0.044715, %v1147_v12 }
 0x489   : > { %v1110_v44 = vmul.f32 %v5139_v17, %v5139_v17  ;;  %v1182_v45 = vmul.f32 0.044715, %v1150_v25  ;;  %v1112_v46 = vmul.f32 %v5143_v30, %v5143_v30  ;;  %v1184_v47 = vmul.f32 0.044715, %v1152_v13 }
 0x48a   : > { %v1140_v48 = vmul.f32 %v1108_v40, %v5131_v8  ;;  %v1212_v52 = vadd.f32 %v1180_v22, %v5088_v50  ;;  %v1139_v1 = vmul.f32 %v1107_v7, %v5135_v42  ;;  %v1211_v57 = vadd.f32 %v1179_v41, %v5090_v54 }
 0x48b   : > { %v5158_v3 = vpop.permute.xlu1 %1072  ;;  %v5160_v26 = vpop.permute.xlu0 %1067  ;;  %v1142_v23 = vmul.f32 %v1110_v44, %v5139_v17  ;;  %v1214_v27 = vadd.f32 %v1182_v45, %v5092_v29  ;;  %v1144_v63 = vmul.f32 %v1112_v46, %v5143_v30  ;;  %v1216_v39 = vadd.f32 %v1184_v47, %v5094_v61 }
 0x48c   : > { %v1172_v55 = vmul.f32 0.044715, %v1140_v48  ;;  %v1244_v62 = vmul.f32 0.7978846, %v1212_v52  ;;  %v1171_v49 = vmul.f32 0.044715, %v1139_v1  ;;  %v5167_v33 = vadd.f32 %v5160_v26, %v1040_v59 }
 0x48d   : > { %v1243_v9 = vmul.f32 0.7978846, %v1211_v57  ;;  %v5171_v12 = vadd.f32 %v5158_v3, %v5047_v37  ;;  %v5174_v25 = vadd.f32 %v5160_v26, %v1039_v38  ;;  %v5178_v13 = vadd.f32 %v5158_v3, %v5050_v19 }
 0x48e   : > { %v1204_v40 = vadd.f32 %v1172_v55, %v5131_v8  ;;  %4158 = vtanh.f32 %v1244_v62  ;;  %v1203_v22 = vadd.f32 %v1171_v49, %v5135_v42  ;;  %v1124_v59 = vmul.f32 %v5167_v33, %v5167_v33 }
 0x48f   : > { %4160 = vtanh.f32 %v1243_v9  ;;  %v1132_v37 = vmul.f32 %v5171_v12, %v5171_v12  ;;  %v1123_v38 = vmul.f32 %v5174_v25, %v5174_v25  ;;  %v1131_v7 = vmul.f32 %v5178_v13, %v5178_v13 }
 0x490   : > { %v1236_v19 = vmul.f32 0.7978846, %v1204_v40  ;;  %v1235_v41 = vmul.f32 0.7978846, %v1203_v22  ;;  %v1156_v44 = vmul.f32 %v1124_v59, %v5167_v33  ;;  %v1174_v45 = vmul.f32 0.044715, %v1142_v23 }
 0x491   : > { %v1164_v46 = vmul.f32 %v1132_v37, %v5171_v12  ;;  %v1155_v47 = vmul.f32 %v1123_v38, %v5174_v25  ;;  %v1163_v48 = vmul.f32 %v1131_v7, %v5178_v13  ;;  %v1246_v52 = vmul.f32 0.7978846, %v1214_v27 }
 0x492   : > { %4162 = vtanh.f32 %v1236_v19  ;;  %v1188_v1 = vmul.f32 0.044715, %v1156_v44  ;;  %v1206_v57 = vadd.f32 %v1174_v45, %v5139_v17  ;;  %v1176_v55 = vmul.f32 0.044715, %v1144_v63 }
 0x493   : > { %4164 = vtanh.f32 %v1235_v41  ;;  %v1196_v62 = vmul.f32 0.044715, %v1164_v46  ;;  %v1187_v49 = vmul.f32 0.044715, %v1155_v47  ;;  %v1195_v9 = vmul.f32 0.044715, %v1163_v48 }
 0x494   : > { %v1220_v40 = vadd.f32 %v1188_v1, %v5167_v33  ;;  %v1238_v22 = vmul.f32 0.7978846, %v1206_v57  ;;  %4166 = vtanh.f32 %v1246_v52  ;;  %v1208_v23 = vadd.f32 %v1176_v55, %v5143_v30 }
 0x495   : > { %v1228_v59 = vadd.f32 %v1196_v62, %v5171_v12  ;;  %v1219_v37 = vadd.f32 %v1187_v49, %v5174_v25  ;;  %v1227_v27 = vadd.f32 %v1195_v9, %v5178_v13  ;;  %v1248_v38 = vmul.f32 0.7978846, %v1216_v39 }
 0x496   : > { %v1252_v7 = vmul.f32 0.7978846, %v1220_v40  ;;  %4168 = vtanh.f32 %v1238_v22  ;;  %v1240_v63 = vmul.f32 0.7978846, %v1208_v23  ;;  %v5202_v19 = vadd.f32 %v5112_v10, %v5035_v36 }
 0x497   : > { %v1260_v41 = vmul.f32 0.7978846, %v1228_v59  ;;  %v1251_v44 = vmul.f32 0.7978846, %v1219_v37  ;;  %v1259_v45 = vmul.f32 0.7978846, %v1227_v27  ;;  %4170 = vtanh.f32 %v1248_v38 }
 0x498   : > { %v4159_v46 = vpop.eup %4158  ;;  %4172 = vtanh.f32 %v1252_v7  ;;  %v1109_v47 = vmul.f32 %v5202_v19, %v5202_v19  ;;  %v1149_v48 = vmul.f32 %v5116_v43, %v5096_v4  ;;  %v5210_v39 = vadd.f32 %v5112_v10, %v5039_v35 }
 0x499   : > { %v4161_v52 = vpop.eup %4160  ;;  %v1308_v1 = vadd.f32 1.0, %v4159_v46  ;;  %4174 = vtanh.f32 %v1260_v41  ;;  %v1151_v36 = vmul.f32 %v5120_v21, %v5098_v51  ;;  %v5216_v57 = vadd.f32 %v5160_v26, %v5071_v2 }
 0x49a   : > { %v1307_v55 = vadd.f32 1.0, %v4161_v52  ;;  %4176 = vtanh.f32 %v1251_v44  ;;  %v1141_v62 = vmul.f32 %v1109_v47, %v5202_v19  ;;  %v1181_v49 = vmul.f32 0.044715, %v1149_v48 }
 0x49b   : > { %v1340_v43 = vmul.f32 0.5, %v1308_v1  ;;  %4178 = vtanh.f32 %v1259_v45  ;;  %v1111_v35 = vmul.f32 %v5210_v39, %v5210_v39  ;;  %v1183_v9 = vmul.f32 0.044715, %v1151_v36 }
 0x49c   : > { %v4163_v40 = vpop.eup %4162  ;;  %v1339_v22 = vmul.f32 0.5, %v1307_v55  ;;  %4180 = vtanh.f32 %v1240_v63  ;;  %v1173_v23 = vmul.f32 0.044715, %v1141_v62  ;;  %v1213_v21 = vadd.f32 %v1181_v49, %v5096_v4 }
 0x49d   : > { %v4165_v59 = vpop.eup %4164  ;;  %v1300_v2 = vadd.f32 1.0, %v4163_v40  ;;  %v5223_v37 = vmul.f32 %v1340_v43, %v5088_v50  ;;  %v1143_v27 = vmul.f32 %v1111_v35, %v5210_v39  ;;  %v1215_v38 = vadd.f32 %v1183_v9, %v5098_v51 }
 0x49e   : > { %v4167_v7 = vpop.eup %4166  ;;  %v1299_v41 = vadd.f32 1.0, %v4165_v59  ;;  %v5228_v44 = vmul.f32 %v1339_v22, %v5090_v54  ;;  %v1205_v45 = vadd.f32 %v1173_v23, %v5202_v19  ;;  %v1245_v63 = vmul.f32 0.7978846, %v1213_v21 }
 0x49f   : > { %7688 = vst [vmem:[#allocation5_spill] sm:$0xff] %v5223_v37  ;;  %v1332_v46 = vmul.f32 0.5, %v1300_v2  ;;  %v1310_v47 = vadd.f32 1.0, %v4167_v7  ;;  %v1175_v48 = vmul.f32 0.044715, %v1143_v27  ;;  %v5233_v55 = vadd.f32 %v5158_v3, %v5053_v24 }
 0x4a0   : > { %7689 = vst [vmem:[#allocation6_spill] sm:$0xff] %v5228_v44  ;;  %v1247_v52 = vmul.f32 0.7978846, %v1215_v38  ;;  %v4169_v1 = vpop.eup %4168  ;;  %v1331_v36 = vmul.f32 0.5, %v1299_v41  ;;  %v1237_v50 = vmul.f32 0.7978846, %v1205_v45  ;;  %4182 = vtanh.f32 %v1245_v63 }
 0x4a1   : > { %v4171_v62 = vpop.eup %4170  ;;  %v5236_v49 = vmul.f32 %v1332_v46, %v5131_v8  ;;  %v1302_v54 = vadd.f32 1.0, %v4169_v1  ;;  %v1342_v43 = vmul.f32 0.5, %v1310_v47  ;;  %v1207_v35 = vadd.f32 %v1175_v48, %v5210_v39 }
 0x4a2   : > { %v4173_v9 = vpop.eup %4172  ;;  %v5240_v40 = vmul.f32 %v1331_v36, %v5135_v42  ;;  %v1312_v22 = vadd.f32 1.0, %v4171_v62  ;;  %4184 = vtanh.f32 %v1237_v50  ;;  %v1126_v23 = vmul.f32 %v5216_v57, %v5216_v57 }
 0x4a3   : > { %7690 = vst [vmem:[#allocation7_spill] sm:$0xff] %v5236_v49  ;;  %v4175_v21 = vpop.eup %4174  ;;  %v1412_v24 = vpack.c.bf16 %v5223_v37, %v5236_v49  ;;  %v1316_v59 = vadd.f32 1.0, %v4173_v9  ;;  %v1334_v8 = vmul.f32 0.5, %v1302_v54  ;;  %v5247_v2 = vmul.f32 %v1342_v43, %v5092_v29 }
 0x4a4   : > { %7691 = vst [vmem:[#allocation8_spill] sm:$0xff] %v5240_v40  ;;  %v4177_v27 = vpop.eup %4176  ;;  %v1411_v38 = vpack.c.bf16 %v5228_v44, %v5240_v40  ;;  %v1324_v42 = vadd.f32 1.0, %v4175_v21  ;;  %v1344_v7 = vmul.f32 0.5, %v1312_v22  ;;  %v1239_v41 = vmul.f32 0.7978846, %v1207_v35 }
 0x4a5   : > { %7692 = vst [vmem:[#allocation9_spill] sm:$0xff] %v5247_v2  ;;  %v4179_v45 = vpop.eup %4178  ;;  %1587 = vmatprep.subr.bf16.mxu0 %v1412_v24  ;;  %4009 = vmatprep.subr.bf16.mxu1 %v1412_v24  ;;  %v1348_v63 = vmul.f32 0.5, %v1316_v59  ;;  %v1315_v46 = vadd.f32 1.0, %v4177_v27  ;;  %v5252_v47 = vmul.f32 %v1334_v8, %v5139_v17  ;;  %4186 = vtanh.f32 %v1247_v52 }
 0x4a6   : > { %v4181_v48 = vpop.eup %4180  ;;  %1588 = vmatpush1.bf16.msra.mxu0 %v1411_v38  ;;  %4011 = vmatpush1.bf16.msra.mxu1 %v1411_v38  ;;  %v1356_v29 = vmul.f32 0.5, %v1324_v42  ;;  %v1323_v1 = vadd.f32 1.0, %v4179_v45  ;;  %v5255_v36 = vmul.f32 %v1344_v7, %v5094_v61  ;;  %4188 = vtanh.f32 %v1239_v41  ;;  %v5304_v45 = vld [vmem:[%s7580_s4] sm:$0xff]  }
 0x4a7   : > { %7693 = vst [vmem:[#allocation10_spill] sm:$0xff] %v5252_v47  ;;  %v5258_v50 = vmul.f32 %v1348_v63, %v5167_v33  ;;  %v1347_v62 = vmul.f32 0.5, %v1315_v46  ;;  %v1414_v54 = vpack.c.bf16 %v5247_v2, %v5252_v47  ;;  %v1304_v43 = vadd.f32 1.0, %v4181_v48  ;;  %v5309_v63 = vld [vmem:[%s7580_s4 + $0x28] sm:$0xff]  }
 0x4a8   : > { %7694 = vst [vmem:[#allocation11_spill] sm:$0xff] %v5255_v36  ;;  %v5263_v17 = vmul.f32 %v1356_v29, %v5171_v12  ;;  %v1355_v52 = vmul.f32 0.5, %v1323_v1  ;;  %v1134_v35 = vmul.f32 %v5233_v55, %v5233_v55  ;;  %v1158_v9 = vmul.f32 %v1126_v23, %v5216_v57 }
 0x4a9   : > { %v5269_v61 = vmul.f32 %v1347_v62, %v5174_v25  ;;  %v1336_v22 = vmul.f32 0.5, %v1304_v43  ;;  %v5273_v33 = vadd.f32 %v5160_v26, %v5074_v16  ;;  %v5277_v21 = vadd.f32 %v5158_v3, %v5059_v15 }
 0x4aa   : > { %v4183_v12 = vpop.eup %4182  ;;  %v1420_v24 = vpack.c.bf16 %v5263_v17, %v5258_v50  ;;  %v5282_v59 = vmul.f32 %v1355_v52, %v5178_v13  ;;  %v1166_v23 = vmul.f32 %v1134_v35, %v5233_v55  ;;  %v1190_v25 = vmul.f32 0.044715, %v1158_v9 }
 0x4ab   : > { %v5286_v8 = vmul.f32 %v1336_v22, %v5143_v30  ;;  %v1309_v27 = vadd.f32 1.0, %v4183_v12  ;;  %v1128_v16 = vmul.f32 %v5273_v33, %v5273_v33  ;;  %v1136_v15 = vmul.f32 %v5277_v21, %v5277_v21 }
 0x4ac   : > { %v4185_v38 = vpop.eup %4184  ;;  %1589 = vmatprep.subr.bf16.mxu0 %v1420_v24  ;;  %4010 = vmatprep.subr.bf16.mxu1 %v1420_v24  ;;  %v1419_v13 = vpack.c.bf16 %v5282_v59, %v5269_v61  ;;  %v1198_v42 = vmul.f32 0.044715, %v1166_v23  ;;  %v1222_v7 = vadd.f32 %v1190_v25, %v5216_v57  ;;  %v5297_v30 = vadd.f32 %v5160_v26, %v5077_v18 }
 0x4ad   : > { %7695 = vst [vmem:[#allocation12_spill] sm:$0xff] %v5286_v8  ;;  %v1416_v41 = vpack.c.bf16 %v5255_v36, %v5286_v8  ;;  %v1301_v46 = vadd.f32 1.0, %v4185_v38  ;;  %v1341_v48 = vmul.f32 0.5, %v1309_v27  ;;  %v1160_v29 = vmul.f32 %v1128_v16, %v5273_v33 }
 0x4ae   : > { %1590 = vmatpush1.bf16.msra.mxu0 %v1419_v13  ;;  %4012 = vmatpush1.bf16.msra.mxu1 %v1419_v13  ;;  %v1230_v18 = vadd.f32 %v1198_v42, %v5233_v55  ;;  %v1254_v1 = vmul.f32 0.7978846, %v1222_v7  ;;  %v1168_v62 = vmul.f32 %v1136_v15, %v5277_v21  ;;  %v5316_v43 = vadd.f32 %v5158_v3, %v5062_v20 }
 0x4af   : > { %v4187_v52 = vpop.eup %4186  ;;  %1700 = vmatprep.subr.bf16.mxu0 %v1414_v54  ;;  %1813 = vmatprep.subr.bf16.mxu1 %v1416_v41  ;;  %v1333_v35 = vmul.f32 0.5, %v1301_v46  ;;  %v5319_v9 = vmul.f32 %v1341_v48, %v5096_v4  ;;  %v1192_v22 = vmul.f32 0.044715, %v1160_v29  ;;  %v1125_v12 = vmul.f32 %v5297_v30, %v5297_v30 }
 0x4b0   : > { %v4189_v24 = vpop.eup %4188  ;;  %v1311_v23 = vadd.f32 1.0, %v4187_v52  ;;  %v1262_v25 = vmul.f32 0.7978846, %v1230_v18  ;;  %4190 = vtanh.f32 %v1254_v1  ;;  %v1200_v27 = vmul.f32 0.044715, %v1168_v62 }
 0x4b1   : > { %7696 = vst [vmem:[#allocation13_spill] sm:$0xff] %v5319_v9  ;;  %3930 = vmatmul.mubr.msk.bf16.vlgmr.msra.gmra.mrb[20].mxu0 %vm829_vm2, %v5304_v45  ;;  %3935 = vmatmul.mubr.msk.bf16.vlgmr.msra.gmra.mrb[16].mxu1 %vm829_vm2, %v5309_v63  ;;  %v5328_v20 = vmul.f32 %v1333_v35, %v5202_v19  ;;  %v1303_v4 = vadd.f32 1.0, %v4189_v24  ;;  %v1224_v54 = vadd.f32 %v1192_v22, %v5273_v33 }
 0x4b2   : > { %v1133_v16 = vmul.f32 %v5316_v43, %v5316_v43  ;;  %v1343_v15 = vmul.f32 0.5, %v1311_v23  ;;  %4192 = vtanh.f32 %v1262_v25  ;;  %v1232_v38 = vadd.f32 %v1200_v27, %v5277_v21  ;;  %1629 = vmatprep.mubr.bf16.mxu0 %v7588_v0  ;;  %1679 = vmatprep.mubr.bf16.mxu1 %v7588_v0 }
 0x4b3   : > { %7697 = vst [vmem:[#allocation14_spill] sm:$0xff] %v5328_v20  ;;  %v1157_v13 = vmul.f32 %v1125_v12, %v5297_v30  ;;  %v1413_v19 = vpack.c.bf16 %v5319_v9, %v5328_v20  ;;  %v1335_v42 = vmul.f32 0.5, %v1303_v4  ;;  %v1256_v7 = vmul.f32 0.7978846, %v1224_v54 }
 0x4b4   : > { %v1165_v41 = vmul.f32 %v1133_v16, %v5316_v43  ;;  %v5341_v46 = vmul.f32 %v1343_v15, %v5098_v51  ;;  %v1264_v48 = vmul.f32 0.7978846, %v1232_v38  ;;  %v5345_v18 = vadd.f32 %v5160_v26, %v5080_v60  ;;  %v5357_v51 = vld [vmem:[%s7580_s4 + $0x8] sm:$0xff]  }
 0x4b5   : > { %v1189_v29 = vmul.f32 0.044715, %v1157_v13  ;;  %1701 = vmatpush1.bf16.msra.mxu0 %v1413_v19  ;;  %v5348_v1 = vmul.f32 %v1335_v42, %v5210_v39  ;;  %4194 = vtanh.f32 %v1256_v7  ;;  %v5352_v52 = vadd.f32 %v5158_v3, %v5065_v28  ;;  %v5369_v28 = vld [vmem:[%s7580_s4 + $0x30] sm:$0xff]  }
 0x4b6   : > { %7698 = vst [vmem:[#allocation15_spill] sm:$0xff] %v5341_v46  ;;  %v1197_v62 = vmul.f32 0.044715, %v1165_v41  ;;  %4196 = vtanh.f32 %v1264_v48  ;;  %v1127_v60 = vmul.f32 %v5345_v18, %v5345_v18  ;;  %v5364_v39 = vadd.f32 %v5112_v10, %v5043_v31 }
 0x4b7   : > { %7699 = vst [vmem:[#allocation16_spill] sm:$0xff] %v5348_v1  ;;  %v1221_v35 = vadd.f32 %v1189_v29, %v5297_v30  ;;  %v1415_v22 = vpack.c.bf16 %v5341_v46, %v5348_v1  ;;  %v1135_v24 = vmul.f32 %v5352_v52, %v5352_v52  ;;  %v1154_v23 = vmul.f32 %v5124_v14, %v5100_v56 }
 0x4b8   : > { %v1229_v12 = vadd.f32 %v1197_v62, %v5316_v43  ;;  %v1159_v31 = vmul.f32 %v1127_v60, %v5345_v18  ;;  %v1114_v27 = vmul.f32 %v5364_v39, %v5364_v39  ;;  %v5383_v4 = vadd.f32 %v5112_v10, %v5056_v32 }
 0x4b9   : > { %v1253_v25 = vmul.f32 0.7978846, %v1221_v35  ;;  %1814 = vmatpush1.bf16.msra.mxu1 %v1415_v22  ;;  %v1167_v16 = vmul.f32 %v1135_v24, %v5352_v52  ;;  %v1186_v15 = vmul.f32 0.044715, %v1154_v23  ;;  %3931 = vmatmul.mubr.msk.bf16.gmra.mrb[24].mxu0 %vm829_vm2, %v5357_v51  ;;  %v1153_v14 = vmul.f32 %v5128_v5, %v5102_v58  ;;  %v5404_v24 = vld [vmem:[%s7580_s4 + $0x10] sm:$0xff]  }
 0x4ba   : > { %v1261_v54 = vmul.f32 0.7978846, %v1229_v12  ;;  %v4191_v38 = vpop.eup %4190  ;;  %v1191_v13 = vmul.f32 0.044715, %v1159_v31  ;;  %v1146_v19 = vmul.f32 %v1114_v27, %v5364_v39  ;;  %3936 = vmatmul.mubr.msk.bf16.gmra.mrb[20].mxu1 %vm829_vm2, %v5369_v28  ;;  %1639 = vmatprep.mubr.bf16.mxu0 %v7588_v0  ;;  %v1113_v32 = vmul.f32 %v5383_v4, %v5383_v4  ;;  %v5410_v31 = vld [vmem:[%s7580_s4 + $0x38] sm:$0xff]  }
 0x4bb   : > { %4198 = vtanh.f32 %v1253_v25  ;;  %v1318_v10 = vadd.f32 1.0, %v4191_v38  ;;  %v1199_v42 = vmul.f32 0.044715, %v1167_v16  ;;  %v1218_v7 = vadd.f32 %v1186_v15, %v5100_v56  ;;  %1689 = vmatprep.mubr.bf16.mxu1 %v7588_v0 }
 0x4bc   : > { %4200 = vtanh.f32 %v1261_v54  ;;  %v4193_v5 = vpop.eup %4192  ;;  %v1223_v41 = vadd.f32 %v1191_v13, %v5345_v18  ;;  %v1178_v48 = vmul.f32 0.044715, %v1146_v19  ;;  %v1145_v29 = vmul.f32 %v1113_v32, %v5383_v4 }
 0x4bd   : > { %v1185_v62 = vmul.f32 0.044715, %v1153_v14  ;;  %v1326_v35 = vadd.f32 1.0, %v4193_v5  ;;  %v1350_v60 = vmul.f32 0.5, %v1318_v10  ;;  %v1231_v22 = vadd.f32 %v1199_v42, %v5352_v52 }
 0x4be   : > { %v1250_v12 = vmul.f32 0.7978846, %v1218_v7  ;;  %v1255_v23 = vmul.f32 0.7978846, %v1223_v41  ;;  %v1210_v25 = vadd.f32 %v1178_v48, %v5364_v39  ;;  %v1177_v27 = vmul.f32 0.044715, %v1145_v29 }
 0x4bf   : > { %v1217_v54 = vadd.f32 %v1185_v62, %v5102_v58  ;;  %v4195_v16 = vpop.eup %4194  ;;  %v1358_v15 = vmul.f32 0.5, %v1326_v35  ;;  %v5414_v14 = vmul.f32 %v1350_v60, %v5216_v57  ;;  %v1263_v38 = vmul.f32 0.7978846, %v1231_v22 }
 0x4c0   : > { %4202 = vtanh.f32 %v1250_v12  ;;  %v4197_v13 = vpop.eup %4196  ;;  %v1320_v19 = vadd.f32 1.0, %v4195_v16  ;;  %v1242_v32 = vmul.f32 0.7978846, %v1210_v25  ;;  %v1209_v10 = vadd.f32 %v1177_v27, %v5383_v4 }
 0x4c1   : > { %4204 = vtanh.f32 %v1255_v23  ;;  %v5418_v42 = vmul.f32 %v1358_v15, %v5233_v55  ;;  %v1328_v7 = vadd.f32 1.0, %v4197_v13  ;;  %3932 = vmatmul.mubr.msk.bf16.gmra.mrb[28].mxu0 %vm829_vm2, %v5404_v24  ;;  %v1249_v5 = vmul.f32 0.7978846, %v1217_v54 }
 0x4c2   : > { %4206 = vtanh.f32 %v1263_v38  ;;  %v1352_v41 = vmul.f32 0.5, %v1320_v19  ;;  %3937 = vmatmul.mubr.msk.bf16.gmra.mrb[24].mxu1 %vm829_vm2, %v5410_v31  ;;  %1649 = vmatprep.mubr.bf16.mxu0 %v7588_v0  ;;  %v1241_v57 = vmul.f32 0.7978846, %v1209_v10  ;;  %v5427_v48 = vadd.f32 %v5160_v26, %v5083_v6 }
 0x4c3   : > { %4208 = vtanh.f32 %v1242_v32  ;;  %v1422_v55 = vpack.c.bf16 %v5418_v42, %v5414_v14  ;;  %v1360_v29 = vmul.f32 0.5, %v1328_v7  ;;  %1845 = vmatprep.mubr.bf16.mxu1 %v7588_v0  ;;  %v5434_v62 = vadd.f32 %v5158_v3, %v5009_v34  ;;  %v5451_v34 = vld [vmem:[%s7580_s4 + $0x18] sm:$0xff]  }
 0x4c4   : > { %4210 = vtanh.f32 %v1249_v5  ;;  %v5437_v60 = vmul.f32 %v1352_v41, %v5273_v33  ;;  %v1130_v6 = vmul.f32 %v5427_v48, %v5427_v48  ;;  %v5443_v22 = vadd.f32 %v5160_v26, %v5086_v53 }
 0x4c5   : > { %v4199_v35 = vpop.eup %4198  ;;  %4212 = vtanh.f32 %v1241_v57  ;;  %1702 = vmatprep.subr.bf16.mxu0 %v1422_v55  ;;  %v5446_v23 = vmul.f32 %v1360_v29, %v5277_v21  ;;  %v1138_v33 = vmul.f32 %v5434_v62, %v5434_v62  ;;  %v5457_v27 = vadd.f32 %v5158_v3, %v5012_v11 }
 0x4c6   : > { %v4201_v12 = vpop.eup %4200  ;;  %v1317_v25 = vadd.f32 1.0, %v4199_v35  ;;  %v1162_v26 = vmul.f32 %v1130_v6, %v5427_v48  ;;  %v1129_v21 = vmul.f32 %v5443_v22, %v5443_v22 }
 0x4c7   : > { %v1325_v53 = vadd.f32 1.0, %v4201_v12  ;;  %v1424_v54 = vpack.c.bf16 %v5446_v23, %v5437_v60  ;;  %v1170_v15 = vmul.f32 %v1138_v33, %v5434_v62  ;;  %v1137_v38 = vmul.f32 %v5457_v27, %v5457_v27 }
 0x4c8   : > { %v1349_v16 = vmul.f32 0.5, %v1317_v25  ;;  %v1194_v19 = vmul.f32 0.044715, %v1162_v26  ;;  %v1161_v11 = vmul.f32 %v1129_v21, %v5443_v22 }
 0x4c9   : > { %v1357_v13 = vmul.f32 0.5, %v1325_v53  ;;  %1815 = vmatprep.subr.bf16.mxu1 %v1424_v54  ;;  %3933 = vmatmul.mubr.msk.bf16.gmra.mrb[32].mxu0 %vm829_vm2, %v5451_v34  ;;  %v1202_v10 = vmul.f32 0.044715, %v1170_v15  ;;  %v1169_v7 = vmul.f32 %v1137_v38, %v5457_v27  ;;  %v5485_v15 = vld [vmem:[%s7580_s4 + $0x20] sm:$0xff]  }
 0x4ca   : > { %v4203_v3 = vpop.eup %4202  ;;  %v5469_v32 = vmul.f32 %v1349_v16, %v5297_v30  ;;  %1659 = vmatprep.mubr.bf16.mxu0 %v7588_v0  ;;  %v1226_v55 = vadd.f32 %v1194_v19, %v5427_v48  ;;  %v1193_v29 = vmul.f32 0.044715, %v1161_v11 }
 0x4cb   : > { %v4205_v5 = vpop.eup %4204  ;;  %v5475_v41 = vmul.f32 %v1357_v13, %v5316_v43  ;;  %v1314_v57 = vadd.f32 1.0, %v4203_v3  ;;  %v1234_v30 = vadd.f32 %v1202_v10, %v5434_v62  ;;  %v1201_v12 = vmul.f32 0.044715, %v1169_v7 }
 0x4cc   : > { %v4207_v35 = vpop.eup %4206  ;;  %v1319_v6 = vadd.f32 1.0, %v4205_v5  ;;  %v1258_v21 = vmul.f32 0.7978846, %v1226_v55  ;;  %v1225_v13 = vadd.f32 %v1193_v29, %v5443_v22 }
 0x4cd   : > { %v4209_v25 = vpop.eup %4208  ;;  %v1421_v33 = vpack.c.bf16 %v5475_v41, %v5469_v32  ;;  %v1327_v53 = vadd.f32 1.0, %v4207_v35  ;;  %v1346_v26 = vmul.f32 0.5, %v1314_v57  ;;  %v1266_v38 = vmul.f32 0.7978846, %v1234_v30 }
 0x4ce   : > { %v4211_v43 = vpop.eup %4210  ;;  %v1351_v54 = vmul.f32 0.5, %v1319_v6  ;;  %v1306_v16 = vadd.f32 1.0, %v4209_v25  ;;  %4214 = vtanh.f32 %v1258_v21  ;;  %v1233_v35 = vadd.f32 %v1201_v12, %v5457_v27 }
 0x4cf   : > { %v4213_v19 = vpop.eup %4212  ;;  %1703 = vmatpush1.bf16.msra.mxu0 %v1421_v33  ;;  %v1359_v11 = vmul.f32 0.5, %v1327_v53  ;;  %v1313_v3 = vadd.f32 1.0, %v4211_v43  ;;  %4216 = vtanh.f32 %v1266_v38  ;;  %v1257_v6 = vmul.f32 0.7978846, %v1225_v13 }
 0x4d0   : > { %v5489_v10 = vmul.f32 %v1351_v54, %v5345_v18  ;;  %v1338_v7 = vmul.f32 0.5, %v1306_v16  ;;  %v1305_v5 = vadd.f32 1.0, %v4213_v19  ;;  %v5499_v30 = vmul.f32 %v1346_v26, %v5100_v56 }
 0x4d1   : > { %v5492_v57 = vmul.f32 %v1359_v11, %v5352_v52  ;;  %v1345_v55 = vmul.f32 0.5, %v1313_v3  ;;  %3934 = vmatmul.mubr.msk.bf16.gmra.mrb[36].mxu0 %vm829_vm2, %v5485_v15  ;;  %v1265_v52 = vmul.f32 0.7978846, %v1233_v35  ;;  %4218 = vtanh.f32 %v1257_v6 }
 0x4d2   : > { %v5496_v29 = vmul.f32 %v1338_v7, %v5364_v39  ;;  %7701 = vst [vmem:[#allocation18_spill] sm:$0xff] %v5499_v30  ;;  %v1337_v18 = vmul.f32 0.5, %v1305_v5  ;;  %1732 = vmatprep.mubr.bf16.mxu0 %v7588_v0  ;;  %v4037_v35 = vadd.f32 %v5475_v41, %v5282_v59  ;;  %v4041_v6 = vadd.f32 %v5418_v42, %v5263_v17 }
 0x4d3   : > { %v1423_v25 = vpack.c.bf16 %v5492_v57, %v5489_v10  ;;  %v5512_v56 = vmul.f32 %v1345_v55, %v5102_v58  ;;  %4220 = vtanh.f32 %v1265_v52 }
 0x4d4   : > { %7700 = vst [vmem:[#allocation17_spill] sm:$0xff] %v5496_v29  ;;  %v1418_v12 = vpack.c.bf16 %v5499_v30, %v5496_v29  ;;  %v5509_v39 = vmul.f32 %v1337_v18, %v5383_v4  ;;  %v4038_v52 = vadd.f32 %v4037_v35, %v5492_v57 }
 0x4d5   : > { %7703 = vst [vmem:[#allocation20_spill] sm:$0xff] %v5512_v56  ;;  %1816 = vmatpush1.bf16.msra.mxu1 %v1423_v25 }
 0x4d6   : > { %7702 = vst [vmem:[#allocation19_spill] sm:$0xff] %v5509_v39  ;;  %1926 = vmatprep.subr.bf16.mxu0 %v1418_v12  ;;  %v1417_v33 = vpack.c.bf16 %v5512_v56, %v5509_v39 }
 0x4d8   : > { %3946 = vmatmul.mubr.msk.bf16.vlgmr.msra.gmra.mrb[28].mxu1 %vm829_vm2, %v5304_v45  ;;  %v4215_v53 = vpop.eup %4214 }
 0x4d9   : > { %1855 = vmatprep.mubr.bf16.mxu1 %v7588_v0  ;;  %v4217_v26 = vpop.eup %4216  ;;  %3938 = vmatmul.mubr.msk.bf16.vlgmr.msra.gmra.mrb[40].mxu0 %vm829_vm2, %v5304_v45  ;;  %v1322_v4 = vadd.f32 1.0, %v4215_v53 }
 0x4da   : > { %1927 = vmatpush1.bf16.msra.mxu0 %v1417_v33  ;;  %v1330_v58 = vadd.f32 1.0, %v4217_v26  ;;  %1742 = vmatprep.mubr.bf16.mxu0 %v7588_v0 }
 0x4db   : > { %v1354_v21 = vmul.f32 0.5, %v1322_v4  ;;  %v4219_v43 = vpop.eup %4218 }
 0x4dc   : > { %v1362_v54 = vmul.f32 0.5, %v1330_v58  ;;  %v1321_v38 = vadd.f32 1.0, %v4219_v43 }
 0x4dd   : > { %v1386_v16 = vmul.f32 %v1354_v21, %v5427_v48  ;;  %v4221_v13 = vpop.eup %4220 }
 0x4de   : > { %v1394_v19 = vmul.f32 %v1362_v54, %v5434_v62  ;;  %v1329_v11 = vadd.f32 1.0, %v4221_v13  ;;  %v1353_v3 = vmul.f32 0.5, %v1321_v38 }
 0x4e0   : > { %3947 = vmatmul.mubr.msk.bf16.gmra.mrb[32].mxu1 %vm829_vm2, %v5357_v51  ;;  %v1426_v7 = vpack.c.bf16 %v1394_v19, %v1386_v16  ;;  %v1361_v5 = vmul.f32 0.5, %v1329_v11  ;;  %v1385_v55 = vmul.f32 %v1353_v3, %v5443_v22  ;;  %v4029_v22 = vadd.f32 %v5469_v32, %v5269_v61 }
 0x4e1   : > { %1865 = vmatprep.mubr.bf16.mxu1 %v7588_v0  ;;  %3939 = vmatmul.mubr.msk.bf16.gmra.mrb[44].mxu0 %vm829_vm2, %v5357_v51  ;;  %v4042_v61 = vadd.f32 %v4041_v6, %v5446_v23 }
 0x4e2   : > { %1928 = vmatprep.subr.bf16.mxu0 %v1426_v7  ;;  %1752 = vmatprep.mubr.bf16.mxu0 %v7588_v0  ;;  %v1393_v48 = vmul.f32 %v1361_v5, %v5457_v27  ;;  %v4033_v27 = vadd.f32 %v5414_v14, %v5258_v50  ;;  %v4030_v18 = vadd.f32 %v4029_v22, %v5489_v10 }
 0x4e3   : > { %v5579_v14 = vadd.f32 %v4042_v61, %v1394_v19 }
 0x4e4   : > { %v1425_v62 = vpack.c.bf16 %v1393_v48, %v1385_v55  ;;  %v4034_v25 = vadd.f32 %v4033_v27, %v5437_v60  ;;  %v5573_v50 = vadd.f32 %v4030_v18, %v1385_v55  ;;  %v5577_v17 = vadd.f32 %v4038_v52, %v1393_v48 }
 0x4e5   : > { %7707 = vst [vmem:[#allocation24_spill] sm:$0xff] %v5579_v14 }
 0x4e6   : > { %1929 = vmatpush1.bf16.msra.mxu0 %v1425_v62  ;;  %7704 = vst [vmem:[#allocation21_spill] sm:$0xff] %v5573_v50  ;;  %v5575_v59 = vadd.f32 %v4034_v25, %v1386_v16  ;;  %7706 = vst [vmem:[#allocation23_spill] sm:$0xff] %v5577_v17 }
 0x4e8   : > { %3948 = vmatmul.mubr.msk.bf16.gmra.mrb[36].mxu1 %vm829_vm2, %v5404_v24  ;;  %7705 = vst [vmem:[#allocation22_spill] sm:$0xff] %v5575_v59 }
 0x4e9   : > { %1875 = vmatprep.mubr.bf16.mxu1 %v7588_v0  ;;  %3940 = vmatmul.mubr.msk.bf16.gmra.mrb[48].mxu0 %vm829_vm2, %v5404_v24 }
 0x4ea   : > { %1762 = vmatprep.mubr.bf16.mxu0 %v7588_v0 }
 0x4f0   : > { %3949 = vmatmul.mubr.msk.bf16.gmra.mrb[40].mxu1 %vm829_vm2, %v5451_v34 }
 0x4f1   : > { %1885 = vmatprep.mubr.bf16.mxu1 %v7588_v0  ;;  %3941 = vmatmul.mubr.msk.bf16.gmra.mrb[52].mxu0 %vm829_vm2, %v5451_v34 }
 0x4f2   : > { %1772 = vmatprep.mubr.bf16.mxu0 %v7588_v0 }
 0x4f8   : > { %3950 = vmatmul.mubr.msk.bf16.gmra.mrb[44].mxu1 %vm829_vm2, %v5485_v15 }
 0x4f9   : > { %1895 = vmatprep.mubr.bf16.mxu1 %v7588_v0  ;;  %3942 = vmatmul.mubr.msk.bf16.gmra.mrb[56].mxu0 %vm829_vm2, %v5485_v15 }
 0x4fa   : > { %1782 = vmatprep.mubr.bf16.mxu0 %v7588_v0 }
 0x500   : > { %3951 = vmatmul.mubr.msk.bf16.gmra.mrb[48].mxu1 %vm829_vm2, %v5309_v63 }
 0x501   : > { %1905 = vmatprep.mubr.bf16.mxu1 %v7588_v0  ;;  %3943 = vmatmul.mubr.msk.bf16.gmra.mrb[60].mxu0 %vm829_vm2, %v5309_v63 }
 0x502   : > { %1792 = vmatprep.mubr.bf16.mxu0 %v7588_v0 }
 0x508   : > { %3952 = vmatmul.mubr.msk.bf16.gmra.mrb[52].mxu1 %vm829_vm2, %v5369_v28 }
 0x509   : > { %1915 = vmatprep.mubr.bf16.mxu1 %v7588_v0  ;;  %3944 = vmatmul.mubr.msk.bf16.gmra.mrb[64].mxu0 %vm829_vm2, %v5369_v28 }
 0x50a   : > { %1802 = vmatprep.mubr.bf16.mxu0 %v7588_v0 }
 0x510   : > { %3953 = vmatmul.mubr.msk.bf16.gmra.mrb[56].mxu1 %vm829_vm2, %v5410_v31 }
 0x511   : > { %3303 = vmatprep.mubr.bf16.mxu1 %v7588_v0  ;;  %3945 = vmatmul.mubr.msk.bf16.gmra.mrb[68].mxu0 %vm829_vm2, %v5410_v31 }
 0x512   : > { %1958 = vmatprep.mubr.bf16.mxu0 %v7588_v0 }
 0x519   : > { %3954 = vmatmul.mubr.msk.bf16.vlgmr.msra.gmra.mrb[72].mxu0 %vm829_vm2, %v5304_v45  ;;  %v5612_v45 = vpop.permute.xlu1 %1450 }
 0x51a   : > { %1968 = vmatprep.mubr.bf16.mxu0 %v7588_v0  ;;  %7708 = vst [vmem:[#allocation25_spill] sm:$0xff] %v5612_v45 }
 0x521   : > { %3955 = vmatmul.mubr.msk.bf16.gmra.mrb[76].mxu0 %vm829_vm2, %v5357_v51  ;;  %v5614_v51 = vpop.permute.xlu0 %1445 }
 0x522   : > { %1978 = vmatprep.mubr.bf16.mxu0 %v7588_v0  ;;  %7709 = vst [vmem:[#allocation26_spill] sm:$0xff] %v5614_v51 }
 0x525   : > { %v5618_v42 = vpop.permute.xlu0 %1455 }
 0x526   : > { %7711 = vst [vmem:[#allocation28_spill] sm:$0xff] %v5618_v42 }
 0x529   : > { %3956 = vmatmul.mubr.msk.bf16.gmra.mrb[80].mxu0 %vm829_vm2, %v5404_v24  ;;  %v5616_v24 = vpop.permute.xlu1 %1460  ;;  %v5622_v60 = vpop.permute.xlu0 %1465 }
 0x52a   : > { %1988 = vmatprep.mubr.bf16.mxu0 %v7588_v0  ;;  %7710 = vst [vmem:[#allocation27_spill] sm:$0xff] %v5616_v24  ;;  %7713 = vst [vmem:[#allocation30_spill] sm:$0xff] %v5622_v60 }
 0x52d   : > { %v5626_v23 = vpop.permute.xlu0 %1475 }
 0x52e   : > { %7715 = vst [vmem:[#allocation32_spill] sm:$0xff] %v5626_v23 }
 0x531   : > { %3957 = vmatmul.mubr.msk.bf16.gmra.mrb[84].mxu0 %vm829_vm2, %v5451_v34 }
 0x532   : > { %1998 = vmatprep.mubr.bf16.mxu0 %v7588_v0 }
 0x539   : > { %3958 = vmatmul.mubr.msk.bf16.gmra.mrb[88].mxu0 %vm829_vm2, %v5485_v15 }
 0x53a   : > { %2008 = vmatprep.mubr.bf16.mxu0 %v7588_v0 }
 0x541   : > { %3959 = vmatmul.mubr.msk.bf16.gmra.mrb[92].mxu0 %vm829_vm2, %v5309_v63  ;;  %v5620_v63 = vpop.permute.xlu1 %1470 }
 0x542   : > { %2018 = vmatprep.mubr.bf16.mxu0 %v7588_v0  ;;  %7712 = vst [vmem:[#allocation29_spill] sm:$0xff] %v5620_v63 }
 0x549   : > { %3960 = vmatmul.mubr.msk.bf16.gmra.mrb[96].mxu0 %vm829_vm2, %v5369_v28  ;;  %v5624_v28 = vpop.permute.xlu1 %1480 }
 0x54a   : > { %2028 = vmatprep.mubr.bf16.mxu0 %v7588_v0  ;;  %7714 = vst [vmem:[#allocation31_spill] sm:$0xff] %v5624_v28 }
 0x54d   : > { %v5628_v34 = vpop.permute.xlu1 %1490 }
 0x54e   : > { %7716 = vst [vmem:[#allocation33_spill] sm:$0xff] %v5628_v34 }
 0x551   : > { %3961 = vmatmul.mubr.msk.bf16.gmra.mrb[100].mxu0 %vm829_vm2, %v5410_v31  ;;  %v5630_v31 = vpop.permute.xlu0 %1485  ;;  %v5632_v32 = vpop.permute.xlu1 %1500 }
 0x552   : > { %3651 = vmatprep.mubr.bf16.mxu0 %v7588_v0  ;;  %7717 = vst [vmem:[#allocation34_spill] sm:$0xff] %v5630_v31  ;;  %7718 = vst [vmem:[#allocation35_spill] sm:$0xff] %v5632_v32 }
 0x555   : > { %v5634_v41 = vpop.permute.xlu0 %1495 }
 0x556   : > { %7719 = vst [vmem:[#allocation36_spill] sm:$0xff] %v5634_v41 }
 0x584   : > { %v1621_v15 = vpop.f32.mrb[20].mxu0  ;;  %v1671_v10 = vpop.f32.mrb[16].mxu1 }
 0x585   : > { %v5637_v57 = vadd.f32 %v1621_v15, %v5614_v51  ;;  %v5640_v12 = vadd.f32 %v1671_v10, %v5634_v41  ;;  %v1623_v33 = vpop.f32.mrb[21].mxu0  ;;  %v1673_v53 = vpop.f32.mrb[17].mxu1 }
 0x586   : > { %v5643_v26 = vadd.f32 %v1623_v33, %v5614_v51  ;;  %v5646_v4 = vadd.f32 %v1673_v53, %v5634_v41  ;;  %v1625_v58 = vpop.f32.mrb[22].mxu0  ;;  %v1675_v21 = vpop.f32.mrb[18].mxu1 }
 0x587   : > { %v2039_v43 = vmul.f32 %v5637_v57, %v5637_v57  ;;  %v2119_v54 = vmul.f32 %v5640_v12, %v5640_v12  ;;  %v5653_v16 = vadd.f32 %v1625_v58, %v5612_v45  ;;  %v5656_v38 = vadd.f32 %v1675_v21, %v5632_v32  ;;  %v1627_v13 = vpop.f32.mrb[23].mxu0  ;;  %v1677_v19 = vpop.f32.mrb[19].mxu1 }
 0x588   : > { %7720 = vst [vmem:[#allocation37_spill] sm:$0xff] %v5646_v4  ;;  %v2040_v11 = vmul.f32 %v5643_v26, %v5643_v26  ;;  %v2120_v3 = vmul.f32 %v5646_v4, %v5646_v4  ;;  %v5663_v7 = vadd.f32 %v1627_v13, %v5612_v45  ;;  %v5666_v5 = vadd.f32 %v1677_v19, %v5632_v32 }
 0x589   : > { %v2167_v55 = vmul.f32 %v2039_v43, %v5637_v57  ;;  %v2247_v48 = vmul.f32 %v2119_v54, %v5640_v12  ;;  %v2047_v62 = vmul.f32 %v5653_v16, %v5653_v16  ;;  %v2127_v22 = vmul.f32 %v5656_v38, %v5656_v38 }
 0x58a   : > { %7721 = vst [vmem:[#allocation38_spill] sm:$0xff] %v5666_v5  ;;  %v2168_v27 = vmul.f32 %v2040_v11, %v5643_v26  ;;  %v2248_v35 = vmul.f32 %v2120_v3, %v5646_v4  ;;  %v2048_v6 = vmul.f32 %v5663_v7, %v5663_v7  ;;  %v2128_v18 = vmul.f32 %v5666_v5, %v5666_v5 }
 0x58b   : > { %v2295_v25 = vmul.f32 0.044715, %v2167_v55  ;;  %v2375_v52 = vmul.f32 0.044715, %v2247_v48  ;;  %v2175_v61 = vmul.f32 %v2047_v62, %v5653_v16  ;;  %v2255_v15 = vmul.f32 %v2127_v22, %v5656_v38 }
 0x58c   : > { %v2296_v10 = vmul.f32 0.044715, %v2168_v27  ;;  %v2376_v33 = vmul.f32 0.044715, %v2248_v35  ;;  %v2176_v53 = vmul.f32 %v2048_v6, %v5663_v7  ;;  %v2256_v58 = vmul.f32 %v2128_v18, %v5666_v5  ;;  %v1631_v21 = vpop.f32.mrb[24].mxu0 }
 0x58d   : > { %v2423_v43 = vadd.f32 %v2295_v25, %v5637_v57  ;;  %v2503_v54 = vadd.f32 %v2375_v52, %v5640_v12  ;;  %v2303_v13 = vmul.f32 0.044715, %v2175_v61  ;;  %v2383_v19 = vmul.f32 0.044715, %v2255_v15  ;;  %v1681_v11 = vpop.f32.mrb[20].mxu1  ;;  %v1633_v3 = vpop.f32.mrb[25].mxu0 }
 0x58e   : > { %v2424_v55 = vadd.f32 %v2296_v10, %v5643_v26  ;;  %v2504_v48 = vadd.f32 %v2376_v33, %v5646_v4  ;;  %v2304_v62 = vmul.f32 0.044715, %v2176_v53  ;;  %v2384_v22 = vmul.f32 0.044715, %v2256_v58  ;;  %v1683_v27 = vpop.f32.mrb[21].mxu1  ;;  %v1635_v35 = vpop.f32.mrb[26].mxu0 }
 0x58f   : > { %v2551_v6 = vmul.f32 0.7978846, %v2423_v43  ;;  %v2631_v0 = vmul.f32 0.7978846, %v2503_v54  ;;  %v2431_v18 = vadd.f32 %v2303_v13, %v5653_v16  ;;  %v2511_v25 = vadd.f32 %v2383_v19, %v5656_v38  ;;  %v1685_v14 = vpop.f32.mrb[22].mxu1  ;;  %v1637_v52 = vpop.f32.mrb[27].mxu0 }
 0x590   : > { %v2552_v61 = vmul.f32 0.7978846, %v2424_v55  ;;  %v2632_v15 = vmul.f32 0.7978846, %v2504_v48  ;;  %v2432_v17 = vadd.f32 %v2304_v62, %v5663_v7  ;;  %v2512_v10 = vadd.f32 %v2384_v22, %v5666_v5  ;;  %v1687_v59 = vpop.f32.mrb[23].mxu1  ;;  %v5692_v33 = vpop.permute.xlu0 %1505 }
 0x591   : > { %7722 = vst [vmem:[#allocation39_spill] sm:$0xff] %v5692_v33  ;;  %4222 = vtanh.f32 %v2551_v6  ;;  %v2559_v53 = vmul.f32 0.7978846, %v2431_v18  ;;  %v2639_v58 = vmul.f32 0.7978846, %v2511_v25  ;;  %v5695_v43 = vadd.f32 %v1631_v21, %v5618_v42  ;;  %v5700_v55 = vpop.permute.xlu1 %1510 }
 0x592   : > { %4224 = vtanh.f32 %v2631_v0  ;;  %v2560_v54 = vmul.f32 0.7978846, %v2432_v17  ;;  %v2640_v13 = vmul.f32 0.7978846, %v2512_v10  ;;  %v5698_v19 = vadd.f32 %v1681_v11, %v5692_v33  ;;  %7723 = vst [vmem:[#allocation40_spill] sm:$0xff] %v5700_v55 }
 0x593   : > { %4226 = vtanh.f32 %v2552_v61  ;;  %v2055_v48 = vmul.f32 %v5695_v43, %v5695_v43  ;;  %v5705_v62 = vadd.f32 %v1633_v3, %v5618_v42  ;;  %v5708_v22 = vadd.f32 %v1683_v27, %v5692_v33 }
 0x594   : > { %4228 = vtanh.f32 %v2632_v15  ;;  %v2135_v0 = vmul.f32 %v5698_v19, %v5698_v19  ;;  %v5713_v17 = vadd.f32 %v1635_v35, %v5616_v24  ;;  %v5716_v21 = vadd.f32 %v1685_v14, %v5700_v55  ;;  %v5718_v11 = vpop.f32.mrb[28].mxu0 }
 0x595   : > { %7724 = vst [vmem:[#allocation41_spill] sm:$0xff] %v5705_v62  ;;  %7725 = vst [vmem:[#allocation42_spill] sm:$0xff] %v5708_v22  ;;  %4230 = vtanh.f32 %v2559_v53  ;;  %v2183_v6 = vmul.f32 %v2055_v48, %v5695_v43  ;;  %v2056_v3 = vmul.f32 %v5705_v62, %v5705_v62  ;;  %v2136_v27 = vmul.f32 %v5708_v22, %v5708_v22  ;;  %v5725_v18 = vpop.f32.mrb[24].mxu1  ;;  %v5727_v25 = vpop.f32.mrb[29].mxu0 }
 0x596   : > { %4232 = vtanh.f32 %v2639_v58  ;;  %v2263_v35 = vmul.f32 %v2135_v0, %v5698_v19  ;;  %v2063_v14 = vmul.f32 %v5713_v17, %v5713_v17  ;;  %v2143_v61 = vmul.f32 %v5716_v21, %v5716_v21  ;;  %v5734_v15 = vpop.f32.mrb[25].mxu1  ;;  %v5736_v10 = vpop.f32.mrb[30].mxu0 }
 0x597   : > { %4234 = vtanh.f32 %v2560_v54  ;;  %v2311_v53 = vmul.f32 0.044715, %v2183_v6  ;;  %v2184_v48 = vmul.f32 %v2056_v3, %v5705_v62  ;;  %v2264_v50 = vmul.f32 %v2136_v27, %v5708_v22  ;;  %v5740_v30 = vpop.f32.mrb[26].mxu1  ;;  %v5742_v58 = vpop.f32.mrb[31].mxu0 }
 0x598   : > { %4236 = vtanh.f32 %v2640_v13  ;;  %v2391_v0 = vmul.f32 0.044715, %v2263_v35  ;;  %v2191_v56 = vmul.f32 %v2063_v14, %v5713_v17  ;;  %v2271_v29 = vmul.f32 %v2143_v61, %v5716_v21  ;;  %v5746_v39 = vpop.f32.mrb[27].mxu1  ;;  %v5838_v33 = vpop.permute.xlu1 %1520 }
 0x599   : > { %v2439_v36 = vadd.f32 %v2311_v53, %v5695_v43  ;;  %v2312_v54 = vmul.f32 0.044715, %v2184_v48  ;;  %v2392_v6 = vmul.f32 0.044715, %v2264_v50  ;;  %v5750_v3 = vadd.f32 %v1637_v52, %v5616_v24  ;;  %7735 = vst [vmem:[#allocation52_spill] sm:$0xff] %v5838_v33 }
 0x59a   : > { %v2519_v27 = vadd.f32 %v2391_v0, %v5698_v19  ;;  %v2319_v46 = vmul.f32 0.044715, %v2191_v56  ;;  %v2399_v8 = vmul.f32 0.044715, %v2271_v29  ;;  %v5754_v13 = vadd.f32 %v1687_v59, %v5700_v55 }
 0x59b   : > { %7726 = vst [vmem:[#allocation43_spill] sm:$0xff] %v5750_v3  ;;  %v4223_v35 = vpop.eup %4222  ;;  %v2567_v14 = vmul.f32 0.7978846, %v2439_v36  ;;  %v2440_v61 = vadd.f32 %v2312_v54, %v5705_v62  ;;  %v2520_v1 = vadd.f32 %v2392_v6, %v5708_v22  ;;  %v2064_v53 = vmul.f32 %v5750_v3, %v5750_v3 }
 0x59c   : > { %7727 = vst [vmem:[#allocation44_spill] sm:$0xff] %v5754_v13  ;;  %v4225_v50 = vpop.eup %4224  ;;  %v2807_v48 = vadd.f32 1.0, %v4223_v35  ;;  %v2647_v52 = vmul.f32 0.7978846, %v2519_v27  ;;  %v2447_v2 = vadd.f32 %v2319_v46, %v5713_v17  ;;  %v2527_v56 = vadd.f32 %v2399_v8, %v5716_v21  ;;  %v5762_v29 = vpop.f32.mrb[32].mxu0 }
 0x59d   : > { %v5764_v59 = vpop.eup %4226  ;;  %v2887_v0 = vadd.f32 1.0, %v4225_v50  ;;  %4238 = vtanh.f32 %v2567_v14  ;;  %v2568_v36 = vmul.f32 0.7978846, %v2440_v61  ;;  %v2648_v54 = vmul.f32 0.7978846, %v2520_v1  ;;  %v5766_v37 = vpop.f32.mrb[33].mxu0 }
 0x59e   : > { %v5768_v6 = vpop.eup %4228  ;;  %v2935_v9 = vmul.f32 0.5, %v2807_v48  ;;  %4240 = vtanh.f32 %v2647_v52  ;;  %v2575_v35 = vmul.f32 0.7978846, %v2447_v2  ;;  %v2655_v27 = vmul.f32 0.7978846, %v2527_v56  ;;  %v5770_v44 = vpop.f32.mrb[34].mxu0 }
 0x59f   : > { %7728 = vst [vmem:[#allocation45_spill] sm:$0xff] %v5768_v6  ;;  %v4231_v46 = vpop.eup %4230  ;;  %4242 = vtanh.f32 %v2568_v36  ;;  %v2192_v8 = vmul.f32 %v2064_v53, %v5750_v3  ;;  %v2144_v50 = vmul.f32 %v5754_v13, %v5754_v13  ;;  %v5775_v14 = vpop.f32.mrb[35].mxu0  ;;  %v3015_v61 = vmul.f32 0.5, %v2887_v0 }
 0x5a0   : > { %v4233_v1 = vpop.eup %4232  ;;  %v2815_v47 = vadd.f32 1.0, %v4231_v46  ;;  %4244 = vtanh.f32 %v2648_v54  ;;  %v5779_v48 = vadd.f32 %v5718_v11, %v5622_v60  ;;  %v5785_v53 = vpop.permute.xlu0 %1515  ;;  %v5788_v49 = vmul.f32 %v2935_v9, %v5637_v57 }
 0x5a1   : > { %v5781_v2 = vpop.eup %4234  ;;  %v2895_v52 = vadd.f32 1.0, %v4233_v1  ;;  %4246 = vtanh.f32 %v2575_v35  ;;  %v2320_v56 = vmul.f32 0.044715, %v2192_v8  ;;  %7730 = vst [vmem:[#allocation47_spill] sm:$0xff] %v5785_v53  ;;  %v2272_v0 = vmul.f32 %v2144_v50, %v5754_v13 }
 0x5a2   : > { %v5783_v36 = vpop.eup %4236  ;;  %4248 = vtanh.f32 %v2655_v27  ;;  %v2071_v54 = vmul.f32 %v5779_v48, %v5779_v48  ;;  %v2943_v11 = vmul.f32 0.5, %v2815_v47  ;;  %v5796_v35 = vadd.f32 %v5725_v18, %v5785_v53 }
 0x5a3   : > { %7729 = vst [vmem:[#allocation46_spill] sm:$0xff] %v5783_v36  ;;  %v2448_v46 = vadd.f32 %v2320_v56, %v5750_v3  ;;  %v5800_v8 = vadd.f32 %v5727_v25, %v5622_v60  ;;  %v5803_v9 = vmul.f32 %v3015_v61, %v5640_v12  ;;  %v2400_v57 = vmul.f32 0.044715, %v2272_v0 }
 0x5a4   : > { %v2199_v27 = vmul.f32 %v2071_v54, %v5779_v48  ;;  %v5808_v50 = vadd.f32 %v5734_v15, %v5785_v53  ;;  %v5810_v47 = vpop.f32.mrb[36].mxu0  ;;  %v3023_v1 = vmul.f32 0.5, %v2895_v52  ;;  %v2151_v18 = vmul.f32 %v5796_v35, %v5796_v35 }
 0x5a5   : > { %7731 = vst [vmem:[#allocation48_spill] sm:$0xff] %v5800_v8  ;;  %7732 = vst [vmem:[#allocation49_spill] sm:$0xff] %v5803_v9  ;;  %v2576_v56 = vmul.f32 0.7978846, %v2448_v46  ;;  %v2072_v25 = vmul.f32 %v5800_v8, %v5800_v8  ;;  %v5816_v20 = vpop.f32.mrb[37].mxu0  ;;  %v2528_v12 = vadd.f32 %v2400_v57, %v5754_v13  ;;  %v5823_v15 = vadd.f32 %v5736_v10, %v5620_v63 }
 0x5a6   : > { %7733 = vst [vmem:[#allocation50_spill] sm:$0xff] %v5808_v50  ;;  %v2327_v61 = vmul.f32 0.044715, %v2199_v27  ;;  %v2152_v0 = vmul.f32 %v5808_v50, %v5808_v50  ;;  %v5825_v52 = vpop.f32.mrb[38].mxu0  ;;  %v5828_v46 = vmul.f32 %v2943_v11, %v5653_v16  ;;  %v2279_v40 = vmul.f32 %v2151_v18, %v5796_v35 }
 0x5a7   : > { %v4239_v54 = vpop.eup %4238  ;;  %4250 = vtanh.f32 %v2576_v56  ;;  %v2200_v53 = vmul.f32 %v2072_v25, %v5800_v8  ;;  %v5832_v57 = vpop.f32.mrb[39].mxu0  ;;  %v2656_v22 = vmul.f32 0.7978846, %v2528_v12  ;;  %v2079_v18 = vmul.f32 %v5823_v15, %v5823_v15 }
 0x5a8   : > { %v4241_v27 = vpop.eup %4240  ;;  %v2823_v13 = vadd.f32 1.0, %v4239_v54  ;;  %v2455_v55 = vadd.f32 %v2327_v61, %v5779_v48  ;;  %v2280_v10 = vmul.f32 %v2152_v0, %v5808_v50  ;;  %v2407_v11 = vmul.f32 0.044715, %v2279_v40 }
 0x5a9   : > { %v5836_v9 = vpop.eup %4242  ;;  %v2903_v16 = vadd.f32 1.0, %v4241_v27  ;;  %v2328_v56 = vmul.f32 0.044715, %v2200_v53  ;;  %v5846_v12 = vadd.f32 %v5740_v30, %v5838_v33  ;;  %v2207_v53 = vmul.f32 %v2079_v18, %v5823_v15 }
 0x5aa   : > { %7734 = vst [vmem:[#allocation51_spill] sm:$0xff] %v5836_v9  ;;  %v5842_v25 = vpop.eup %4244  ;;  %v2951_v5 = vmul.f32 0.5, %v2823_v13  ;;  %v2583_v4 = vmul.f32 0.7978846, %v2455_v55  ;;  %v2408_v54 = vmul.f32 0.044715, %v2280_v10  ;;  %v2535_v6 = vadd.f32 %v2407_v11, %v5796_v35 }
 0x5ab   : > { %7736 = vst [vmem:[#allocation53_spill] sm:$0xff] %v5842_v25  ;;  %v1847_v61 = vpop.f32.mrb[28].mxu1  ;;  %v4247_v0 = vpop.eup %4246  ;;  %v3031_v36 = vmul.f32 0.5, %v2903_v16  ;;  %v2456_v40 = vadd.f32 %v2328_v56, %v5800_v8  ;;  %v5852_v25 = vmul.f32 %v3023_v1, %v5656_v38  ;;  %v2335_v38 = vmul.f32 0.044715, %v2207_v53 }
 0x5ac   : > { %v1849_v27 = vpop.f32.mrb[29].mxu1  ;;  %v4249_v32 = vpop.eup %4248  ;;  %v2831_v55 = vadd.f32 1.0, %v4247_v0  ;;  %4252 = vtanh.f32 %v2583_v4  ;;  %v2536_v13 = vadd.f32 %v2408_v54, %v5808_v50  ;;  %v2663_v11 = vmul.f32 0.7978846, %v2535_v6 }
 0x5ad   : > { %7737 = vst [vmem:[#allocation54_spill] sm:$0xff] %v5852_v25  ;;  %v5855_v30 = vpop.f32.mrb[30].mxu1  ;;  %v5857_v10 = vpop.f32.mrb[40].mxu0  ;;  %v2911_v16 = vadd.f32 1.0, %v4249_v32  ;;  %4254 = vtanh.f32 %v2656_v22  ;;  %v2584_v41 = vmul.f32 0.7978846, %v2456_v40  ;;  %v5862_v18 = vmul.f32 %v2951_v5, %v5695_v43 }
 0x5ae   : > { %v5859_v56 = vpop.f32.mrb[31].mxu1  ;;  %v2959_v8 = vmul.f32 0.5, %v2831_v55  ;;  %v2159_v4 = vmul.f32 %v5846_v12, %v5846_v12  ;;  %v5866_v1 = vpop.f32.mrb[41].mxu0  ;;  %v5869_v54 = vmul.f32 %v3031_v36, %v5698_v19  ;;  %4256 = vtanh.f32 %v2663_v11 }
 0x5af   : > { %7738 = vst [vmem:[#allocation55_spill] sm:$0xff] %v5862_v18  ;;  %v5873_v32 = vadd.f32 %v5742_v58, %v5620_v63  ;;  %v5877_v22 = vadd.f32 %v5746_v39, %v5838_v33  ;;  %v5879_v5 = vpop.f32.mrb[42].mxu0  ;;  %v5881_v43 = vmul.f32 0.5, %v2911_v16  ;;  %v2664_v6 = vmul.f32 0.7978846, %v2536_v13 }
 0x5b0   : > { %7739 = vst [vmem:[#allocation56_spill] sm:$0xff] %v5869_v54  ;;  %v2463_v0 = vadd.f32 %v2335_v38, %v5823_v15  ;;  %v2287_v40 = vmul.f32 %v2159_v4, %v5846_v12  ;;  %v5885_v19 = vpop.f32.mrb[43].mxu0  ;;  %v5890_v58 = vmul.f32 %v2959_v8, %v5713_v17  ;;  %4258 = vtanh.f32 %v2584_v41 }
 0x5b1   : > { %7740 = vst [vmem:[#allocation57_spill] sm:$0xff] %v5873_v32  ;;  %7741 = vst [vmem:[#allocation58_spill] sm:$0xff] %v5877_v22  ;;  %v5887_v36 = vpop.eup %4250  ;;  %v2080_v39 = vmul.f32 %v5873_v32, %v5873_v32  ;;  %v2160_v53 = vmul.f32 %v5877_v22, %v5877_v22  ;;  %v5898_v16 = vadd.f32 %v5762_v29, %v5626_v23 }
 0x5b2   : > { %7742 = vst [vmem:[#allocation59_spill] sm:$0xff] %v5887_v36  ;;  %7743 = vst [vmem:[#allocation60_spill] sm:$0xff] %v5890_v58  ;;  %v2591_v55 = vmul.f32 0.7978846, %v2463_v0  ;;  %v2415_v13 = vmul.f32 0.044715, %v2287_v40  ;;  %v5901_v11 = vadd.f32 %v1847_v61, %v5614_v51  ;;  %v5909_v8 = vadd.f32 %v5766_v37, %v5626_v23 }
 0x5b3   : > { %v5903_v38 = vpop.f32.mrb[32].mxu1  ;;  %v2208_v17 = vmul.f32 %v2080_v39, %v5873_v32  ;;  %v2288_v41 = vmul.f32 %v2160_v53, %v5877_v22  ;;  %v5912_v4 = vadd.f32 %v1849_v27, %v5614_v51  ;;  %v2087_v61 = vmul.f32 %v5898_v16, %v5898_v16 }
 0x5b4   : > { %7744 = vst [vmem:[#allocation61_spill] sm:$0xff] %v5909_v8  ;;  %v5914_v0 = vpop.f32.mrb[33].mxu1  ;;  %4260 = vtanh.f32 %v2591_v55  ;;  %v2543_v29 = vadd.f32 %v2415_v13, %v5846_v12  ;;  %v2043_v40 = vmul.f32 %v5901_v11, %v5901_v11  ;;  %v5923_v53 = vpop.f32.mrb[44].mxu0  ;;  %v2088_v27 = vmul.f32 %v5909_v8, %v5909_v8 }
 0x5b5   : > { %7745 = vst [vmem:[#allocation62_spill] sm:$0xff] %v5912_v4  ;;  %v5921_v39 = vpop.f32.mrb[34].mxu1  ;;  %7746 = vst [vmem:[#allocation63_spill] sm:$0xff] %v5923_v53  ;;  %v2336_v37 = vmul.f32 0.044715, %v2208_v17  ;;  %v2044_v55 = vmul.f32 %v5912_v4, %v5912_v4  ;;  %v5931_v13 = vpop.f32.mrb[45].mxu0  ;;  %v2215_v3 = vmul.f32 %v2087_v61, %v5898_v16  ;;  %v5937_v17 = vadd.f32 %v5770_v44, %v5624_v28 }
 0x5b6   : > { %v2416_v33 = vmul.f32 0.044715, %v2288_v41  ;;  %v5929_v50 = vpop.f32.mrb[35].mxu1  ;;  %7747 = vst [vmem:[#allocation64_spill] sm:$0xff] %v5931_v13  ;;  %v4253_v54 = vpop.eup %4252  ;;  %v2671_v25 = vmul.f32 0.7978846, %v2543_v29  ;;  %v2171_v62 = vmul.f32 %v2043_v40, %v5901_v11  ;;  %v2216_v13 = vmul.f32 %v2088_v27, %v5909_v8 }
 0x5b7   : > { %v5939_v41 = vpop.f32.mrb[46].mxu0  ;;  %v5941_v23 = vpop.eup %4254  ;;  %v2839_v53 = vadd.f32 1.0, %v4253_v54  ;;  %v2464_v58 = vadd.f32 %v2336_v37, %v5873_v32  ;;  %v2343_v61 = vmul.f32 0.044715, %v2215_v3  ;;  %v2172_v36 = vmul.f32 %v2044_v55, %v5912_v4 }
 0x5b8   : > { %7748 = vst [vmem:[#allocation65_spill] sm:$0xff] %v5939_v41  ;;  %7749 = vst [vmem:[#allocation66_spill] sm:$0xff] %v5941_v23  ;;  %v2544_v18 = vadd.f32 %v2416_v33, %v5877_v22  ;;  %v5946_v29 = vpop.f32.mrb[47].mxu0  ;;  %4262 = vtanh.f32 %v2671_v25  ;;  %v2299_v40 = vmul.f32 0.044715, %v2171_v62  ;;  %v4257_v44 = vpop.eup %4256  ;;  %v2095_v54 = vmul.f32 %v5937_v17, %v5937_v17 }
 0x5b9   : > { %4264 = vtanh.f32 %v2664_v6  ;;  %v2592_v9 = vmul.f32 0.7978846, %v2464_v58  ;;  %v2919_v23 = vadd.f32 1.0, %v4257_v44  ;;  %v2471_v37 = vadd.f32 %v2343_v61, %v5898_v16 }
 0x5ba   : > { %v2672_v41 = vmul.f32 0.7978846, %v2544_v18  ;;  %v2427_v33 = vadd.f32 %v2299_v40, %v5901_v11  ;;  %v2344_v27 = vmul.f32 0.044715, %v2216_v13  ;;  %v5955_v25 = vpop.eup %4258  ;;  %v2967_v62 = vmul.f32 0.5, %v2839_v53 }
 0x5bb   : > { %v5953_v22 = vpop.f32.mrb[36].mxu1  ;;  %4266 = vtanh.f32 %v2592_v9  ;;  %v2300_v3 = vmul.f32 0.044715, %v2172_v36  ;;  %v2223_v6 = vmul.f32 %v2095_v54, %v5937_v17  ;;  %v3047_v18 = vmul.f32 0.5, %v2919_v23 }
 0x5bc   : > { %v5958_v58 = vpop.f32.mrb[37].mxu1  ;;  %4268 = vtanh.f32 %v2672_v41  ;;  %v2599_v55 = vmul.f32 0.7978846, %v2471_v37  ;;  %v2555_v44 = vmul.f32 0.7978846, %v2427_v33  ;;  %v2472_v61 = vadd.f32 %v2344_v27, %v5909_v8  ;;  %v5970_v36 = vpop.f32.mrb[48].mxu0 }
 0x5bd   : > { %v5960_v32 = vpop.f32.mrb[38].mxu1  ;;  %v2428_v13 = vadd.f32 %v2300_v3, %v5912_v4  ;;  %v2351_v40 = vmul.f32 0.044715, %v2223_v6  ;;  %v5966_v53 = vadd.f32 %v5855_v30, %v5612_v45  ;;  %7750 = vst [vmem:[#allocation67_spill] sm:$0xff] %v5970_v36  ;;  %v5974_v23 = vmul.f32 %v5881_v43, %v5716_v21  ;;  %v5984_v30 = vpop.f32.mrb[49].mxu0 }
 0x5be   : > { %v5968_v9 = vpop.f32.mrb[39].mxu1  ;;  %v4261_v54 = vpop.eup %4260  ;;  %4270 = vtanh.f32 %v2599_v55  ;;  %v5978_v41 = vadd.f32 %v5775_v14, %v5624_v28  ;;  %v5982_v37 = vadd.f32 %v5859_v56, %v5612_v45  ;;  %7754 = vst [vmem:[#allocation71_spill] sm:$0xff] %v5984_v30  ;;  %v5987_v33 = vmul.f32 %v2967_v62, %v5779_v48 }
 0x5bf   : > { %7751 = vst [vmem:[#allocation68_spill] sm:$0xff] %v5974_v23  ;;  %v2847_v27 = vadd.f32 1.0, %v4261_v54  ;;  %4272 = vtanh.f32 %v2555_v44  ;;  %v2600_v3 = vmul.f32 0.7978846, %v2472_v61  ;;  %v5989_v6 = vpop.f32.mrb[50].mxu0  ;;  %v2479_v21 = vadd.f32 %v2351_v40, %v5937_v17 }
 0x5c0   : > { %7752 = vst [vmem:[#allocation69_spill] sm:$0xff] %v5978_v41  ;;  %7753 = vst [vmem:[#allocation70_spill] sm:$0xff] %v5982_v37  ;;  %v2051_v14 = vmul.f32 %v5966_v53, %v5966_v53  ;;  %v2096_v43 = vmul.f32 %v5978_v41, %v5978_v41  ;;  %v2052_v56 = vmul.f32 %v5982_v37, %v5982_v37  ;;  %v5998_v55 = vpop.f32.mrb[51].mxu0  ;;  %v2556_v62 = vmul.f32 0.7978846, %v2428_v13 }
 0x5c1   : > { %7755 = vst [vmem:[#allocation72_spill] sm:$0xff] %v5987_v33  ;;  %7756 = vst [vmem:[#allocation73_spill] sm:$0xff] %v5989_v6  ;;  %v6001_v48 = vmul.f32 %v3047_v18, %v5796_v35  ;;  %v6005_v44 = vadd.f32 %v5810_v47, %v5630_v31  ;;  %v6009_v61 = vadd.f32 %v5903_v38, %v5618_v42  ;;  %v2975_v54 = vmul.f32 0.5, %v2847_v27 }
 0x5c2   : > { %7757 = vst [vmem:[#allocation74_spill] sm:$0xff] %v5998_v55  ;;  %v4263_v40 = vpop.eup %4262  ;;  %v2607_v4 = vmul.f32 0.7978846, %v2479_v21  ;;  %v2179_v23 = vmul.f32 %v2051_v14, %v5966_v53  ;;  %v2224_v8 = vmul.f32 %v2096_v43, %v5978_v41  ;;  %4274 = vtanh.f32 %v2600_v3 }
 0x5c3   : > { %7758 = vst [vmem:[#allocation75_spill] sm:$0xff] %v6001_v48  ;;  %v6013_v55 = vpop.f32.mrb[40].mxu1  ;;  %v6015_v35 = vpop.eup %4264  ;;  %v2927_v18 = vadd.f32 1.0, %v4263_v40  ;;  %v2180_v47 = vmul.f32 %v2052_v56, %v5982_v37  ;;  %v2103_v13 = vmul.f32 %v6005_v44, %v6005_v44  ;;  %v2059_v14 = vmul.f32 %v6009_v61, %v6009_v61 }
 0x5c4   : > { %7759 = vst [vmem:[#allocation76_spill] sm:$0xff] %v6015_v35  ;;  %v6020_v38 = vpop.f32.mrb[41].mxu1  ;;  %4276 = vtanh.f32 %v2607_v4  ;;  %v2307_v27 = vmul.f32 0.044715, %v2179_v23  ;;  %v2352_v21 = vmul.f32 0.044715, %v2224_v8  ;;  %v6033_v40 = vadd.f32 %v5816_v20, %v5630_v31 }
 0x5c5   : > { %v6024_v43 = vpop.f32.mrb[42].mxu1  ;;  %v6026_v48 = vpop.f32.mrb[52].mxu0  ;;  %4278 = vtanh.f32 %v2556_v62  ;;  %v2308_v3 = vmul.f32 0.044715, %v2180_v47  ;;  %v2231_v56 = vmul.f32 %v2103_v13, %v6005_v44  ;;  %v2187_v30 = vmul.f32 %v2059_v14, %v6009_v61 }
 0x5c6   : > { %7760 = vst [vmem:[#allocation77_spill] sm:$0xff] %v6026_v48  ;;  %v6028_v35 = vpop.eup %4266  ;;  %7762 = vst [vmem:[#allocation79_spill] sm:$0xff] %v6033_v40  ;;  %v6035_v4 = vpop.f32.mrb[43].mxu1  ;;  %v2435_v6 = vadd.f32 %v2307_v27, %v5966_v53  ;;  %v2480_v48 = vadd.f32 %v2352_v21, %v5978_v41  ;;  %v6046_v62 = vadd.f32 %v5914_v0, %v5618_v42  ;;  %v3055_v20 = vmul.f32 0.5, %v2927_v18 }
 0x5c7   : > { %7761 = vst [vmem:[#allocation78_spill] sm:$0xff] %v6028_v35  ;;  %v6037_v8 = vpop.f32.mrb[53].mxu0  ;;  %v6039_v23 = vpop.eup %4268  ;;  %v2436_v13 = vadd.f32 %v2308_v3, %v5982_v37  ;;  %v2359_v31 = vmul.f32 0.044715, %v2231_v56  ;;  %v2315_v41 = vmul.f32 0.044715, %v2187_v30  ;;  %v6064_v30 = vmul.f32 %v2975_v54, %v5823_v15 }
 0x5c8   : > { %7763 = vst [vmem:[#allocation80_spill] sm:$0xff] %v6037_v8  ;;  %7764 = vst [vmem:[#allocation81_spill] sm:$0xff] %v6039_v23  ;;  %v6048_v47 = vpop.f32.mrb[54].mxu0  ;;  %v2104_v8 = vmul.f32 %v6033_v40, %v6033_v40  ;;  %v4271_v27 = vpop.eup %4270  ;;  %v2563_v36 = vmul.f32 0.7978846, %v2435_v6  ;;  %v2060_v14 = vmul.f32 %v6046_v62, %v6046_v62  ;;  %v6078_v54 = vadd.f32 %v5825_v52, %v5628_v34 }
 0x5c9   : > { %7765 = vst [vmem:[#allocation82_spill] sm:$0xff] %v6046_v62  ;;  %7766 = vst [vmem:[#allocation83_spill] sm:$0xff] %v6048_v47  ;;  %v6053_v23 = vpop.f32.mrb[55].mxu0  ;;  %v2608_v21 = vmul.f32 0.7978846, %v2480_v48  ;;  %v4273_v0 = vpop.eup %4272  ;;  %v2855_v33 = vadd.f32 1.0, %v4271_v27  ;;  %v2487_v18 = vadd.f32 %v2359_v31, %v6005_v44  ;;  %v2443_v37 = vadd.f32 %v2315_v41, %v6009_v61 }
 0x5ca   : > { %7767 = vst [vmem:[#allocation84_spill] sm:$0xff] %v6053_v23  ;;  %v2564_v35 = vmul.f32 0.7978846, %v2436_v13  ;;  %v2232_v3 = vmul.f32 %v2104_v8, %v6033_v40  ;;  %v2811_v56 = vadd.f32 1.0, %v4273_v0  ;;  %4280 = vtanh.f32 %v2563_v36 }
 0x5cb   : > { %v2188_v23 = vmul.f32 %v2060_v14, %v6046_v62  ;;  %v6061_v47 = vpop.f32.mrb[44].mxu1  ;;  %4282 = vtanh.f32 %v2608_v21  ;;  %v2615_v6 = vmul.f32 0.7978846, %v2487_v18  ;;  %v6069_v31 = vmul.f32 %v3055_v20, %v5846_v12 }
 0x5cc   : > { %v2360_v48 = vmul.f32 0.044715, %v2232_v3  ;;  %v6066_v27 = vpop.f32.mrb[45].mxu1  ;;  %4284 = vtanh.f32 %v2564_v35  ;;  %v2571_v8 = vmul.f32 0.7978846, %v2443_v37  ;;  %v6073_v41 = vpop.eup %4274  ;;  %v2983_v14 = vmul.f32 0.5, %v2855_v33 }
 0x5cd   : > { %7768 = vst [vmem:[#allocation85_spill] sm:$0xff] %v6069_v31  ;;  %v2316_v36 = vmul.f32 0.044715, %v2188_v23  ;;  %v6071_v13 = vpop.f32.mrb[46].mxu1  ;;  %4286 = vtanh.f32 %v2615_v6  ;;  %v6082_v0 = vpop.f32.mrb[56].mxu0  ;;  %v2939_v35 = vmul.f32 0.5, %v2811_v56  ;;  %v6087_v23 = vadd.f32 %v5921_v39, %v5616_v24 }
 0x5ce   : > { %v2488_v15 = vadd.f32 %v2360_v48, %v6033_v40  ;;  %v6080_v21 = vpop.f32.mrb[47].mxu1  ;;  %7769 = vst [vmem:[#allocation86_spill] sm:$0xff] %v6082_v0  ;;  %v4277_v12 = vpop.eup %4276  ;;  %4288 = vtanh.f32 %v2571_v8  ;;  %v2111_v3 = vmul.f32 %v6078_v54, %v6078_v54  ;;  %v6097_v6 = vadd.f32 %v5832_v57, %v5628_v34 }
 0x5cf   : > { %v2444_v37 = vadd.f32 %v2316_v36, %v6046_v62  ;;  %v6089_v33 = vpop.f32.mrb[57].mxu0  ;;  %v6091_v20 = vpop.eup %4278  ;;  %v2863_v18 = vadd.f32 1.0, %v4277_v12  ;;  %v2067_v39 = vmul.f32 %v6087_v23, %v6087_v23  ;;  %v6105_v8 = vadd.f32 %v5929_v50, %v5616_v24 }
 0x5d0   : > { %7770 = vst [vmem:[#allocation87_spill] sm:$0xff] %v6089_v33  ;;  %7771 = vst [vmem:[#allocation88_spill] sm:$0xff] %v6091_v20  ;;  %v2616_v52 = vmul.f32 0.7978846, %v2488_v15  ;;  %v6099_v56 = vpop.f32.mrb[58].mxu0  ;;  %v2808_v36 = vadd.f32 1.0, %v5764_v59  ;;  %v6111_v12 = vmul.f32 %v2983_v14, %v5898_v16  ;;  %v2239_v57 = vmul.f32 %v2111_v3, %v6078_v54 }
 0x5d1   : > { %7772 = vst [vmem:[#allocation89_spill] sm:$0xff] %v6099_v56  ;;  %v2572_v48 = vmul.f32 0.7978846, %v2444_v37  ;;  %7773 = vst [vmem:[#allocation90_spill] sm:$0xff] %v6105_v8  ;;  %v6108_v15 = vpop.f32.mrb[59].mxu0  ;;  %v2991_v62 = vmul.f32 0.5, %v2863_v18  ;;  %v2112_v37 = vmul.f32 %v6097_v6, %v6097_v6  ;;  %v2195_v20 = vmul.f32 %v2067_v39, %v6087_v23 }
 0x5d2   : > { %7774 = vst [vmem:[#allocation91_spill] sm:$0xff] %v6108_v15  ;;  %4290 = vtanh.f32 %v2616_v52  ;;  %v2068_v50 = vmul.f32 %v6105_v8, %v6105_v8  ;;  %v2816_v31 = vadd.f32 1.0, %v5781_v2  ;;  %v2367_v15 = vmul.f32 0.044715, %v2239_v57 }
 0x5d3   : > { %v6120_v59 = vpop.f32.mrb[48].mxu1  ;;  %4292 = vtanh.f32 %v2572_v48  ;;  %v2240_v16 = vmul.f32 %v2112_v37, %v6097_v6  ;;  %v2936_v14 = vmul.f32 0.5, %v2808_v36  ;;  %v2323_v56 = vmul.f32 0.044715, %v2195_v20 }
 0x5d4   : > { %v6123_v18 = vpop.f32.mrb[49].mxu1  ;;  %v4281_v3 = vpop.eup %4280  ;;  %v2196_v52 = vmul.f32 %v2068_v50, %v6105_v8  ;;  %v2944_v33 = vmul.f32 0.5, %v2816_v31  ;;  %v3195_v39 = vpack.c.bf16 %v5828_v46, %v5788_v49  ;;  %v2495_v57 = vadd.f32 %v2367_v15, %v6078_v54 }
 0x5d5   : > { %7775 = vst [vmem:[#allocation92_spill] sm:$0xff] %v6123_v18  ;;  %v6128_v0 = vpop.f32.mrb[50].mxu1  ;;  %v6130_v2 = vpop.f32.mrb[60].mxu0  ;;  %v2819_v48 = vadd.f32 1.0, %v4281_v3  ;;  %v2368_v36 = vmul.f32 0.044715, %v2240_v16  ;;  %v3064_v37 = vmul.f32 %v2936_v14, %v5643_v26  ;;  %v2451_v49 = vadd.f32 %v2323_v56, %v6087_v23 }
 0x5d6   : > { %7776 = vst [vmem:[#allocation93_spill] sm:$0xff] %v6130_v2  ;;  %v6132_v40 = vpop.eup %4282  ;;  %v6136_v18 = vpop.f32.mrb[51].mxu1  ;;  %v2324_v46 = vmul.f32 0.044715, %v2196_v52  ;;  %v3072_v50 = vmul.f32 %v2944_v33, %v5663_v7  ;;  %v6146_v2 = vadd.f32 %v5857_v10, %v5614_v51  ;;  %v2623_v26 = vmul.f32 0.7978846, %v2495_v57 }
 0x5d7   : > { %7777 = vst [vmem:[#allocation94_spill] sm:$0xff] %v6136_v18  ;;  %v6138_v20 = vpop.f32.mrb[61].mxu0  ;;  %v6140_v31 = vpop.eup %4284  ;;  %v2947_v16 = vmul.f32 0.5, %v2819_v48  ;;  %v2496_v14 = vadd.f32 %v2368_v36, %v6097_v6  ;;  %v2579_v52 = vmul.f32 0.7978846, %v2451_v49  ;;  %v6157_v10 = vmul.f32 %v2939_v35, %v5901_v11 }
 0x5d8   : > { %7778 = vst [vmem:[#allocation95_spill] sm:$0xff] %v6138_v20  ;;  %7779 = vst [vmem:[#allocation96_spill] sm:$0xff] %v6140_v31  ;;  %v6148_v3 = vpop.f32.mrb[62].mxu0  ;;  %v4287_v15 = vpop.eup %4286  ;;  %v6153_v20 = vadd.f32 %v5953_v22, %v5622_v60  ;;  %v2452_v7 = vadd.f32 %v2324_v46, %v6105_v8  ;;  %v3196_v33 = vpack.c.bf16 %v3072_v50, %v3064_v37  ;;  %4294 = vtanh.f32 %v2623_v26 }
 0x5d9   : > { %7780 = vst [vmem:[#allocation97_spill] sm:$0xff] %v6148_v3  ;;  %v4289_v31 = vpop.eup %4288  ;;  %v2871_v56 = vadd.f32 1.0, %v4287_v15  ;;  %7781 = vst [vmem:[#allocation98_spill] sm:$0xff] %v6157_v10  ;;  %v2624_v3 = vmul.f32 0.7978846, %v2496_v14  ;;  %v6160_v48 = vmul.f32 %v2991_v62, %v5937_v17  ;;  %4296 = vtanh.f32 %v2579_v52 }
 0x5da   : > { %v2827_v18 = vadd.f32 1.0, %v4289_v31  ;;  %v2580_v57 = vmul.f32 0.7978846, %v2452_v7  ;;  %3271 = vmatprep.subr.bf16.mxu1 %v3196_v33  ;;  %v2041_v22 = vmul.f32 %v6146_v2, %v6146_v2  ;;  %v6167_v49 = vmul.f32 %v2947_v16, %v5966_v53 }
 0x5db   : > { %v6164_v36 = vpop.f32.mrb[52].mxu1  ;;  %v6169_v37 = vmul.f32 0.5, %v2871_v56  ;;  %3272 = vmatpush1.bf16.msra.mxu1 %v3195_v39  ;;  %v2075_v11 = vmul.f32 %v6153_v20, %v6153_v20  ;;  %v6175_v17 = vadd.f32 %v5866_v1, %v5614_v51  ;;  %4298 = vtanh.f32 %v2624_v3 }
 0x5dc   : > { %7782 = vst [vmem:[#allocation99_spill] sm:$0xff] %v6167_v49  ;;  %v6177_v62 = vpop.f32.mrb[53].mxu1  ;;  %v6179_v35 = vpop.eup %4290  ;;  %v6181_v31 = vmul.f32 0.5, %v2827_v18  ;;  %v2169_v53 = vmul.f32 %v2041_v22, %v6146_v2  ;;  %v6186_v46 = vadd.f32 %v5958_v58, %v5622_v60  ;;  %4300 = vtanh.f32 %v2580_v57 }
 0x5dd   : > { %7783 = vst [vmem:[#allocation100_spill] sm:$0xff] %v6175_v17  ;;  %v6188_v39 = vpop.f32.mrb[54].mxu1  ;;  %v6190_v50 = vpop.eup %4292  ;;  %v2203_v1 = vmul.f32 %v2075_v11, %v6153_v20  ;;  %v2042_v15 = vmul.f32 %v6175_v17, %v6175_v17  ;;  %v6197_v18 = vadd.f32 %v5879_v5, %v5612_v45  ;;  %v6205_v26 = vadd.f32 %v5960_v32, %v5620_v63 }
 0x5de   : > { %7784 = vst [vmem:[#allocation101_spill] sm:$0xff] %v6186_v46  ;;  %7785 = vst [vmem:[#allocation102_spill] sm:$0xff] %v6190_v50  ;;  %v6199_v3 = vpop.f32.mrb[55].mxu1  ;;  %v2297_v16 = vmul.f32 0.044715, %v2169_v53  ;;  %v2076_v58 = vmul.f32 %v6186_v46, %v6186_v46  ;;  %v6209_v14 = vadd.f32 %v5885_v19, %v5612_v45  ;;  %v6216_v7 = vadd.f32 %v5968_v9, %v5620_v63  ;;  %v6228_v9 = vpop.f32.mrb[63].mxu0 }
 0x5df   : > { %7786 = vst [vmem:[#allocation103_spill] sm:$0xff] %v6199_v3  ;;  %v2331_v56 = vmul.f32 0.044715, %v2203_v1  ;;  %v2170_v52 = vmul.f32 %v2042_v15, %v6175_v17  ;;  %v2049_v5 = vmul.f32 %v6197_v18, %v6197_v18  ;;  %v2083_v32 = vmul.f32 %v6205_v26, %v6205_v26  ;;  %7788 = vst [vmem:[#allocation105_spill] sm:$0xff] %v6228_v9  ;;  %v6234_v49 = vpop.f32.mrb[64].mxu0 }
 0x5e0   : > { %7787 = vst [vmem:[#allocation104_spill] sm:$0xff] %v6216_v7  ;;  %v2425_v33 = vadd.f32 %v2297_v16, %v6146_v2  ;;  %v2204_v57 = vmul.f32 %v2076_v58, %v6186_v46  ;;  %v2050_v19 = vmul.f32 %v6209_v14, %v6209_v14  ;;  %v2084_v1 = vmul.f32 %v6216_v7, %v6216_v7 }
 0x5e1   : > { %v2459_v22 = vadd.f32 %v2331_v56, %v6153_v20  ;;  %v2298_v11 = vmul.f32 0.044715, %v2170_v52  ;;  %v2177_v53 = vmul.f32 %v2049_v5, %v6197_v18  ;;  %v2211_v58 = vmul.f32 %v2083_v32, %v6205_v26  ;;  %7790 = vst [vmem:[#allocation107_spill] sm:$0xff] %v6234_v49 }
 0x5e2   : > { %v2553_v15 = vmul.f32 0.7978846, %v2425_v33  ;;  %v2332_v16 = vmul.f32 0.044715, %v2204_v57  ;;  %v2178_v8 = vmul.f32 %v2050_v19, %v6209_v14  ;;  %v4295_v10 = vpop.eup %4294  ;;  %v2212_v45 = vmul.f32 %v2084_v1, %v6216_v7 }
 0x5e3   : > { %v6232_v50 = vpop.f32.mrb[56].mxu1  ;;  %v2587_v56 = vmul.f32 0.7978846, %v2459_v22  ;;  %v2426_v52 = vadd.f32 %v2298_v11, %v6175_v17  ;;  %v2305_v5 = vmul.f32 0.044715, %v2177_v53  ;;  %v4297_v9 = vpop.eup %4296  ;;  %v2879_v33 = vadd.f32 1.0, %v4295_v10 }
 0x5e4   : > { %7789 = vst [vmem:[#allocation106_spill] sm:$0xff] %v6232_v50  ;;  %v6238_v51 = vpop.f32.mrb[57].mxu1  ;;  %4302 = vtanh.f32 %v2553_v15  ;;  %v2460_v57 = vadd.f32 %v2332_v16, %v6186_v46  ;;  %v2339_v32 = vmul.f32 0.044715, %v2211_v58  ;;  %v2835_v50 = vadd.f32 1.0, %v4297_v9  ;;  %v6251_v9 = vpop.f32.mrb[65].mxu0 }
 0x5e5   : > { %v6241_v19 = vpop.f32.mrb[58].mxu1  ;;  %4304 = vtanh.f32 %v2587_v56  ;;  %v2554_v49 = vmul.f32 0.7978846, %v2426_v52  ;;  %v2433_v22 = vadd.f32 %v2305_v5, %v6197_v18  ;;  %v6246_v11 = vpop.eup %4298  ;;  %v3007_v53 = vmul.f32 0.5, %v2879_v33  ;;  %7794 = vst [vmem:[#allocation111_spill] sm:$0xff] %v6251_v9 }
 0x5e6   : > { %7791 = vst [vmem:[#allocation108_spill] sm:$0xff] %v6241_v19  ;;  %v6244_v3 = vpop.f32.mrb[59].mxu1  ;;  %v2588_v1 = vmul.f32 0.7978846, %v2460_v57  ;;  %v2467_v17 = vadd.f32 %v2339_v32, %v6205_v26  ;;  %v2306_v10 = vmul.f32 0.044715, %v2178_v8  ;;  %v6249_v15 = vpop.eup %4300  ;;  %v6255_v56 = vmul.f32 %v6169_v37, %v6005_v44 }
 0x5e7   : > { %7792 = vst [vmem:[#allocation109_spill] sm:$0xff] %v6244_v3  ;;  %7793 = vst [vmem:[#allocation110_spill] sm:$0xff] %v6249_v15  ;;  %v2963_v16 = vmul.f32 0.5, %v2835_v50  ;;  %4306 = vtanh.f32 %v2554_v49  ;;  %v2561_v58 = vmul.f32 0.7978846, %v2433_v22  ;;  %v6258_v33 = vpop.f32.mrb[66].mxu0  ;;  %v6262_v8 = vmul.f32 %v6181_v31, %v6009_v61 }
 0x5e8   : > { %v2340_v46 = vmul.f32 0.044715, %v2212_v45  ;;  %4308 = vtanh.f32 %v2588_v1  ;;  %v2595_v52 = vmul.f32 0.7978846, %v2467_v17  ;;  %v2434_v5 = vadd.f32 %v2306_v10, %v6209_v14  ;;  %7795 = vst [vmem:[#allocation112_spill] sm:$0xff] %v6258_v33  ;;  %v7797_v45 = vld [vmem:[#allocation51_spill] sm:$0xff] }
 0x5e9   : > { %7796 = vst [vmem:[#allocation113_spill] sm:$0xff] %v6262_v8  ;;  %4310 = vtanh.f32 %v2561_v58  ;;  %v2824_v50 = vadd.f32 1.0, %v7797_v45  ;;  %v6266_v57 = vpop.f32.mrb[67].mxu0  ;;  %v6269_v44 = vmul.f32 %v3007_v53, %v6078_v54  ;;  %v7799_v37 = vld [vmem:[#allocation59_spill] sm:$0xff]  ;;  %v7801_v22 = vld [vmem:[#allocation60_spill] sm:$0xff]  ;;  %v6275_v10 = vmul.f32 %v2963_v16, %v6087_v23  ;;  %v7807_v16 = vld [vmem:[#allocation41_spill] sm:$0xff] }
 0x5ea   : > { %v2468_v49 = vadd.f32 %v2340_v46, %v6216_v7  ;;  %7798 = vst [vmem:[#allocation51_spill] sm:$0xff] %v6266_v57  ;;  %4312 = vtanh.f32 %v2595_v52  ;;  %v2832_v17 = vadd.f32 1.0, %v7799_v37  ;;  %v7800_v32 = vld [vmem:[#allocation55_spill] sm:$0xff]  ;;  %v7804_v58 = vld [vmem:[#allocation32_spill] sm:$0xff]  ;;  %v2562_v54 = vmul.f32 0.7978846, %v2434_v5 }
 0x5eb   : > { %v3203_v1 = vpack.c.bf16 %v7801_v22, %v7800_v32  ;;  %7802 = vst [vmem:[#allocation59_spill] sm:$0xff] %v6275_v10  ;;  %v2952_v61 = vmul.f32 0.5, %v2824_v50  ;;  %v7803_v31 = vld [vmem:[#allocation63_spill] sm:$0xff]  ;;  %v6283_v45 = vadd.f32 %v6013_v55, %v7804_v58  ;;  %v7805_v52 = vld [vmem:[#allocation64_spill] sm:$0xff]  ;;  %v6291_v32 = vadd.f32 %v6020_v38, %v7804_v58  ;;  %v7809_v38 = vld [vmem:[#allocation65_spill] sm:$0xff] }
 0x5ec   : > { %v6279_v46 = vadd.f32 %v7803_v31, %v5618_v42  ;;  %v2960_v53 = vmul.f32 0.5, %v2832_v17  ;;  %v6287_v37 = vadd.f32 %v7805_v52, %v5618_v42  ;;  %v2596_v23 = vmul.f32 0.7978846, %v2468_v49  ;;  %v7808_v5 = vld [vmem:[#allocation43_spill] sm:$0xff] }
 0x5ed   : > { %7806 = vst [vmem:[#allocation55_spill] sm:$0xff] %v6291_v32  ;;  %v3080_v50 = vmul.f32 %v2952_v61, %v7807_v16  ;;  %v2091_v55 = vmul.f32 %v6283_v45, %v6283_v45  ;;  %v2092_v7 = vmul.f32 %v6291_v32, %v6291_v32  ;;  %v6305_v49 = vadd.f32 %v7809_v38, %v5616_v24  ;;  %v6307_v61 = vpop.f32.mrb[68].mxu0 }
 0x5ee   : > { %v2057_v22 = vmul.f32 %v6279_v46, %v6279_v46  ;;  %v4303_v31 = vpop.eup %4302  ;;  %v3088_v17 = vmul.f32 %v2960_v53, %v7808_v5  ;;  %v2058_v52 = vmul.f32 %v6287_v37, %v6287_v37  ;;  %7810 = vst [vmem:[#allocation60_spill] sm:$0xff] %v6307_v61  ;;  %v6313_v53 = vadd.f32 %v6024_v43, %v5624_v28  ;;  %v6315_v5 = vpop.f32.mrb[69].mxu0 }
 0x5ef   : > { %v4305_v16 = vpop.eup %4304  ;;  %v2809_v10 = vadd.f32 1.0, %v4303_v31  ;;  %v2219_v15 = vmul.f32 %v2091_v55, %v6283_v45  ;;  %7811 = vst [vmem:[#allocation63_spill] sm:$0xff] %v6315_v5  ;;  %v2220_v38 = vmul.f32 %v2092_v7, %v6291_v32  ;;  %v6319_v9 = vpop.f32.mrb[70].mxu0  ;;  %4314 = vtanh.f32 %v2562_v54 }
 0x5f0   : > { %v2185_v8 = vmul.f32 %v2057_v22, %v6279_v46  ;;  %v2843_v42 = vadd.f32 1.0, %v4305_v16  ;;  %v3204_v57 = vpack.c.bf16 %v3088_v17, %v3080_v50  ;;  %v2186_v33 = vmul.f32 %v2058_v52, %v6287_v37  ;;  %7812 = vst [vmem:[#allocation64_spill] sm:$0xff] %v6319_v9  ;;  %v6325_v43 = vpop.f32.mrb[71].mxu0 }
 0x5f1   : > { %v6321_v61 = vpop.eup %4306  ;;  %v2347_v31 = vmul.f32 0.044715, %v2219_v15  ;;  %v2065_v55 = vmul.f32 %v6305_v49, %v6305_v49  ;;  %7813 = vst [vmem:[#allocation41_spill] sm:$0xff] %v6325_v43  ;;  %v2937_v16 = vmul.f32 0.5, %v2809_v10  ;;  %v2348_v17 = vmul.f32 0.044715, %v2220_v38 }
 0x5f2   : > { %v2313_v22 = vmul.f32 0.044715, %v2185_v8  ;;  %v6327_v3 = vpop.eup %4308  ;;  %3273 = vmatprep.subr.bf16.mxu1 %v3204_v57  ;;  %v2314_v50 = vmul.f32 0.044715, %v2186_v33  ;;  %v2099_v7 = vmul.f32 %v6313_v53, %v6313_v53  ;;  %v2971_v9 = vmul.f32 0.5, %v2843_v42 }
 0x5f3   : > { %7814 = vst [vmem:[#allocation43_spill] sm:$0xff] %v6327_v3  ;;  %v4311_v52 = vpop.eup %4310  ;;  %3274 = vmatpush1.bf16.msra.mxu1 %v3203_v1  ;;  %v2475_v15 = vadd.f32 %v2347_v31, %v6283_v45  ;;  %v2193_v54 = vmul.f32 %v2065_v55, %v6305_v49  ;;  %4316 = vtanh.f32 %v2596_v23  ;;  %v2476_v33 = vadd.f32 %v2348_v17, %v6291_v32  ;;  %v6344_v55 = vpop.f32.mrb[72].mxu0 }
 0x5f4   : > { %v2441_v8 = vadd.f32 %v2313_v22, %v6279_v46  ;;  %v4313_v5 = vpop.eup %4312  ;;  %v2817_v43 = vadd.f32 1.0, %v4311_v52  ;;  %v2442_v10 = vadd.f32 %v2314_v50, %v6287_v37  ;;  %v2227_v19 = vmul.f32 %v2099_v7, %v6313_v53  ;;  %v6349_v17 = vpop.f32.mrb[73].mxu0 }
 0x5f5   : > { %v2851_v57 = vadd.f32 1.0, %v4313_v5  ;;  %v2603_v3 = vmul.f32 0.7978846, %v2475_v15  ;;  %v6338_v42 = vmul.f32 %v2937_v16, %v6146_v2  ;;  %v6342_v31 = vadd.f32 %v5946_v29, %v5616_v24  ;;  %v6357_v29 = vpop.f32.mrb[74].mxu0 }
 0x5f6   : > { %v2569_v38 = vmul.f32 0.7978846, %v2441_v8  ;;  %v2945_v1 = vmul.f32 0.5, %v2817_v43  ;;  %v2570_v22 = vmul.f32 0.7978846, %v2442_v10  ;;  %v6347_v23 = vmul.f32 %v2971_v9, %v6153_v20  ;;  %7817 = vst [vmem:[#allocation115_spill] sm:$0xff] %v6357_v29 }
 0x5f7   : > { %v2321_v5 = vmul.f32 0.044715, %v2193_v54  ;;  %v2355_v50 = vmul.f32 0.044715, %v2227_v19  ;;  %v2604_v7 = vmul.f32 0.7978846, %v2476_v33  ;;  %v2066_v2 = vmul.f32 %v6342_v31, %v6342_v31 }
 0x5f8   : > { %7815 = vst [vmem:[#allocation65_spill] sm:$0xff] %v6347_v23  ;;  %4318 = vtanh.f32 %v2569_v38  ;;  %v6355_v43 = vadd.f32 %v6035_v4, %v5624_v28  ;;  %v6360_v16 = vmul.f32 %v2945_v1, %v6197_v18  ;;  %v2979_v20 = vmul.f32 0.5, %v2851_v57  ;;  %v6364_v52 = vpop.f32.mrb[75].mxu0  ;;  %v7819_v10 = vld [vmem:[#allocation78_spill] sm:$0xff]  ;;  %v7820_v57 = vld [vmem:[#allocation72_spill] sm:$0xff] }
 0x5f9   : > { %4320 = vtanh.f32 %v2603_v3  ;;  %v2449_v9 = vadd.f32 %v2321_v5, %v6305_v49  ;;  %v2483_v19 = vadd.f32 %v2355_v50, %v6313_v53  ;;  %7818 = vst [vmem:[#allocation116_spill] sm:$0xff] %v6364_v52  ;;  %v2194_v3 = vmul.f32 %v2066_v2, %v6342_v31  ;;  %v6370_v15 = vpop.eup %4314  ;;  %v7821_v50 = vld [vmem:[#allocation67_spill] sm:$0xff] }
 0x5fa   : > { %7816 = vst [vmem:[#allocation114_spill] sm:$0xff] %v6355_v43  ;;  %4322 = vtanh.f32 %v2570_v22  ;;  %v2100_v8 = vmul.f32 %v6355_v43, %v6355_v43  ;;  %v2840_v4 = vadd.f32 1.0, %v5955_v25  ;;  %v2848_v33 = vadd.f32 1.0, %v7819_v10  ;;  %v7822_v25 = vld [vmem:[#allocation34_spill] sm:$0xff] }
 0x5fb   : > { %v2577_v54 = vmul.f32 0.7978846, %v2449_v9  ;;  %v2611_v18 = vmul.f32 0.7978846, %v2483_v19  ;;  %v3211_v38 = vpack.c.bf16 %v6064_v30, %v7820_v57  ;;  %v2322_v1 = vmul.f32 0.044715, %v2194_v3 }
 0x5fc   : > { %v2228_v5 = vmul.f32 %v2100_v8, %v6355_v43  ;;  %v2968_v22 = vmul.f32 0.5, %v2840_v4  ;;  %v6378_v2 = vadd.f32 %v7821_v50, %v5622_v60  ;;  %v2976_v32 = vmul.f32 0.5, %v2848_v33  ;;  %v7823_v9 = vld [vmem:[#allocation71_spill] sm:$0xff]  ;;  %v7825_v8 = vld [vmem:[#allocation48_spill] sm:$0xff]  ;;  %v6392_v57 = vpop.f32.mrb[76].mxu0 }
 0x5fd   : > { %4324 = vtanh.f32 %v2577_v54  ;;  %v6382_v23 = vadd.f32 %v6061_v47, %v7822_v25  ;;  %v6386_v19 = vadd.f32 %v7823_v9, %v5622_v60  ;;  %v6388_v10 = vpop.eup %4316  ;;  %v2450_v30 = vadd.f32 %v2322_v1, %v6342_v31  ;;  %7826 = vst [vmem:[#allocation72_spill] sm:$0xff] %v6392_v57  ;;  %v7827_v54 = vld [vmem:[#allocation57_spill] sm:$0xff] }
 0x5fe   : > { %7824 = vst [vmem:[#allocation78_spill] sm:$0xff] %v6388_v10  ;;  %4326 = vtanh.f32 %v2611_v18  ;;  %v2356_v3 = vmul.f32 0.044715, %v2228_v5  ;;  %v3096_v4 = vmul.f32 %v2968_v22, %v7825_v8  ;;  %v3104_v33 = vmul.f32 %v2976_v32, %v7827_v54  ;;  %v6401_v10 = vpop.f32.mrb[77].mxu0  ;;  %v7830_v32 = vld [vmem:[#allocation73_spill] sm:$0xff] }
 0x5ff   : > { %v2073_v47 = vmul.f32 %v6378_v2, %v6378_v2  ;;  %v2107_v50 = vmul.f32 %v6382_v23, %v6382_v23  ;;  %v2074_v9 = vmul.f32 %v6386_v19, %v6386_v19  ;;  %7828 = vst [vmem:[#allocation67_spill] sm:$0xff] %v6401_v10  ;;  %v2578_v18 = vmul.f32 0.7978846, %v2450_v30  ;;  %v6412_v8 = vpop.f32.mrb[78].mxu0 }
 0x600   : > { %v2484_v1 = vadd.f32 %v2356_v3, %v6355_v43  ;;  %v6406_v5 = vadd.f32 %v6066_v27, %v7822_v25  ;;  %v6410_v22 = vadd.f32 %v7830_v32, %v5620_v63  ;;  %7831 = vst [vmem:[#allocation48_spill] sm:$0xff] %v6412_v8  ;;  %v3212_v60 = vpack.c.bf16 %v3104_v33, %v3096_v4  ;;  %v6417_v10 = vpop.f32.mrb[79].mxu0 }
 0x601   : > { %v2201_v24 = vmul.f32 %v2073_v47, %v6378_v2  ;;  %v2235_v57 = vmul.f32 %v2107_v50, %v6382_v23  ;;  %v2202_v30 = vmul.f32 %v2074_v9, %v6386_v19  ;;  %7832 = vst [vmem:[#allocation57_spill] sm:$0xff] %v6417_v10  ;;  %4328 = vtanh.f32 %v2604_v7 }
 0x602   : > { %7829 = vst [vmem:[#allocation71_spill] sm:$0xff] %v6406_v5  ;;  %v4319_v54 = vpop.eup %4318  ;;  %v2612_v27 = vmul.f32 0.7978846, %v2484_v1  ;;  %v2108_v32 = vmul.f32 %v6406_v5, %v6406_v5  ;;  %3275 = vmatprep.subr.bf16.mxu1 %v3212_v60  ;;  %v2081_v4 = vmul.f32 %v6410_v22, %v6410_v22  ;;  %v6426_v47 = vmul.f32 %v2979_v20, %v6205_v26  ;;  %v6437_v20 = vpop.f32.mrb[80].mxu0 }
 0x603   : > { %v4321_v3 = vpop.eup %4320  ;;  %v2825_v43 = vadd.f32 1.0, %v4319_v54  ;;  %v2329_v8 = vmul.f32 0.044715, %v2201_v24  ;;  %v2363_v29 = vmul.f32 0.044715, %v2235_v57  ;;  %4330 = vtanh.f32 %v2578_v18  ;;  %3276 = vmatpush1.bf16.msra.mxu1 %v3211_v38  ;;  %7834 = vst [vmem:[#allocation117_spill] sm:$0xff] %v6437_v20 }
 0x604   : > { %v2859_v52 = vadd.f32 1.0, %v4321_v3  ;;  %v6423_v33 = vpop.eup %4322  ;;  %7833 = vst [vmem:[#allocation73_spill] sm:$0xff] %v6426_v47  ;;  %v2330_v50 = vmul.f32 0.044715, %v2202_v30  ;;  %v2236_v7 = vmul.f32 %v2108_v32, %v6406_v5  ;;  %v2209_v24 = vmul.f32 %v2081_v4, %v6410_v22  ;;  %v7836_v47 = vld [vmem:[#allocation74_spill] sm:$0xff] }
 0x605   : > { %v2953_v9 = vmul.f32 0.5, %v2825_v43  ;;  %v2457_v1 = vadd.f32 %v2329_v8, %v6378_v2  ;;  %v2491_v60 = vadd.f32 %v2363_v29, %v6382_v23  ;;  %v6435_v26 = vadd.f32 %v6071_v13, %v5628_v34 }
 0x606   : > { %v2987_v57 = vmul.f32 0.5, %v2859_v52  ;;  %v2458_v54 = vadd.f32 %v2330_v50, %v6386_v19  ;;  %v2364_v3 = vmul.f32 0.044715, %v2236_v7  ;;  %4332 = vtanh.f32 %v2612_v27  ;;  %v6442_v50 = vpop.f32.mrb[81].mxu0 }
 0x607   : > { %v4325_v38 = vpop.eup %4324  ;;  %v2585_v18 = vmul.f32 0.7978846, %v2457_v1  ;;  %v2619_v43 = vmul.f32 0.7978846, %v2491_v60  ;;  %v2337_v30 = vmul.f32 0.044715, %v2209_v24  ;;  %v2115_v52 = vmul.f32 %v6435_v26, %v6435_v26 }
 0x608   : > { %v4327_v8 = vpop.eup %4326  ;;  %v2833_v32 = vadd.f32 1.0, %v4325_v38  ;;  %v2586_v29 = vmul.f32 0.7978846, %v2458_v54  ;;  %v2492_v4 = vadd.f32 %v2364_v3, %v6406_v5  ;;  %7835 = vst [vmem:[#allocation118_spill] sm:$0xff] %v6442_v50  ;;  %v6447_v27 = vadd.f32 %v7836_v47, %v5620_v63  ;;  %v6449_v1 = vpop.f32.mrb[82].mxu0 }
 0x609   : > { %v2867_v7 = vadd.f32 1.0, %v4327_v8  ;;  %4334 = vtanh.f32 %v2585_v18  ;;  %v2465_v13 = vadd.f32 %v2337_v30, %v6410_v22  ;;  %7837 = vst [vmem:[#allocation74_spill] sm:$0xff] %v6449_v1  ;;  %v6452_v60 = vmul.f32 %v2953_v9, %v6279_v46  ;;  %v6455_v3 = vpop.f32.mrb[83].mxu0 }
 0x60a   : > { %v2961_v24 = vmul.f32 0.5, %v2833_v32  ;;  %4336 = vtanh.f32 %v2619_v43  ;;  %v2243_v54 = vmul.f32 %v2115_v52, %v6435_v26  ;;  %7838 = vst [vmem:[#allocation119_spill] sm:$0xff] %v6455_v3  ;;  %v6458_v38 = vmul.f32 %v2987_v57, %v6283_v45  ;;  %v7852_v3 = vld [vmem:[#allocation92_spill] sm:$0xff] }
 0x60b   : > { %v2620_v18 = vmul.f32 0.7978846, %v2492_v4  ;;  %v2593_v30 = vmul.f32 0.7978846, %v2465_v13  ;;  %v2082_v47 = vmul.f32 %v6447_v27, %v6447_v27  ;;  %v6462_v8 = vpop.eup %4328  ;;  %v2995_v5 = vmul.f32 0.5, %v2867_v7  ;;  %v7842_v13 = vld [vmem:[#allocation77_spill] sm:$0xff] }
 0x60c   : > { %7839 = vst [vmem:[#allocation120_spill] sm:$0xff] %v6458_v38  ;;  %7840 = vst [vmem:[#allocation121_spill] sm:$0xff] %v6462_v8  ;;  %4338 = vtanh.f32 %v2586_v29  ;;  %v2371_v46 = vmul.f32 0.044715, %v2243_v54  ;;  %v6466_v9 = vadd.f32 %v6080_v21, %v5628_v34  ;;  %v6469_v43 = vmul.f32 %v2961_v24, %v6305_v49  ;;  %v7843_v54 = vld [vmem:[#allocation36_spill] sm:$0xff] }
 0x60d   : > { %4340 = vtanh.f32 %v2593_v30  ;;  %v2210_v45 = vmul.f32 %v2082_v47, %v6447_v27  ;;  %v2856_v57 = vadd.f32 1.0, %v6073_v41  ;;  %v6473_v32 = vpop.eup %4330  ;;  %v2864_v52 = vadd.f32 1.0, %v6132_v40  ;;  %v6489_v30 = vpop.f32.mrb[84].mxu0  ;;  %v7845_v40 = vld [vmem:[#allocation80_spill] sm:$0xff] }
 0x60e   : > { %7841 = vst [vmem:[#allocation122_spill] sm:$0xff] %v6466_v9  ;;  %v2499_v4 = vadd.f32 %v2371_v46, %v6435_v26  ;;  %v2116_v29 = vmul.f32 %v6466_v9, %v6466_v9  ;;  %v3219_v21 = vpack.c.bf16 %v6160_v48, %v6111_v12  ;;  %v6483_v24 = vadd.f32 %v7842_v13, %v7804_v58  ;;  %v6496_v12 = vpop.f32.mrb[85].mxu0 }
 0x60f   : > { %v2338_v7 = vmul.f32 0.044715, %v2210_v45  ;;  %v2984_v49 = vmul.f32 0.5, %v2856_v57  ;;  %v6487_v41 = vadd.f32 %v6120_v59, %v7843_v54  ;;  %7844 = vst [vmem:[#allocation77_spill] sm:$0xff] %v6489_v30  ;;  %v2992_v38 = vmul.f32 0.5, %v2864_v52  ;;  %7846 = vst [vmem:[#allocation36_spill] sm:$0xff] %v6496_v12 }
 0x610   : > { %v2627_v47 = vmul.f32 0.7978846, %v2499_v4  ;;  %v2244_v46 = vmul.f32 %v2116_v29, %v6466_v9  ;;  %v6494_v8 = vadd.f32 %v7845_v40, %v7804_v58  ;;  %v6498_v48 = vpop.eup %4332  ;;  %v7848_v57 = vld [vmem:[#allocation61_spill] sm:$0xff]  ;;  %v2089_v59 = vmul.f32 %v6483_v24, %v6483_v24  ;;  %v6506_v29 = vpop.f32.mrb[86].mxu0 }
 0x611   : > { %7847 = vst [vmem:[#allocation80_spill] sm:$0xff] %v6498_v48  ;;  %v2466_v45 = vadd.f32 %v2338_v7, %v6447_v27  ;;  %v3112_v13 = vmul.f32 %v2984_v49, %v7848_v57  ;;  %v2123_v4 = vmul.f32 %v6487_v41, %v6487_v41  ;;  %7849 = vst [vmem:[#allocation61_spill] sm:$0xff] %v6506_v29  ;;  %v7850_v40 = vld [vmem:[#allocation69_spill] sm:$0xff]  ;;  %v6511_v48 = vpop.f32.mrb[87].mxu0 }
 0x612   : > { %4342 = vtanh.f32 %v2627_v47  ;;  %v2372_v52 = vmul.f32 0.044715, %v2244_v46  ;;  %v3120_v30 = vmul.f32 %v2992_v38, %v7850_v40  ;;  %v2090_v12 = vmul.f32 %v6494_v8, %v6494_v8  ;;  %7851 = vst [vmem:[#allocation69_spill] sm:$0xff] %v6511_v48 }
 0x613   : > { %v4335_v7 = vpop.eup %4334  ;;  %v2594_v58 = vmul.f32 0.7978846, %v2466_v45  ;;  %v2217_v49 = vmul.f32 %v2089_v59, %v6483_v24  ;;  %v2251_v57 = vmul.f32 %v2123_v4, %v6487_v41  ;;  %v6517_v1 = vadd.f32 %v7852_v3, %v7843_v54 }
 0x614   : > { %v4337_v29 = vpop.eup %4336  ;;  %v2841_v47 = vadd.f32 1.0, %v4335_v7  ;;  %v2500_v46 = vadd.f32 %v2372_v52, %v6466_v9  ;;  %v3220_v38 = vpack.c.bf16 %v3120_v30, %v3112_v13  ;;  %v2218_v40 = vmul.f32 %v2090_v12, %v6494_v8  ;;  %v7855_v12 = vld [vmem:[#allocation83_spill] sm:$0xff] }
 0x615   : > { %7853 = vst [vmem:[#allocation92_spill] sm:$0xff] %v6517_v1  ;;  %v2875_v63 = vadd.f32 1.0, %v4337_v29  ;;  %4344 = vtanh.f32 %v2620_v18  ;;  %v2345_v48 = vmul.f32 0.044715, %v2217_v49  ;;  %v2379_v50 = vmul.f32 0.044715, %v2251_v57 }
 0x616   : > { %v6521_v45 = vpop.eup %4338  ;;  %v2969_v59 = vmul.f32 0.5, %v2841_v47  ;;  %v2628_v20 = vmul.f32 0.7978846, %v2500_v46  ;;  %3277 = vmatprep.subr.bf16.mxu1 %v3220_v38  ;;  %v2346_v4 = vmul.f32 0.044715, %v2218_v40  ;;  %v2124_v3 = vmul.f32 %v6517_v1, %v6517_v1 }
 0x617   : > { %v4341_v10 = vpop.eup %4340  ;;  %v6526_v7 = vmul.f32 %v2995_v5, %v6313_v53  ;;  %3278 = vmatpush1.bf16.msra.mxu1 %v3219_v21  ;;  %v2473_v30 = vadd.f32 %v2345_v48, %v6483_v24  ;;  %v2507_v18 = vadd.f32 %v2379_v50, %v6487_v41  ;;  %v6532_v13 = vadd.f32 %v7855_v12, %v5624_v28  ;;  %v7856_v48 = vld [vmem:[#allocation35_spill] sm:$0xff] }
 0x618   : > { %v6535_v29 = vmul.f32 %v2969_v59, %v6378_v2  ;;  %v3003_v52 = vmul.f32 0.5, %v2875_v63  ;;  %v2849_v49 = vadd.f32 1.0, %v4341_v10  ;;  %4346 = vtanh.f32 %v2594_v58  ;;  %v7857_v63 = vld [vmem:[#allocation84_spill] sm:$0xff]  ;;  %v7859_v10 = vld [vmem:[#allocation94_spill] sm:$0xff] }
 0x619   : > { %7854 = vst [vmem:[#allocation123_spill] sm:$0xff] %v6526_v7  ;;  %v2601_v57 = vmul.f32 0.7978846, %v2473_v30  ;;  %v2635_v47 = vmul.f32 0.7978846, %v2507_v18  ;;  %v2474_v53 = vadd.f32 %v2346_v4, %v6494_v8  ;;  %v2252_v5 = vmul.f32 %v2124_v3, %v6517_v1 }
 0x61a   : > { %v2977_v21 = vmul.f32 0.5, %v2849_v49  ;;  %4348 = vtanh.f32 %v2628_v20  ;;  %v2097_v50 = vmul.f32 %v6532_v13, %v6532_v13  ;;  %v6543_v46 = vadd.f32 %v6128_v0, %v7856_v48 }
 0x61b   : > { %4350 = vtanh.f32 %v2601_v57  ;;  %v2380_v2 = vmul.f32 0.044715, %v2252_v5  ;;  %v6547_v58 = vadd.f32 %v7857_v63, %v5624_v28  ;;  %v6551_v38 = vadd.f32 %v7859_v10, %v7856_v48 }
 0x61c   : > { %v4343_v40 = vpop.eup %4342  ;;  %v6554_v20 = vmul.f32 %v3003_v52, %v6382_v23  ;;  %4352 = vtanh.f32 %v2635_v47  ;;  %v2225_v59 = vmul.f32 %v2097_v50, %v6532_v13  ;;  %v2131_v0 = vmul.f32 %v6543_v46, %v6543_v46 }
 0x61d   : > { %7858 = vst [vmem:[#allocation83_spill] sm:$0xff] %v6547_v58  ;;  %7860 = vst [vmem:[#allocation84_spill] sm:$0xff] %v6551_v38  ;;  %v2883_v4 = vadd.f32 1.0, %v4343_v40  ;;  %v2602_v3 = vmul.f32 0.7978846, %v2474_v53  ;;  %v2508_v30 = vadd.f32 %v2380_v2, %v6517_v1  ;;  %v2098_v18 = vmul.f32 %v6547_v58, %v6547_v58  ;;  %v6575_v1 = vpop.f32.mrb[88].mxu0 }
 0x61e   : > { %7861 = vst [vmem:[#allocation94_spill] sm:$0xff] %v6554_v20  ;;  %v2353_v12 = vmul.f32 0.044715, %v2225_v59  ;;  %v2259_v49 = vmul.f32 %v2131_v0, %v6543_v46  ;;  %v2132_v23 = vmul.f32 %v6551_v38, %v6551_v38  ;;  %v2872_v52 = vadd.f32 1.0, %v6179_v35  ;;  %7863 = vst [vmem:[#allocation125_spill] sm:$0xff] %v6575_v1 }
 0x61f   : > { %v6566_v57 = vpop.eup %4344  ;;  %v6569_v47 = vmul.f32 %v2977_v21, %v6410_v22  ;;  %v3011_v5 = vmul.f32 0.5, %v2883_v4  ;;  %v2226_v53 = vmul.f32 %v2098_v18, %v6547_v58  ;;  %v2880_v50 = vadd.f32 1.0, %v6246_v11  ;;  %v7864_v18 = vld [vmem:[#allocation79_spill] sm:$0xff] }
 0x620   : > { %7862 = vst [vmem:[#allocation124_spill] sm:$0xff] %v6566_v57  ;;  %v2481_v2 = vadd.f32 %v2353_v12, %v6532_v13  ;;  %v2387_v63 = vmul.f32 0.044715, %v2259_v49  ;;  %v2260_v10 = vmul.f32 %v2132_v23, %v6551_v38  ;;  %v3000_v40 = vmul.f32 0.5, %v2872_v52  ;;  %v7884_v57 = vld [vmem:[#allocation42_spill] sm:$0xff] }
 0x621   : > { %4354 = vtanh.f32 %v2602_v3  ;;  %v2636_v59 = vmul.f32 0.7978846, %v2508_v30  ;;  %v2354_v0 = vmul.f32 0.044715, %v2226_v53  ;;  %v3008_v35 = vmul.f32 0.5, %v2880_v50  ;;  %v7865_v30 = vld [vmem:[#allocation45_spill] sm:$0xff] }
 0x622   : > { %v6577_v20 = vpop.eup %4346  ;;  %v2609_v22 = vmul.f32 0.7978846, %v2481_v2  ;;  %v2515_v21 = vadd.f32 %v2387_v63, %v6543_v46  ;;  %v2388_v4 = vmul.f32 0.044715, %v2260_v10  ;;  %v3128_v11 = vmul.f32 %v3000_v40, %v7864_v18  ;;  %v7867_v2 = vld [vmem:[#allocation46_spill] sm:$0xff] }
 0x623   : > { %v2482_v12 = vadd.f32 %v2354_v0, %v6547_v58  ;;  %v3136_v49 = vmul.f32 %v3008_v35, %v6097_v6  ;;  %v3227_v3 = vpack.c.bf16 %v6269_v44, %v6255_v56  ;;  %v2888_v23 = vadd.f32 1.0, %v7865_v30  ;;  %v7868_v0 = vld [vmem:[#allocation86_spill] sm:$0xff] }
 0x624   : > { %v6586_v52 = vpop.eup %4348  ;;  %4356 = vtanh.f32 %v2609_v22  ;;  %v2643_v53 = vmul.f32 0.7978846, %v2515_v21  ;;  %v2516_v50 = vadd.f32 %v2388_v4, %v6551_v38  ;;  %v2896_v63 = vadd.f32 1.0, %v7867_v2  ;;  %v7872_v2 = vld [vmem:[#allocation39_spill] sm:$0xff] }
 0x625   : > { %7866 = vst [vmem:[#allocation79_spill] sm:$0xff] %v6586_v52  ;;  %v4351_v10 = vpop.eup %4350  ;;  %v2610_v9 = vmul.f32 0.7978846, %v2482_v12  ;;  %v3228_v40 = vpack.c.bf16 %v3136_v49, %v3128_v11  ;;  %v3016_v18 = vmul.f32 0.5, %v2888_v23  ;;  %v6592_v6 = vadd.f32 %v7868_v0, %v7822_v25  ;;  %v7870_v11 = vld [vmem:[#allocation37_spill] sm:$0xff]  ;;  %v7871_v49 = vld [vmem:[#allocation38_spill] sm:$0xff] }
 0x626   : > { %v4353_v35 = vpop.eup %4352  ;;  %v2857_v56 = vadd.f32 1.0, %v4351_v10  ;;  %4358 = vtanh.f32 %v2643_v53  ;;  %v2644_v44 = vmul.f32 0.7978846, %v2516_v50  ;;  %v3024_v30 = vmul.f32 0.5, %v2896_v63  ;;  %v7874_v63 = vld [vmem:[#allocation54_spill] sm:$0xff]  ;;  %v7875_v10 = vld [vmem:[#allocation87_spill] sm:$0xff] }
 0x627   : > { %v6595_v22 = vmul.f32 %v3011_v5, %v6435_v26  ;;  %v2891_v21 = vadd.f32 1.0, %v4353_v35  ;;  %4360 = vtanh.f32 %v2636_v59  ;;  %3279 = vmatprep.subr.bf16.mxu1 %v3228_v40  ;;  %v2105_v4 = vmul.f32 %v6592_v6, %v6592_v6  ;;  %v7873_v5 = vld [vmem:[#allocation49_spill] sm:$0xff] }
 0x628   : > { %4362 = vtanh.f32 %v2610_v9  ;;  %3280 = vmatpush1.bf16.msra.mxu1 %v3227_v3  ;;  %v3144_v12 = vmul.f32 %v3016_v18, %v7870_v11  ;;  %v3152_v23 = vmul.f32 %v3024_v30, %v7871_v49  ;;  %v6603_v53 = vadd.f32 %v6164_v36, %v7872_v2  ;;  %v7878_v30 = vld [vmem:[#allocation53_spill] sm:$0xff] }
 0x629   : > { %7869 = vst [vmem:[#allocation45_spill] sm:$0xff] %v6595_v22  ;;  %v2985_v50 = vmul.f32 0.5, %v2857_v56  ;;  %v2233_v26 = vmul.f32 %v2105_v4, %v6592_v6  ;;  %v3235_v59 = vpack.c.bf16 %v7874_v63, %v7873_v5  ;;  %v6610_v40 = vadd.f32 %v7875_v10, %v7822_v25  ;;  %v6631_v5 = vpop.f32.mrb[89].mxu0  ;;  %v7882_v10 = vld [vmem:[#allocation40_spill] sm:$0xff] }
 0x62a   : > { %4364 = vtanh.f32 %v2644_v44  ;;  %v3236_v9 = vpack.c.bf16 %v3152_v23, %v3144_v12  ;;  %v2139_v3 = vmul.f32 %v6603_v53, %v6603_v53  ;;  %v6616_v18 = vadd.f32 %v6177_v62, %v7872_v2  ;;  %v7879_v12 = vld [vmem:[#allocation66_spill] sm:$0xff]  ;;  %v7880_v62 = vld [vmem:[#allocation89_spill] sm:$0xff]  ;;  %7881 = vst [vmem:[#allocation37_spill] sm:$0xff] %v6631_v5  ;;  %v7885_v5 = vld [vmem:[#allocation44_spill] sm:$0xff] }
 0x62b   : > { %7876 = vst [vmem:[#allocation46_spill] sm:$0xff] %v6610_v40  ;;  %v6618_v36 = vpop.eup %4354  ;;  %v3019_v0 = vmul.f32 0.5, %v2891_v21  ;;  %v2361_v35 = vmul.f32 0.044715, %v2233_v26  ;;  %v2106_v56 = vmul.f32 %v6610_v40, %v6610_v40  ;;  %v2904_v4 = vadd.f32 1.0, %v7878_v30 }
 0x62c   : > { %7877 = vst [vmem:[#allocation86_spill] sm:$0xff] %v6616_v18  ;;  %3281 = vmatprep.subr.bf16.mxu1 %v3236_v9  ;;  %v2267_v44 = vmul.f32 %v2139_v3, %v6603_v53  ;;  %v2140_v11 = vmul.f32 %v6616_v18, %v6616_v18  ;;  %v2912_v49 = vadd.f32 1.0, %v7879_v12  ;;  %v6629_v23 = vadd.f32 %v7880_v62, %v5628_v34  ;;  %v6639_v3 = vpop.f32.mrb[90].mxu0 }
 0x62d   : > { %v2489_v21 = vadd.f32 %v2361_v35, %v6592_v6  ;;  %3282 = vmatpush1.bf16.msra.mxu1 %v3235_v59  ;;  %v2234_v26 = vmul.f32 %v2106_v56, %v6610_v40  ;;  %v3032_v63 = vmul.f32 0.5, %v2904_v4  ;;  %v6637_v9 = vadd.f32 %v6188_v39, %v7882_v10  ;;  %7883 = vst [vmem:[#allocation38_spill] sm:$0xff] %v6639_v3 }
 0x62e   : > { %v4357_v30 = vpop.eup %4356  ;;  %v2395_v12 = vmul.f32 0.044715, %v2267_v44  ;;  %v2268_v38 = vmul.f32 %v2140_v11, %v6616_v18  ;;  %v3040_v62 = vmul.f32 0.5, %v2912_v49  ;;  %v2113_v22 = vmul.f32 %v6629_v23, %v6629_v23  ;;  %v6648_v44 = vpop.f32.mrb[91].mxu0 }
 0x62f   : > { %v2865_v52 = vadd.f32 1.0, %v4357_v30  ;;  %v2617_v35 = vmul.f32 0.7978846, %v2489_v21  ;;  %v2362_v59 = vmul.f32 0.044715, %v2234_v26  ;;  %v3160_v56 = vmul.f32 %v3032_v63, %v7884_v57  ;;  %7886 = vst [vmem:[#allocation39_spill] sm:$0xff] %v6648_v44 }
 0x630   : > { %v4359_v4 = vpop.eup %4358  ;;  %v2523_v7 = vadd.f32 %v2395_v12, %v6603_v53  ;;  %v2396_v39 = vmul.f32 0.044715, %v2268_v38  ;;  %v3168_v1 = vmul.f32 %v3040_v62, %v7885_v5  ;;  %v2241_v3 = vmul.f32 %v2113_v22, %v6629_v23  ;;  %v6653_v26 = vpop.f32.mrb[92].mxu0 }
 0x631   : > { %v6650_v11 = vpop.eup %4360  ;;  %v2993_v49 = vmul.f32 0.5, %v2865_v52  ;;  %v2899_v25 = vadd.f32 1.0, %v4359_v4  ;;  %4366 = vtanh.f32 %v2617_v35  ;;  %v2490_v21 = vadd.f32 %v2362_v59, %v6610_v40  ;;  %7888 = vst [vmem:[#allocation54_spill] sm:$0xff] %v6653_v26 }
 0x632   : > { %7887 = vst [vmem:[#allocation49_spill] sm:$0xff] %v6650_v11  ;;  %v6655_v57 = vpop.eup %4362  ;;  %v2651_v63 = vmul.f32 0.7978846, %v2523_v7  ;;  %v2524_v38 = vadd.f32 %v2396_v39, %v6616_v18  ;;  %v3244_v30 = vpack.c.bf16 %v3168_v1, %v3160_v56  ;;  %v2369_v5 = vmul.f32 0.044715, %v2241_v3  ;;  %v7891_v7 = vld [vmem:[#allocation91_spill] sm:$0xff] }
 0x633   : > { %v6659_v22 = vmul.f32 %v2985_v50, %v6483_v24  ;;  %v6662_v12 = vmul.f32 %v3019_v0, %v6487_v41  ;;  %v2618_v52 = vmul.f32 0.7978846, %v2490_v21  ;;  %v2147_v62 = vmul.f32 %v6637_v9, %v6637_v9  ;;  %v7892_v3 = vld [vmem:[#allocation103_spill] sm:$0xff]  ;;  %v7894_v39 = vld [vmem:[#allocation56_spill] sm:$0xff]  ;;  %v7900_v18 = vld [vmem:[#allocation106_spill] sm:$0xff]  ;;  %v6706_v11 = vpop.f32.mrb[93].mxu0 }
 0x634   : > { %v6666_v35 = vpop.eup %4364  ;;  %v6669_v59 = vmul.f32 %v2993_v49, %v6532_v13  ;;  %4368 = vtanh.f32 %v2651_v63  ;;  %3283 = vmatprep.subr.bf16.mxu1 %v3244_v30  ;;  %v2497_v1 = vadd.f32 %v2369_v5, %v6629_v23  ;;  %v6674_v24 = vadd.f32 %v7891_v7, %v5628_v34  ;;  %v7895_v49 = vld [vmem:[#allocation68_spill] sm:$0xff]  ;;  %v7897_v5 = vld [vmem:[#allocation81_spill] sm:$0xff] }
 0x635   : > { %7889 = vst [vmem:[#allocation87_spill] sm:$0xff] %v6662_v12  ;;  %7890 = vst [vmem:[#allocation53_spill] sm:$0xff] %v6666_v35  ;;  %v3027_v50 = vmul.f32 0.5, %v2899_v25  ;;  %v2652_v41 = vmul.f32 0.7978846, %v2524_v38  ;;  %v2275_v0 = vmul.f32 %v2147_v62, %v6637_v9  ;;  %v6679_v56 = vadd.f32 %v7892_v3, %v7882_v10  ;;  %v7896_v25 = vld [vmem:[#allocation76_spill] sm:$0xff] }
 0x636   : > { %4370 = vtanh.f32 %v2618_v52  ;;  %v2625_v4 = vmul.f32 0.7978846, %v2497_v1  ;;  %v2114_v13 = vmul.f32 %v6674_v24, %v6674_v24  ;;  %v3243_v21 = vpack.c.bf16 %v7895_v49, %v7894_v39  ;;  %v7898_v52 = vld [vmem:[#allocation93_spill] sm:$0xff]  ;;  %v7899_v3 = vld [vmem:[#allocation47_spill] sm:$0xff] }
 0x637   : > { %7893 = vst [vmem:[#allocation66_spill] sm:$0xff] %v6679_v56  ;;  %v2403_v63 = vmul.f32 0.044715, %v2275_v0  ;;  %v2148_v30 = vmul.f32 %v6679_v56, %v6679_v56  ;;  %v2920_v38 = vadd.f32 1.0, %v7896_v25  ;;  %v2928_v62 = vadd.f32 1.0, %v7897_v5  ;;  %v7902_v5 = vld [vmem:[#allocation85_spill] sm:$0xff] }
 0x638   : > { %4372 = vtanh.f32 %v2625_v4  ;;  %v2242_v7 = vmul.f32 %v2114_v13, %v6674_v24  ;;  %3284 = vmatpush1.bf16.msra.mxu1 %v3243_v21  ;;  %v6692_v1 = vadd.f32 %v7898_v52, %v7843_v54  ;;  %v6696_v12 = vadd.f32 %v7900_v18, %v7899_v3  ;;  %v7901_v21 = vld [vmem:[#allocation75_spill] sm:$0xff] }
 0x639   : > { %v2531_v0 = vadd.f32 %v2403_v63, %v6637_v9  ;;  %v2276_v39 = vmul.f32 %v2148_v30, %v6679_v56  ;;  %v3048_v49 = vmul.f32 0.5, %v2920_v38  ;;  %v3056_v25 = vmul.f32 0.5, %v2928_v62  ;;  %v7903_v63 = vld [vmem:[#allocation50_spill] sm:$0xff]  ;;  %v6710_v62 = vpop.f32.mrb[94].mxu0 }
 0x63a   : > { %v2370_v35 = vmul.f32 0.044715, %v2242_v7  ;;  %v2121_v4 = vmul.f32 %v6692_v1, %v6692_v1  ;;  %v2155_v13 = vmul.f32 %v6696_v12, %v6696_v12  ;;  %v3251_v52 = vpack.c.bf16 %v7902_v5, %v7901_v21  ;;  %v7904_v30 = vld [vmem:[#allocation58_spill] sm:$0xff]  ;;  %7905 = vst [vmem:[#allocation89_spill] sm:$0xff] %v6710_v62 }
 0x63b   : > { %v4367_v18 = vpop.eup %4366  ;;  %v2659_v26 = vmul.f32 0.7978846, %v2531_v0  ;;  %v2404_v44 = vmul.f32 0.044715, %v2276_v39  ;;  %v3176_v34 = vmul.f32 %v3048_v49, %v7903_v63  ;;  %v3184_v38 = vmul.f32 %v3056_v25, %v7904_v30  ;;  %v7906_v0 = vld [vmem:[#allocation95_spill] sm:$0xff]  ;;  %v6720_v49 = vpop.f32.mrb[95].mxu0 }
 0x63c   : > { %v2873_v7 = vadd.f32 1.0, %v4367_v18  ;;  %v2498_v28 = vadd.f32 %v2370_v35, %v6674_v24  ;;  %v2249_v40 = vmul.f32 %v2121_v4, %v6692_v1  ;;  %v2283_v58 = vmul.f32 %v2155_v13, %v6696_v12  ;;  %7907 = vst [vmem:[#allocation40_spill] sm:$0xff] %v6720_v49  ;;  %v6726_v4 = vpop.f32.mrb[96].mxu0 }
 0x63d   : > { %4374 = vtanh.f32 %v2659_v26  ;;  %v2532_v21 = vadd.f32 %v2404_v44, %v6679_v56  ;;  %v3252_v5 = vpack.c.bf16 %v3184_v38, %v3176_v34  ;;  %v6718_v39 = vadd.f32 %v7906_v0, %v7843_v54  ;;  %7909 = vst [vmem:[#allocation44_spill] sm:$0xff] %v6726_v4  ;;  %v6733_v38 = vld [vmem:[%s7582_s6] sm:$0xff]  }
 0x63e   : > { %v4369_v25 = vpop.eup %4368  ;;  %v3001_v63 = vmul.f32 0.5, %v2873_v7  ;;  %v2626_v30 = vmul.f32 0.7978846, %v2498_v28  ;;  %v2377_v18 = vmul.f32 0.044715, %v2249_v40  ;;  %v6724_v35 = vadd.f32 %v6238_v51, %v7899_v3 }
 0x63f   : > { %v2907_v26 = vadd.f32 1.0, %v4369_v25  ;;  %v2660_v13 = vmul.f32 0.7978846, %v2532_v21  ;;  %3285 = vmatprep.subr.bf16.mxu1 %v3252_v5  ;;  %v2411_v34 = vmul.f32 0.044715, %v2283_v58  ;;  %v2122_v44 = vmul.f32 %v6718_v39, %v6718_v39 }
 0x640   : > { %7908 = vst [vmem:[#allocation42_spill] sm:$0xff] %v6724_v35  ;;  %v6735_v28 = vpop.eup %4370  ;;  %v6738_v40 = vmul.f32 %v3027_v50, %v6543_v46  ;;  %4376 = vtanh.f32 %v2652_v41  ;;  %v2505_v51 = vadd.f32 %v2377_v18, %v6692_v1  ;;  %3286 = vmatpush1.bf16.msra.mxu1 %v3251_v52  ;;  %v2156_v58 = vmul.f32 %v6724_v35, %v6724_v35  ;;  %v6751_v52 = vpop.f32.mrb[97].mxu0 }
 0x641   : > { %v6744_v7 = vmul.f32 %v3001_v63, %v6592_v6  ;;  %4378 = vtanh.f32 %v2626_v30  ;;  %v2539_v21 = vadd.f32 %v2411_v34, %v6696_v12  ;;  %v2250_v5 = vmul.f32 %v2122_v44, %v6718_v39  ;;  %7911 = vst [vmem:[#allocation103_spill] sm:$0xff] %v6751_v52  ;;  %v6754_v63 = vpop.f32.mrb[98].mxu0 }
 0x642   : > { %7910 = vst [vmem:[#allocation91_spill] sm:$0xff] %v6738_v40  ;;  %v4373_v0 = vpop.eup %4372  ;;  %v2633_v25 = vmul.f32 0.7978846, %v2505_v51  ;;  %v2284_v46 = vmul.f32 %v2156_v58, %v6724_v35  ;;  %v2810_v50 = vadd.f32 1.0, %v6321_v61  ;;  %v2818_v41 = vadd.f32 1.0, %v6370_v15  ;;  %7912 = vst [vmem:[#allocation56_spill] sm:$0xff] %v6754_v63 }
 0x643   : > { %v3035_v18 = vmul.f32 0.5, %v2907_v26  ;;  %4380 = vtanh.f32 %v2660_v13  ;;  %v2667_v56 = vmul.f32 0.7978846, %v2539_v21  ;;  %v2378_v6 = vmul.f32 0.044715, %v2250_v5  ;;  %3304 = vmatmul.mubr.bf16.vlgmr.msra.gmra.mrb[60].mxu1 %v6733_v38  ;;  %v7914_v15 = vld [vmem:[#allocation97_spill] sm:$0xff] }
 0x644   : > { %4382 = vtanh.f32 %v2633_v25  ;;  %v2412_v30 = vmul.f32 0.044715, %v2284_v46  ;;  %v2938_v34 = vmul.f32 0.5, %v2810_v50  ;;  %v2946_v44 = vmul.f32 0.5, %v2818_v41  ;;  %v7915_v21 = vld [vmem:[#allocation100_spill] sm:$0xff] }
 0x645   : > { %v7913_v51 = vmov 0   ;;  %v2881_v58 = vadd.f32 1.0, %v4373_v0  ;;  %4384 = vtanh.f32 %v2667_v56  ;;  %v2506_v61 = vadd.f32 %v2378_v6, %v6718_v39  ;;  %v7916_v25 = vld [vmem:[#allocation52_spill] sm:$0xff] }
 0x646   : > { %3313 = vmatprep.mubr.bf16.mxu1 %v7913_v51  ;;  %v6760_v26 = vadd.f32 %v7914_v15, %v7856_v48  ;;  %v2540_v13 = vadd.f32 %v2412_v30, %v6724_v35  ;;  %v3066_v5 = vmul.f32 %v2938_v34, %v7915_v21  ;;  %v3074_v40 = vmul.f32 %v2946_v44, %v6209_v14  ;;  %v7917_v46 = vld [vmem:[#allocation108_spill] sm:$0xff]  ;;  %v7919_v15 = vld [vmem:[#allocation105_spill] sm:$0xff]  ;;  %v6792_v35 = vpop.f32.mrb[99].mxu0 }
 0x647   : > { %v6767_v50 = vadd.f32 %v7917_v46, %v7916_v25  ;;  %v4375_v41 = vpop.eup %4374  ;;  %v6770_v0 = vmul.f32 %v3035_v18, %v6603_v53  ;;  %v2634_v56 = vmul.f32 0.7978846, %v2506_v61  ;;  %v6776_v63 = vadd.f32 %v7919_v15, %v7856_v48  ;;  %v6781_v14 = vld [vmem:[%s7582_s6 + $0x8] sm:$0xff]   ;;  %7921 = vst [vmem:[#allocation76_spill] sm:$0xff] %v6792_v35 }
 0x648   : > { %v2129_v6 = vmul.f32 %v6760_v26, %v6760_v26  ;;  %v2915_v30 = vadd.f32 1.0, %v4375_v41  ;;  %v2668_v34 = vmul.f32 0.7978846, %v2540_v13  ;;  %v3198_v44 = vpack.c.bf16 %v3074_v40, %v3066_v5  ;;  %v7920_v46 = vld [vmem:[#allocation109_spill] sm:$0xff]  ;;  %v6799_v13 = vpop.f32.mrb[100].mxu0 }
 0x649   : > { %7918 = vst [vmem:[#allocation68_spill] sm:$0xff] %v6770_v0  ;;  %v2163_v53 = vmul.f32 %v6767_v50, %v6767_v50  ;;  %v3009_v18 = vmul.f32 0.5, %v2881_v58  ;;  %v2130_v21 = vmul.f32 %v6776_v63, %v6776_v63  ;;  %v6790_v15 = vadd.f32 %v7920_v46, %v7916_v25  ;;  %7923 = vst [vmem:[#allocation93_spill] sm:$0xff] %v6799_v13 }
 0x64a   : > { %v2257_v61 = vmul.f32 %v2129_v6, %v6760_v26  ;;  %v6794_v0 = vpop.eup %4376  ;;  %v3043_v41 = vmul.f32 0.5, %v2915_v30  ;;  %4386 = vtanh.f32 %v2634_v56  ;;  %3324 = vmatprep.subr.bf16.mxu1 %v3198_v44  ;;  %v3197_v58 = vpack.c.bf16 %v6360_v16, %v6338_v42  ;;  %v7924_v42 = vld [vmem:[#allocation107_spill] sm:$0xff] }
 0x64b   : > { %7922 = vst [vmem:[#allocation81_spill] sm:$0xff] %v6794_v0  ;;  %v2291_v40 = vmul.f32 %v2163_v53, %v6767_v50  ;;  %v6801_v5 = vpop.eup %4378  ;;  %v2258_v46 = vmul.f32 %v2130_v21, %v6776_v63  ;;  %v2164_v35 = vmul.f32 %v6790_v15, %v6790_v15  ;;  %v2826_v0 = vadd.f32 1.0, %v6423_v33  ;;  %3314 = vmatmul.mubr.bf16.gmra.mrb[64].mxu1 %v6781_v14 }
 0x64c   : > { %v2385_v6 = vmul.f32 0.044715, %v2257_v61  ;;  %4388 = vtanh.f32 %v2668_v34  ;;  %3325 = vmatpush1.bf16.msra.mxu1 %v3197_v58  ;;  %v2834_v30 = vadd.f32 1.0, %v6473_v32  ;;  %v6811_v16 = vadd.f32 %v7924_v42, %v7872_v2  ;;  %3356 = vmatprep.mubr.bf16.mxu1 %v7913_v51  ;;  %v6823_v42 = vpop.f32.mrb[101].mxu0 }
 0x64d   : > { %v2419_v56 = vmul.f32 0.044715, %v2291_v40  ;;  %v6814_v44 = vpop.eup %4380  ;;  %v2386_v61 = vmul.f32 0.044715, %v2258_v46  ;;  %v2292_v33 = vmul.f32 %v2164_v35, %v6790_v15  ;;  %v2954_v21 = vmul.f32 0.5, %v2826_v0  ;;  %v6826_v35 = vpop.f32.mrb[102].mxu0 }
 0x64e   : > { %7925 = vst [vmem:[#allocation47_spill] sm:$0xff] %v6814_v44  ;;  %v2513_v53 = vadd.f32 %v2385_v6, %v6760_v26  ;;  %v4383_v13 = vpop.eup %4382  ;;  %v2962_v40 = vmul.f32 0.5, %v2834_v30  ;;  %v2137_v32 = vmul.f32 %v6811_v16, %v6811_v16  ;;  %v3205_v58 = vpack.c.bf16 %v6469_v43, %v6452_v60 }
 0x64f   : > { %v2547_v34 = vadd.f32 %v2419_v56, %v6767_v50  ;;  %v4385_v52 = vpop.eup %4384  ;;  %v2889_v44 = vadd.f32 1.0, %v4383_v13  ;;  %v2514_v6 = vadd.f32 %v2386_v61, %v6776_v63  ;;  %v2420_v46 = vmul.f32 0.044715, %v2292_v33 }
 0x650   : > { %v2641_v4 = vmul.f32 0.7978846, %v2513_v53  ;;  %v2923_v0 = vadd.f32 1.0, %v4385_v52  ;;  %v3082_v56 = vmul.f32 %v2954_v21, %v6287_v37  ;;  %v3090_v30 = vmul.f32 %v2962_v40, %v6342_v31  ;;  %v7926_v31 = vld [vmem:[#allocation111_spill] sm:$0xff] }
 0x651   : > { %v2675_v49 = vmul.f32 0.7978846, %v2547_v34  ;;  %v3017_v62 = vmul.f32 0.5, %v2889_v44  ;;  %v2642_v48 = vmul.f32 0.7978846, %v2514_v6  ;;  %v2548_v60 = vadd.f32 %v2420_v46, %v6790_v15 }
 0x652   : > { %4390 = vtanh.f32 %v2641_v4  ;;  %v6832_v43 = vmul.f32 %v3009_v18, %v6629_v23  ;;  %v3206_v13 = vpack.c.bf16 %v3090_v30, %v3082_v56  ;;  %v2265_v53 = vmul.f32 %v2137_v32, %v6811_v16  ;;  %v6873_v56 = vpop.f32.mrb[103].mxu0 }
 0x653   : > { %4392 = vtanh.f32 %v2675_v49  ;;  %v6836_v61 = vmul.f32 %v3043_v41, %v6637_v9  ;;  %v6839_v52 = vmul.f32 %v3017_v62, %v6692_v1  ;;  %v3051_v37 = vmul.f32 0.5, %v2923_v0  ;;  %v7927_v49 = vld [vmem:[#allocation112_spill] sm:$0xff]  ;;  %v7928_v9 = vld [vmem:[#allocation51_spill] sm:$0xff] }
 0x654   : > { %v6843_v4 = vadd.f32 %v7926_v31, %v7872_v2  ;;  %v6845_v44 = vpop.eup %4386  ;;  %4394 = vtanh.f32 %v2642_v48  ;;  %3326 = vmatprep.subr.bf16.mxu1 %v3206_v13  ;;  %v2393_v23 = vmul.f32 0.044715, %v2265_v53  ;;  %v6849_v18 = vadd.f32 %v7927_v49, %v7882_v10  ;;  %v7930_v53 = vld [vmem:[#allocation63_spill] sm:$0xff] }
 0x655   : > { %v6853_v41 = vadd.f32 %v7928_v9, %v7882_v10  ;;  %v2676_v1 = vmul.f32 0.7978846, %v2548_v60  ;;  %3327 = vmatpush1.bf16.msra.mxu1 %v3205_v58  ;;  %v2842_v33 = vadd.f32 1.0, %v6521_v45  ;;  %v2850_v21 = vadd.f32 1.0, %v6577_v20  ;;  %v7929_v45 = vld [vmem:[#allocation60_spill] sm:$0xff] }
 0x656   : > { %v2138_v62 = vmul.f32 %v6843_v4, %v6843_v4  ;;  %v6859_v48 = vpop.eup %4388  ;;  %v2521_v34 = vadd.f32 %v2393_v23, %v6811_v16  ;;  %v2145_v40 = vmul.f32 %v6849_v18, %v6849_v18  ;;  %v3213_v58 = vpack.c.bf16 %v6569_v47, %v6535_v29 }
 0x657   : > { %v2146_v32 = vmul.f32 %v6853_v41, %v6853_v41  ;;  %v2970_v46 = vmul.f32 0.5, %v2842_v33  ;;  %v2978_v0 = vmul.f32 0.5, %v2850_v21  ;;  %v6871_v20 = vadd.f32 %v7929_v45, %v7899_v3 }
 0x658   : > { %v2266_v6 = vmul.f32 %v2138_v62, %v6843_v4  ;;  %v2649_v30 = vmul.f32 0.7978846, %v2521_v34  ;;  %v2273_v60 = vmul.f32 %v2145_v40, %v6849_v18  ;;  %v6879_v31 = vadd.f32 %v7930_v53, %v7899_v3 }
 0x659   : > { %v2274_v13 = vmul.f32 %v2146_v32, %v6853_v41  ;;  %v3098_v47 = vmul.f32 %v2970_v46, %v6386_v19  ;;  %v3106_v23 = vmul.f32 %v2978_v0, %v6447_v27  ;;  %v2153_v49 = vmul.f32 %v6871_v20, %v6871_v20 }
 0x65a   : > { %v2394_v29 = vmul.f32 0.044715, %v2266_v6  ;;  %4396 = vtanh.f32 %v2649_v30  ;;  %v2401_v9 = vmul.f32 0.044715, %v2273_v60  ;;  %v2154_v33 = vmul.f32 %v6879_v31, %v6879_v31  ;;  %v7931_v6 = vld [vmem:[#allocation64_spill] sm:$0xff] }
 0x65b   : > { %v2402_v62 = vmul.f32 0.044715, %v2274_v13  ;;  %v3214_v40 = vpack.c.bf16 %v3106_v23, %v3098_v47  ;;  %v2281_v32 = vmul.f32 %v2153_v49, %v6871_v20  ;;  %v6891_v19 = vadd.f32 %v7931_v6, %v7916_v25 }
 0x65c   : > { %v4391_v21 = vpop.eup %4390  ;;  %v2522_v34 = vadd.f32 %v2394_v29, %v6843_v4  ;;  %v2529_v0 = vadd.f32 %v2401_v9, %v6849_v18  ;;  %v2282_v30 = vmul.f32 %v2154_v33, %v6879_v31  ;;  %v6901_v23 = vmul.f32 %v3051_v37, %v6696_v12  ;;  %v7932_v9 = vld [vmem:[#allocation41_spill] sm:$0xff] }
 0x65d   : > { %v4393_v27 = vpop.eup %4392  ;;  %v2897_v46 = vadd.f32 1.0, %v4391_v21  ;;  %v2530_v45 = vadd.f32 %v2402_v62, %v6853_v41  ;;  %3328 = vmatprep.subr.bf16.mxu1 %v3214_v40  ;;  %v2409_v53 = vmul.f32 0.044715, %v2281_v32  ;;  %v2161_v29 = vmul.f32 %v6891_v19, %v6891_v19 }
 0x65e   : > { %v2931_v60 = vadd.f32 1.0, %v4393_v27  ;;  %v2650_v13 = vmul.f32 0.7978846, %v2522_v34  ;;  %v6898_v47 = vpop.eup %4394  ;;  %v2657_v21 = vmul.f32 0.7978846, %v2529_v0  ;;  %3329 = vmatpush1.bf16.msra.mxu1 %v3213_v58  ;;  %v6905_v62 = vadd.f32 %v7932_v9, %v7916_v25 }
 0x65f   : > { %v3025_v49 = vmul.f32 0.5, %v2897_v46  ;;  %4398 = vtanh.f32 %v2676_v1  ;;  %v2658_v33 = vmul.f32 0.7978846, %v2530_v45  ;;  %v2537_v34 = vadd.f32 %v2409_v53, %v6871_v20  ;;  %v7933_v53 = vld [vmem:[#allocation26_spill] sm:$0xff] }
 0x660   : > { %v2410_v40 = vmul.f32 0.044715, %v2282_v30  ;;  %v6908_v32 = vmul.f32 0.5, %v2931_v60  ;;  %4400 = vtanh.f32 %v2657_v21  ;;  %v2289_v6 = vmul.f32 %v2161_v29, %v6891_v19 }
 0x661   : > { %v2162_v12 = vmul.f32 %v6905_v62, %v6905_v62  ;;  %v6914_v37 = vmul.f32 %v3025_v49, %v6760_v26  ;;  %4402 = vtanh.f32 %v2650_v13  ;;  %v2665_v58 = vmul.f32 0.7978846, %v2537_v34 }
 0x662   : > { %v2538_v27 = vadd.f32 %v2410_v40, %v6879_v31  ;;  %v2417_v1 = vmul.f32 0.044715, %v2289_v6  ;;  %v2858_v0 = vadd.f32 1.0, %v6618_v36  ;;  %v2866_v45 = vadd.f32 1.0, %v6655_v57  ;;  %v7934_v40 = vld [vmem:[#allocation83_spill] sm:$0xff] }
 0x663   : > { %v2290_v46 = vmul.f32 %v2162_v12, %v6905_v62  ;;  %4404 = vtanh.f32 %v2665_v58  ;;  %v3221_v60 = vpack.c.bf16 %v6669_v59, %v6659_v22  ;;  %v6924_v26 = vadd.f32 %v6344_v55, %v7933_v53  ;;  %v7935_v58 = vld [vmem:[#allocation25_spill] sm:$0xff] }
 0x664   : > { %v2666_v30 = vmul.f32 0.7978846, %v2538_v27  ;;  %v4397_v13 = vpop.eup %4396  ;;  %v2545_v29 = vadd.f32 %v2417_v1, %v6891_v19  ;;  %v2986_v21 = vmul.f32 0.5, %v2858_v0  ;;  %v2994_v9 = vmul.f32 0.5, %v2866_v45  ;;  %v7936_v27 = vld [vmem:[#allocation115_spill] sm:$0xff]  ;;  %v7937_v0 = vld [vmem:[#allocation116_spill] sm:$0xff] }
 0x665   : > { %v2418_v49 = vmul.f32 0.044715, %v2290_v46  ;;  %v2905_v34 = vadd.f32 1.0, %v4397_v13  ;;  %4406 = vtanh.f32 %v2658_v33  ;;  %v2045_v36 = vmul.f32 %v6924_v26, %v6924_v26 }
 0x666   : > { %v6931_v57 = vadd.f32 %v6349_v17, %v7933_v53  ;;  %v2673_v22 = vmul.f32 0.7978846, %v2545_v29  ;;  %v3114_v55 = vmul.f32 %v2986_v21, %v6494_v8  ;;  %v3122_v6 = vmul.f32 %v2994_v9, %v7934_v40 }
 0x667   : > { %v2546_v59 = vadd.f32 %v2418_v49, %v6905_v62  ;;  %4408 = vtanh.f32 %v2666_v30  ;;  %v2173_v12 = vmul.f32 %v2045_v36, %v6924_v26  ;;  %v6941_v1 = vadd.f32 %v7936_v27, %v7935_v58 }
 0x668   : > { %v2046_v33 = vmul.f32 %v6931_v57, %v6931_v57  ;;  %4410 = vtanh.f32 %v2673_v22  ;;  %v3222_v46 = vpack.c.bf16 %v3122_v6, %v3114_v55  ;;  %v6945_v45 = vadd.f32 %v7937_v0, %v7935_v58 }
 0x669   : > { %v2674_v17 = vmul.f32 0.7978846, %v2546_v59  ;;  %v6947_v8 = vpop.eup %4398  ;;  %v3033_v53 = vmul.f32 0.5, %v2905_v34  ;;  %v2301_v30 = vmul.f32 0.044715, %v2173_v12  ;;  %v2053_v29 = vmul.f32 %v6941_v1, %v6941_v1 }
 0x66a   : > { %7938 = vst [vmem:[#allocation106_spill] sm:$0xff] %v6945_v45  ;;  %v2174_v13 = vmul.f32 %v2046_v33, %v6931_v57  ;;  %v4401_v49 = vpop.eup %4400  ;;  %3330 = vmatprep.subr.bf16.mxu1 %v3222_v46  ;;  %v2054_v21 = vmul.f32 %v6945_v45, %v6945_v45  ;;  %v2874_v9 = vadd.f32 1.0, %v6735_v28  ;;  %v2882_v36 = vadd.f32 1.0, %v6801_v5 }
 0x66b   : > { %4412 = vtanh.f32 %v2674_v17  ;;  %v6956_v22 = vpop.eup %4402  ;;  %v2913_v59 = vadd.f32 1.0, %v4401_v49  ;;  %3331 = vmatpush1.bf16.msra.mxu1 %v3221_v60  ;;  %v2429_v34 = vadd.f32 %v2301_v30, %v6924_v26  ;;  %v2181_v40 = vmul.f32 %v2053_v29, %v6941_v1  ;;  %v7939_v49 = vld [vmem:[#allocation46_spill] sm:$0xff] }
 0x66c   : > { %v2302_v55 = vmul.f32 0.044715, %v2174_v13  ;;  %v2182_v6 = vmul.f32 %v2054_v21, %v6945_v45  ;;  %v3002_v12 = vmul.f32 0.5, %v2874_v9  ;;  %v3010_v33 = vmul.f32 0.5, %v2882_v36 }
 0x66d   : > { %v3229_v58 = vpack.c.bf16 %v6832_v43, %v6744_v7  ;;  %v4405_v27 = vpop.eup %4404  ;;  %v3041_v28 = vmul.f32 0.5, %v2913_v59  ;;  %v2557_v17 = vmul.f32 0.7978846, %v2429_v34  ;;  %v2309_v46 = vmul.f32 0.044715, %v2181_v40  ;;  %v7940_v34 = vld [vmem:[#allocation28_spill] sm:$0xff] }
 0x66e   : > { %v2430_v5 = vadd.f32 %v2302_v55, %v6931_v57  ;;  %v2921_v0 = vadd.f32 1.0, %v4405_v27  ;;  %v2310_v60 = vmul.f32 0.044715, %v2182_v6  ;;  %v3130_v30 = vmul.f32 %v3002_v12, %v7939_v49  ;;  %v7941_v55 = vld [vmem:[#allocation72_spill] sm:$0xff] }
 0x66f   : > { %v3138_v13 = vmul.f32 %v3010_v33, %v6674_v24  ;;  %v6966_v29 = vpop.eup %4406  ;;  %v6970_v21 = vmul.f32 %v6908_v32, %v6767_v50  ;;  %v6973_v7 = vmul.f32 %v3033_v53, %v6811_v16  ;;  %4414 = vtanh.f32 %v2557_v17  ;;  %v7942_v16 = vld [vmem:[#allocation67_spill] sm:$0xff]  ;;  %v7945_v12 = vld [vmem:[#allocation48_spill] sm:$0xff] }
 0x670   : > { %v2437_v43 = vadd.f32 %v2309_v46, %v6941_v1  ;;  %v2558_v9 = vmul.f32 0.7978846, %v2430_v5  ;;  %v2438_v36 = vadd.f32 %v2310_v60, %v6945_v45  ;;  %v6979_v40 = vadd.f32 %v7941_v55, %v7940_v34  ;;  %v7944_v53 = vld [vmem:[#allocation27_spill] sm:$0xff]  ;;  %v7946_v60 = vld [vmem:[#allocation57_spill] sm:$0xff] }
 0x671   : > { %v3230_v59 = vpack.c.bf16 %v3138_v13, %v3130_v30  ;;  %v6981_v24 = vpop.eup %4408  ;;  %v6984_v6 = vmul.f32 %v3041_v28, %v6849_v18  ;;  %v6988_v32 = vadd.f32 %v7942_v16, %v7940_v34  ;;  %v6992_v33 = vadd.f32 %v7945_v12, %v7944_v53 }
 0x672   : > { %v2565_v50 = vmul.f32 0.7978846, %v2437_v43  ;;  %v4411_v27 = vpop.eup %4410  ;;  %v3049_v17 = vmul.f32 0.5, %v2921_v0  ;;  %v2566_v5 = vmul.f32 0.7978846, %v2438_v36  ;;  %v2061_v46 = vmul.f32 %v6979_v40, %v6979_v40 }
 0x673   : > { %7943 = vst [vmem:[#allocation75_spill] sm:$0xff] %v6988_v32  ;;  %3332 = vmatprep.subr.bf16.mxu1 %v3230_v59  ;;  %v6998_v18 = vadd.f32 %v7946_v60, %v7944_v53  ;;  %v2929_v28 = vadd.f32 1.0, %v4411_v27  ;;  %v2062_v49 = vmul.f32 %v6988_v32, %v6988_v32  ;;  %v2069_v30 = vmul.f32 %v6992_v33, %v6992_v33 }
 0x674   : > { %4416 = vtanh.f32 %v2565_v50  ;;  %3333 = vmatpush1.bf16.msra.mxu1 %v3229_v58  ;;  %v2189_v0 = vmul.f32 %v2061_v46, %v6979_v40  ;;  %v2890_v36 = vadd.f32 1.0, %v6845_v44  ;;  %v2898_v34 = vadd.f32 1.0, %v6898_v47 }
 0x675   : > { %7947 = vst [vmem:[#allocation85_spill] sm:$0xff] %v6998_v18  ;;  %v7004_v13 = vpop.eup %4412  ;;  %4418 = vtanh.f32 %v2558_v9  ;;  %v2070_v43 = vmul.f32 %v6998_v18, %v6998_v18  ;;  %v2190_v59 = vmul.f32 %v2062_v49, %v6988_v32  ;;  %v2197_v58 = vmul.f32 %v2069_v30, %v6992_v33  ;;  %v7948_v49 = vld [vmem:[#allocation30_spill] sm:$0xff]  ;;  %v7949_v30 = vld [vmem:[#allocation117_spill] sm:$0xff] }
 0x676   : > { %4420 = vtanh.f32 %v2566_v5  ;;  %v2317_v55 = vmul.f32 0.044715, %v2189_v0  ;;  %v3018_v16 = vmul.f32 0.5, %v2890_v36  ;;  %v3237_v9 = vpack.c.bf16 %v6914_v37, %v6839_v52  ;;  %v7950_v37 = vld [vmem:[#allocation118_spill] sm:$0xff] }
 0x677   : > { %v2198_v50 = vmul.f32 %v2070_v43, %v6998_v18  ;;  %v3057_v53 = vmul.f32 0.5, %v2929_v28  ;;  %v2318_v12 = vmul.f32 0.044715, %v2190_v59  ;;  %v2325_v27 = vmul.f32 0.044715, %v2197_v58 }
 0x678   : > { %v3026_v46 = vmul.f32 0.5, %v2898_v34  ;;  %v2445_v44 = vadd.f32 %v2317_v55, %v6979_v40  ;;  %v3146_v60 = vmul.f32 %v3018_v16, %v6718_v39  ;;  %v7020_v45 = vadd.f32 %v7949_v30, %v7948_v49 }
 0x679   : > { %v2326_v5 = vmul.f32 0.044715, %v2198_v50  ;;  %v4415_v47 = vpop.eup %4414  ;;  %v2446_v0 = vadd.f32 %v2318_v12, %v6988_v32  ;;  %v2453_v43 = vadd.f32 %v2325_v27, %v6992_v33  ;;  %v7027_v28 = vadd.f32 %v7950_v37, %v7948_v49  ;;  %v7953_v49 = vld [vmem:[#allocation74_spill] sm:$0xff] }
 0x67a   : > { %v3154_v52 = vmul.f32 %v3026_v46, %v6776_v63  ;;  %v2813_v36 = vadd.f32 1.0, %v4415_v47  ;;  %v2573_v59 = vmul.f32 0.7978846, %v2445_v44  ;;  %v2077_v39 = vmul.f32 %v7020_v45, %v7020_v45 }
 0x67b   : > { %7951 = vst [vmem:[#allocation50_spill] sm:$0xff] %v7027_v28  ;;  %v2454_v58 = vadd.f32 %v2326_v5, %v6998_v18  ;;  %v2574_v34 = vmul.f32 0.7978846, %v2446_v0  ;;  %v2581_v55 = vmul.f32 0.7978846, %v2453_v43  ;;  %v2078_v16 = vmul.f32 %v7027_v28, %v7027_v28  ;;  %v7952_v5 = vld [vmem:[#allocation29_spill] sm:$0xff] }
 0x67c   : > { %v3238_v50 = vpack.c.bf16 %v3154_v52, %v3146_v60  ;;  %v7035_v12 = vmul.f32 %v3049_v17, %v6871_v20  ;;  %v2941_v63 = vmul.f32 0.5, %v2813_v36  ;;  %4422 = vtanh.f32 %v2573_v59  ;;  %v7954_v60 = vld [vmem:[#allocation119_spill] sm:$0xff] }
 0x67d   : > { %v2205_v27 = vmul.f32 %v2077_v39, %v7020_v45  ;;  %4424 = vtanh.f32 %v2574_v34  ;;  %v2206_v44 = vmul.f32 %v2078_v16, %v7027_v28  ;;  %v7041_v30 = vadd.f32 %v7953_v49, %v7952_v5  ;;  %v7956_v49 = vld [vmem:[#allocation32_spill] sm:$0xff] }
 0x67e   : > { %v4417_v46 = vpop.eup %4416  ;;  %3334 = vmatprep.subr.bf16.mxu1 %v3238_v50  ;;  %v7045_v47 = vadd.f32 %v7954_v60, %v7952_v5  ;;  %v7050_v20 = vmul.f32 %v3057_v53, %v6891_v19  ;;  %4426 = vtanh.f32 %v2581_v55  ;;  %v2582_v17 = vmul.f32 0.7978846, %v2454_v58 }
 0x67f   : > { %v7047_v0 = vpop.eup %4418  ;;  %3335 = vmatpush1.bf16.msra.mxu1 %v3237_v9  ;;  %v2333_v43 = vmul.f32 0.044715, %v2205_v27  ;;  %v2821_v37 = vadd.f32 1.0, %v4417_v46  ;;  %v2334_v36 = vmul.f32 0.044715, %v2206_v44  ;;  %v2085_v59 = vmul.f32 %v7041_v30, %v7041_v30 }
 0x680   : > { %7955 = vst [vmem:[#allocation58_spill] sm:$0xff] %v7045_v47  ;;  %v7052_v52 = vpop.eup %4420  ;;  %v2086_v39 = vmul.f32 %v7045_v47, %v7045_v47  ;;  %v7059_v34 = vmul.f32 %v2941_v63, %v6924_v26  ;;  %v2906_v53 = vadd.f32 1.0, %v6956_v22  ;;  %v2914_v9 = vadd.f32 1.0, %v6966_v29  ;;  %v7957_v22 = vld [vmem:[#allocation77_spill] sm:$0xff] }
 0x681   : > { %v2461_v19 = vadd.f32 %v2333_v43, %v7020_v45  ;;  %v2462_v58 = vadd.f32 %v2334_v36, %v7027_v28  ;;  %v2213_v55 = vmul.f32 %v2085_v59, %v7041_v30  ;;  %v3245_v16 = vpack.c.bf16 %v6984_v6, %v6973_v7  ;;  %v7958_v36 = vld [vmem:[#allocation36_spill] sm:$0xff] }
 0x682   : > { %v2214_v50 = vmul.f32 %v2086_v39, %v7045_v47  ;;  %4428 = vtanh.f32 %v2582_v17  ;;  %v3034_v46 = vmul.f32 0.5, %v2906_v53  ;;  %v3042_v26 = vmul.f32 0.5, %v2914_v9  ;;  %v7961_v9 = vld [vmem:[#allocation61_spill] sm:$0xff] }
 0x683   : > { %v2589_v27 = vmul.f32 0.7978846, %v2461_v19  ;;  %v2949_v63 = vmul.f32 0.5, %v2821_v37  ;;  %v2341_v44 = vmul.f32 0.044715, %v2213_v55  ;;  %v7071_v60 = vadd.f32 %v7957_v22, %v7956_v49  ;;  %v7962_v55 = vld [vmem:[#allocation69_spill] sm:$0xff] }
 0x684   : > { %v2342_v5 = vmul.f32 0.044715, %v2214_v50  ;;  %v3162_v29 = vmul.f32 %v3034_v46, %v6843_v4  ;;  %v3170_v43 = vmul.f32 %v3042_v26, %v6853_v41  ;;  %v7077_v59 = vadd.f32 %v7958_v36, %v7956_v49  ;;  %v7960_v4 = vld [vmem:[#allocation31_spill] sm:$0xff] }
 0x685   : > { %4430 = vtanh.f32 %v2589_v27  ;;  %v2590_v7 = vmul.f32 0.7978846, %v2462_v58  ;;  %v2469_v6 = vadd.f32 %v2341_v44, %v7041_v30  ;;  %v2093_v37 = vmul.f32 %v7071_v60, %v7071_v60 }
 0x686   : > { %7959 = vst [vmem:[#allocation95_spill] sm:$0xff] %v7077_v59  ;;  %v2470_v17 = vadd.f32 %v2342_v5, %v7045_v47  ;;  %v4423_v39 = vpop.eup %4422  ;;  %v3246_v19 = vpack.c.bf16 %v3170_v43, %v3162_v29  ;;  %v2094_v53 = vmul.f32 %v7077_v59, %v7077_v59  ;;  %v7087_v41 = vadd.f32 %v7961_v9, %v7960_v4 }
 0x687   : > { %v7091_v50 = vadd.f32 %v7962_v55, %v7960_v4  ;;  %v7093_v58 = vpop.eup %4424  ;;  %v7096_v27 = vmul.f32 %v2949_v63, %v6941_v1  ;;  %v2829_v46 = vadd.f32 1.0, %v4423_v39  ;;  %v2597_v26 = vmul.f32 0.7978846, %v2469_v6 }
 0x688   : > { %v2221_v44 = vmul.f32 %v2093_v37, %v7071_v60  ;;  %v4427_v5 = vpop.eup %4426  ;;  %3336 = vmatprep.subr.bf16.mxu1 %v3246_v19  ;;  %v2222_v49 = vmul.f32 %v2094_v53, %v7077_v59  ;;  %v2101_v22 = vmul.f32 %v7087_v41, %v7087_v41  ;;  %v2922_v43 = vadd.f32 1.0, %v6981_v24 }
 0x689   : > { %7963 = vst [vmem:[#allocation97_spill] sm:$0xff] %v7091_v50  ;;  %v2102_v29 = vmul.f32 %v7091_v50, %v7091_v50  ;;  %v2837_v36 = vadd.f32 1.0, %v4427_v5  ;;  %4432 = vtanh.f32 %v2597_v26  ;;  %v2598_v1 = vmul.f32 0.7978846, %v2470_v17  ;;  %3337 = vmatpush1.bf16.msra.mxu1 %v3245_v16 }
 0x68a   : > { %v2349_v63 = vmul.f32 0.044715, %v2221_v44  ;;  %4434 = vtanh.f32 %v2590_v7  ;;  %v2350_v6 = vmul.f32 0.044715, %v2222_v49  ;;  %v2229_v37 = vmul.f32 %v2101_v22, %v7087_v41 }
 0x68b   : > { %v2230_v39 = vmul.f32 %v2102_v29, %v7091_v50  ;;  %v2957_v19 = vmul.f32 0.5, %v2829_v46  ;;  %v2965_v53 = vmul.f32 0.5, %v2837_v36  ;;  %v2930_v9 = vadd.f32 1.0, %v7004_v13 }
 0x68c   : > { %v2477_v4 = vadd.f32 %v2349_v63, %v7071_v60  ;;  %v7109_v55 = vpop.eup %4428  ;;  %v2478_v24 = vadd.f32 %v2350_v6, %v7077_v59  ;;  %v2357_v26 = vmul.f32 0.044715, %v2229_v37  ;;  %v3050_v16 = vmul.f32 0.5, %v2922_v43  ;;  %v7964_v6 = vld [vmem:[#allocation88_spill] sm:$0xff] }
 0x68d   : > { %v2358_v17 = vmul.f32 0.044715, %v2230_v39  ;;  %4436 = vtanh.f32 %v2598_v1  ;;  %v3058_v44 = vmul.f32 0.5, %v2930_v9  ;;  %v3253_v5 = vpack.c.bf16 %v7050_v20, %v7035_v12  ;;  %v7965_v20 = vld [vmem:[#allocation96_spill] sm:$0xff] }
 0x68e   : > { %v2605_v7 = vmul.f32 0.7978846, %v2477_v4  ;;  %v2606_v46 = vmul.f32 0.7978846, %v2478_v24  ;;  %v2485_v22 = vadd.f32 %v2357_v26, %v7087_v41  ;;  %v3178_v13 = vmul.f32 %v3050_v16, %v6879_v31  ;;  %v7966_v26 = vld [vmem:[#allocation34_spill] sm:$0xff]  ;;  %v7967_v31 = vld [vmem:[#allocation125_spill] sm:$0xff] }
 0x68f   : > { %v4431_v49 = vpop.eup %4430  ;;  %v2486_v29 = vadd.f32 %v2358_v17, %v7091_v50  ;;  %v3186_v63 = vmul.f32 %v3058_v44, %v6905_v62  ;;  %v2812_v43 = vadd.f32 1.0, %v7964_v6  ;;  %v7120_v1 = vmul.f32 %v2957_v19, %v6979_v40  ;;  %v7968_v16 = vld [vmem:[#allocation98_spill] sm:$0xff]  ;;  %v7970_v40 = vld [vmem:[#allocation37_spill] sm:$0xff] }
 0x690   : > { %v2845_v36 = vadd.f32 1.0, %v4431_v49  ;;  %4438 = vtanh.f32 %v2605_v7  ;;  %v7123_v37 = vmul.f32 %v2965_v53, %v6992_v33  ;;  %v2613_v12 = vmul.f32 0.7978846, %v2485_v22  ;;  %v7969_v7 = vld [vmem:[#allocation99_spill] sm:$0xff]  ;;  %v7972_v49 = vld [vmem:[#allocation62_spill] sm:$0xff] }
 0x691   : > { %v2820_v39 = vadd.f32 1.0, %v7965_v20  ;;  %v2614_v4 = vmul.f32 0.7978846, %v2486_v29  ;;  %v3254_v9 = vpack.c.bf16 %v3186_v63, %v3178_v13  ;;  %v2940_v24 = vmul.f32 0.5, %v2812_v43  ;;  %v7973_v6 = vld [vmem:[#allocation70_spill] sm:$0xff] }
 0x692   : > { %v7128_v17 = vadd.f32 %v7967_v31, %v7966_v26  ;;  %4440 = vtanh.f32 %v2613_v12  ;;  %v3199_v44 = vpack.c.bf16 %v7969_v7, %v7968_v16  ;;  %v7134_v19 = vadd.f32 %v7970_v40, %v7966_v26  ;;  %v7974_v20 = vld [vmem:[#allocation102_spill] sm:$0xff]  ;;  %v7976_v26 = vld [vmem:[#allocation33_spill] sm:$0xff]  ;;  %v7978_v16 = vld [vmem:[#allocation39_spill] sm:$0xff] }
 0x693   : > { %v2948_v62 = vmul.f32 0.5, %v2820_v39  ;;  %v4433_v33 = vpop.eup %4432  ;;  %v2973_v53 = vmul.f32 0.5, %v2845_v36  ;;  %4442 = vtanh.f32 %v2606_v46  ;;  %3338 = vmatprep.subr.bf16.mxu1 %v3254_v9  ;;  %v3068_v22 = vmul.f32 %v2940_v24, %v7972_v49  ;;  %v7975_v46 = vld [vmem:[#allocation110_spill] sm:$0xff] }
 0x694   : > { %7971 = vst [vmem:[#allocation100_spill] sm:$0xff] %v7134_v19  ;;  %v2109_v29 = vmul.f32 %v7128_v17, %v7128_v17  ;;  %v7139_v13 = vpop.eup %4434  ;;  %v2853_v63 = vadd.f32 1.0, %v4433_v33  ;;  %3339 = vmatpush1.bf16.msra.mxu1 %v3253_v5  ;;  %v2110_v12 = vmul.f32 %v7134_v19, %v7134_v19  ;;  %v2828_v39 = vadd.f32 1.0, %v7974_v20  ;;  %v7977_v24 = vld [vmem:[#allocation38_spill] sm:$0xff] }
 0x695   : > { %v3076_v43 = vmul.f32 %v2948_v62, %v7973_v6  ;;  %v2836_v9 = vadd.f32 1.0, %v7975_v46  ;;  %v7149_v31 = vadd.f32 %v7977_v24, %v7976_v26  ;;  %v7153_v7 = vadd.f32 %v7978_v16, %v7976_v26 }
 0x696   : > { %v2237_v36 = vmul.f32 %v2109_v29, %v7128_v17  ;;  %4444 = vtanh.f32 %v2614_v4  ;;  %v2238_v62 = vmul.f32 %v2110_v12, %v7134_v19  ;;  %v2956_v40 = vmul.f32 0.5, %v2828_v39  ;;  %v7980_v4 = vld [vmem:[#allocation82_spill] sm:$0xff]  ;;  %v7982_v12 = vld [vmem:[#allocation59_spill] sm:$0xff] }
 0x697   : > { %7979 = vst [vmem:[#allocation52_spill] sm:$0xff] %v7153_v7  ;;  %v3200_v5 = vpack.c.bf16 %v3076_v43, %v3068_v22  ;;  %v7156_v33 = vpop.eup %4436  ;;  %3357 = vmatmul.mubr.bf16.vlgmr.msra.gmra.mrb[60].mxu1 %v6733_v38  ;;  %v2964_v29 = vmul.f32 0.5, %v2836_v9  ;;  %v2117_v6 = vmul.f32 %v7149_v31, %v7149_v31  ;;  %v2118_v20 = vmul.f32 %v7153_v7, %v7153_v7  ;;  %v7981_v43 = vld [vmem:[#allocation113_spill] sm:$0xff]  ;;  %v7983_v9 = vld [vmem:[#allocation90_spill] sm:$0xff] }
 0x698   : > { %v2365_v49 = vmul.f32 0.044715, %v2237_v36  ;;  %v2981_v46 = vmul.f32 0.5, %v2853_v63  ;;  %v2366_v26 = vmul.f32 0.044715, %v2238_v62  ;;  %v3084_v22 = vmul.f32 %v2956_v40, %v7980_v4  ;;  %3366 = vmatprep.mubr.bf16.mxu1 %v7913_v51  ;;  %v7984_v62 = vld [vmem:[#allocation43_spill] sm:$0xff] }
 0x699   : > { %3377 = vmatprep.subr.bf16.mxu1 %v3200_v5  ;;  %v3207_v39 = vpack.c.bf16 %v7982_v12, %v7981_v43  ;;  %v3092_v24 = vmul.f32 %v2964_v29, %v7983_v9  ;;  %v2245_v16 = vmul.f32 %v2117_v6, %v7149_v31  ;;  %v2246_v50 = vmul.f32 %v2118_v20, %v7153_v7  ;;  %v7985_v4 = vld [vmem:[#allocation78_spill] sm:$0xff] }
 0x69a   : > { %v4439_v36 = vpop.eup %4438  ;;  %v2493_v38 = vadd.f32 %v2365_v49, %v7128_v17  ;;  %3378 = vmatpush1.bf16.msra.mxu1 %v3199_v44  ;;  %v2494_v5 = vadd.f32 %v2366_v26, %v7134_v19  ;;  %v2844_v40 = vadd.f32 1.0, %v7984_v62  ;;  %v2852_v59 = vadd.f32 1.0, %v7985_v4 }
 0x69b   : > { %v2861_v63 = vadd.f32 1.0, %v4439_v36  ;;  %v3208_v12 = vpack.c.bf16 %v3092_v24, %v3084_v22  ;;  %v2373_v47 = vmul.f32 0.044715, %v2245_v16  ;;  %v2374_v28 = vmul.f32 0.044715, %v2246_v50  ;;  %v7986_v22 = vld [vmem:[#allocation101_spill] sm:$0xff] }
 0x69c   : > { %v2621_v43 = vmul.f32 0.7978846, %v2493_v38  ;;  %v4441_v18 = vpop.eup %4440  ;;  %v2622_v44 = vmul.f32 0.7978846, %v2494_v5  ;;  %v2972_v32 = vmul.f32 0.5, %v2844_v40  ;;  %v2980_v29 = vmul.f32 0.5, %v2852_v59 }
 0x69d   : > { %v2989_v49 = vmul.f32 0.5, %v2861_v63  ;;  %v7174_v9 = vpop.eup %4442  ;;  %v7177_v6 = vmul.f32 %v2973_v53, %v7020_v45  ;;  %v2869_v20 = vadd.f32 1.0, %v4441_v18  ;;  %3379 = vmatprep.subr.bf16.mxu1 %v3208_v12  ;;  %v2501_v26 = vadd.f32 %v2373_v47, %v7149_v31  ;;  %v7987_v24 = vld [vmem:[#allocation104_spill] sm:$0xff]  ;;  %v7988_v18 = vld [vmem:[#allocation54_spill] sm:$0xff] }
 0x69e   : > { %4446 = vtanh.f32 %v2621_v43  ;;  %v7181_v36 = vmul.f32 %v2981_v46, %v7041_v30  ;;  %v2502_v50 = vadd.f32 %v2374_v28, %v7153_v7  ;;  %3380 = vmatpush1.bf16.msra.mxu1 %v3207_v39  ;;  %v3100_v38 = vmul.f32 %v2972_v32, %v7986_v22  ;;  %v7989_v28 = vld [vmem:[#allocation65_spill] sm:$0xff]  ;;  %v7998_v22 = vld [vmem:[#allocation120_spill] sm:$0xff] }
 0x69f   : > { %v3108_v59 = vmul.f32 %v2980_v29, %v7987_v24  ;;  %v7187_v16 = vmul.f32 %v2989_v49, %v7071_v60  ;;  %4448 = vtanh.f32 %v2622_v44  ;;  %v2629_v45 = vmul.f32 0.7978846, %v2501_v26  ;;  %3367 = vmatmul.mubr.bf16.gmra.mrb[64].mxu1 %v6781_v14  ;;  %v7990_v46 = vld [vmem:[#allocation73_spill] sm:$0xff]  ;;  %v7993_v14 = vld [vmem:[#allocation80_spill] sm:$0xff]  ;;  %v7994_v49 = vld [vmem:[#allocation35_spill] sm:$0xff] }
 0x6a0   : > { %v7191_v53 = vadd.f32 %v7988_v18, %v7843_v54  ;;  %v7194_v30 = vpop.eup %4444  ;;  %v3215_v39 = vpack.c.bf16 %v7990_v46, %v7989_v28  ;;  %v7200_v32 = vadd.f32 %v6706_v11, %v7843_v54  ;;  %v7992_v60 = vld [vmem:[#allocation121_spill] sm:$0xff]  ;;  %3409 = vmatprep.mubr.bf16.mxu1 %v7913_v51  ;;  %v2997_v5 = vmul.f32 0.5, %v2869_v20  ;;  %v7996_v20 = vld [vmem:[#allocation40_spill] sm:$0xff] }
 0x6a1   : > { %v3216_v47 = vpack.c.bf16 %v3108_v59, %v3100_v38  ;;  %v2860_v63 = vadd.f32 1.0, %v7992_v60  ;;  %4450 = vtanh.f32 %v2629_v45  ;;  %v2868_v40 = vadd.f32 1.0, %v7993_v14  ;;  %v7995_v54 = vld [vmem:[#allocation89_spill] sm:$0xff]  ;;  %v7999_v38 = vld [vmem:[#allocation123_spill] sm:$0xff]  ;;  %v8002_v60 = vld [vmem:[#allocation114_spill] sm:$0xff] }
 0x6a2   : > { %7991 = vst [vmem:[#allocation108_spill] sm:$0xff] %v7200_v32  ;;  %v2125_v62 = vmul.f32 %v7191_v53, %v7191_v53  ;;  %v2630_v4 = vmul.f32 0.7978846, %v2502_v50  ;;  %v2126_v43 = vmul.f32 %v7200_v32, %v7200_v32  ;;  %v7211_v11 = vadd.f32 %v7995_v54, %v7994_v49  ;;  %v8000_v59 = vld [vmem:[#allocation55_spill] sm:$0xff] }
 0x6a3   : > { %3381 = vmatprep.subr.bf16.mxu1 %v3216_v47  ;;  %v2988_v12 = vmul.f32 0.5, %v2860_v63  ;;  %v2996_v29 = vmul.f32 0.5, %v2868_v40  ;;  %v7216_v26 = vadd.f32 %v7996_v20, %v7994_v49  ;;  %v3223_v50 = vpack.c.bf16 %v7999_v38, %v7998_v22  ;;  %v8001_v47 = vld [vmem:[#allocation124_spill] sm:$0xff] }
 0x6a4   : > { %v2253_v44 = vmul.f32 %v2125_v62, %v7191_v53  ;;  %3382 = vmatpush1.bf16.msra.mxu1 %v3215_v39  ;;  %v2254_v24 = vmul.f32 %v2126_v43, %v7200_v32  ;;  %v2133_v18 = vmul.f32 %v7211_v11, %v7211_v11  ;;  %v2876_v28 = vadd.f32 1.0, %v8001_v47  ;;  %v8003_v62 = vld [vmem:[#allocation79_spill] sm:$0xff]  ;;  %v8004_v43 = vld [vmem:[#allocation44_spill] sm:$0xff] }
 0x6a5   : > { %7997 = vst [vmem:[#allocation105_spill] sm:$0xff] %v7216_v26  ;;  %v3116_v45 = vmul.f32 %v2988_v12, %v8000_v59  ;;  %v3124_v39 = vmul.f32 %v2996_v29, %v8002_v60  ;;  %v2134_v63 = vmul.f32 %v7216_v26, %v7216_v26  ;;  %v2884_v14 = vadd.f32 1.0, %v8003_v62  ;;  %v8005_v60 = vld [vmem:[#allocation71_spill] sm:$0xff] }
 0x6a6   : > { %v2381_v46 = vmul.f32 0.044715, %v2253_v44  ;;  %v2382_v40 = vmul.f32 0.044715, %v2254_v24  ;;  %v2261_v49 = vmul.f32 %v2133_v18, %v7211_v11  ;;  %v3004_v54 = vmul.f32 0.5, %v2876_v28 }
 0x6a7   : > { %v7232_v12 = vadd.f32 %v8004_v43, %v7872_v2  ;;  %v3224_v38 = vpack.c.bf16 %v3124_v39, %v3116_v45  ;;  %v2262_v44 = vmul.f32 %v2134_v63, %v7216_v26  ;;  %v3012_v29 = vmul.f32 0.5, %v2884_v14  ;;  %v8006_v43 = vld [vmem:[#allocation122_spill] sm:$0xff]  ;;  %v8008_v14 = vld [vmem:[#allocation45_spill] sm:$0xff] }
 0x6a8   : > { %v4447_v20 = vpop.eup %4446  ;;  %v2509_v22 = vadd.f32 %v2381_v46, %v7191_v53  ;;  %4452 = vtanh.f32 %v2630_v4  ;;  %v2510_v59 = vadd.f32 %v2382_v40, %v7200_v32  ;;  %v2389_v47 = vmul.f32 0.044715, %v2261_v49  ;;  %v8007_v4 = vld [vmem:[#allocation94_spill] sm:$0xff] }
 0x6a9   : > { %v3132_v24 = vmul.f32 %v3004_v54, %v8005_v60  ;;  %v7238_v62 = vpop.eup %4448  ;;  %3383 = vmatprep.subr.bf16.mxu1 %v3224_v38  ;;  %v2390_v28 = vmul.f32 0.044715, %v2262_v44  ;;  %v3140_v7 = vmul.f32 %v3012_v29, %v8006_v43  ;;  %v2141_v46 = vmul.f32 %v7232_v12, %v7232_v12  ;;  %v8011_v43 = vld [vmem:[#allocation49_spill] sm:$0xff] }
 0x6aa   : > { %v2637_v18 = vmul.f32 0.7978846, %v2509_v22  ;;  %v2877_v45 = vadd.f32 1.0, %v4447_v20  ;;  %v2638_v39 = vmul.f32 0.7978846, %v2510_v59  ;;  %v2517_v63 = vadd.f32 %v2389_v47, %v7211_v11  ;;  %3384 = vmatpush1.bf16.msra.mxu1 %v3223_v50  ;;  %v8009_v50 = vld [vmem:[#allocation103_spill] sm:$0xff] }
 0x6ab   : > { %v3231_v40 = vpack.c.bf16 %v8008_v14, %v8007_v4  ;;  %v4451_v49 = vpop.eup %4450  ;;  %v2518_v54 = vadd.f32 %v2390_v28, %v7216_v26  ;;  %v3232_v22 = vpack.c.bf16 %v3140_v7, %v3132_v24  ;;  %v2269_v38 = vmul.f32 %v2141_v46, %v7232_v12  ;;  %v8012_v7 = vld [vmem:[#allocation53_spill] sm:$0xff]  ;;  %v8014_v14 = vld [vmem:[#allocation76_spill] sm:$0xff] }
 0x6ac   : > { %4454 = vtanh.f32 %v2637_v18  ;;  %v7249_v44 = vmul.f32 %v2997_v5, %v7087_v41  ;;  %v2885_v29 = vadd.f32 1.0, %v4451_v49  ;;  %v2645_v20 = vmul.f32 0.7978846, %v2517_v63  ;;  %v8013_v41 = vld [vmem:[#allocation56_spill] sm:$0xff] }
 0x6ad   : > { %4456 = vtanh.f32 %v2638_v39  ;;  %v2646_v59 = vmul.f32 0.7978846, %v2518_v54  ;;  %3385 = vmatprep.subr.bf16.mxu1 %v3232_v22  ;;  %v2397_v47 = vmul.f32 0.044715, %v2269_v38  ;;  %v7253_v60 = vadd.f32 %v8009_v50, %v7872_v2  ;;  %v8015_v22 = vld [vmem:[#allocation92_spill] sm:$0xff] }
 0x6ae   : > { %v2892_v18 = vadd.f32 1.0, %v8011_v43  ;;  %v3005_v4 = vmul.f32 0.5, %v2877_v45  ;;  %4458 = vtanh.f32 %v2645_v20  ;;  %3386 = vmatpush1.bf16.msra.mxu1 %v3231_v40  ;;  %v2900_v24 = vadd.f32 1.0, %v8012_v7  ;;  %v8017_v20 = vld [vmem:[#allocation91_spill] sm:$0xff]  ;;  %v8018_v43 = vld [vmem:[#allocation84_spill] sm:$0xff] }
 0x6af   : > { %8010 = vst [vmem:[#allocation109_spill] sm:$0xff] %v7253_v60  ;;  %v7259_v5 = vadd.f32 %v8013_v41, %v7882_v10  ;;  %v3013_v28 = vmul.f32 0.5, %v2885_v29  ;;  %v2525_v46 = vadd.f32 %v2397_v47, %v7232_v12  ;;  %v2142_v39 = vmul.f32 %v7253_v60, %v7253_v60  ;;  %v8016_v29 = vld [vmem:[#allocation87_spill] sm:$0xff] }
 0x6b0   : > { %v3020_v63 = vmul.f32 0.5, %v2892_v18  ;;  %4460 = vtanh.f32 %v2646_v59  ;;  %v3028_v2 = vmul.f32 0.5, %v2900_v24  ;;  %v7268_v40 = vadd.f32 %v8014_v14, %v7882_v10  ;;  %v8019_v24 = vld [vmem:[#allocation81_spill] sm:$0xff] }
 0x6b1   : > { %v2149_v45 = vmul.f32 %v7259_v5, %v7259_v5  ;;  %v2653_v49 = vmul.f32 0.7978846, %v2525_v46  ;;  %v2270_v54 = vmul.f32 %v2142_v39, %v7253_v60  ;;  %v3239_v47 = vpack.c.bf16 %v8017_v20, %v8016_v29  ;;  %v8020_v46 = vld [vmem:[#allocation47_spill] sm:$0xff] }
 0x6b2   : > { %v3148_v38 = vmul.f32 %v3020_v63, %v8015_v22  ;;  %v7274_v50 = vpop.eup %4452  ;;  %v3156_v59 = vmul.f32 %v3028_v2, %v8018_v43  ;;  %v2150_v7 = vmul.f32 %v7268_v40, %v7268_v40  ;;  %v2908_v10 = vadd.f32 1.0, %v8019_v24  ;;  %v8021_v63 = vld [vmem:[#allocation93_spill] sm:$0xff] }
 0x6b3   : > { %v2277_v18 = vmul.f32 %v2149_v45, %v7259_v5  ;;  %4462 = vtanh.f32 %v2653_v49  ;;  %v2398_v41 = vmul.f32 0.044715, %v2270_v54  ;;  %v2916_v39 = vadd.f32 1.0, %v8020_v46  ;;  %v8022_v49 = vld [vmem:[#allocation68_spill] sm:$0xff] }
 0x6b4   : > { %v7284_v14 = vadd.f32 %v8021_v63, %v7899_v3  ;;  %v3240_v22 = vpack.c.bf16 %v3156_v59, %v3148_v38  ;;  %v2278_v20 = vmul.f32 %v2150_v7, %v7268_v40  ;;  %v3036_v2 = vmul.f32 0.5, %v2908_v10  ;;  %v8024_v63 = vld [vmem:[#allocation66_spill] sm:$0xff] }
 0x6b5   : > { %v2405_v29 = vmul.f32 0.044715, %v2277_v18  ;;  %v2526_v45 = vadd.f32 %v2398_v41, %v7253_v60  ;;  %v3044_v26 = vmul.f32 0.5, %v2916_v39  ;;  %v3247_v54 = vpack.c.bf16 %v6836_v61, %v8022_v49  ;;  %v8023_v18 = vld [vmem:[#allocation86_spill] sm:$0xff] }
 0x6b6   : > { %v4455_v43 = vpop.eup %4454  ;;  %v2157_v24 = vmul.f32 %v7284_v14, %v7284_v14  ;;  %3387 = vmatprep.subr.bf16.mxu1 %v3240_v22  ;;  %v2406_v59 = vmul.f32 0.044715, %v2278_v20  ;;  %v3164_v7 = vmul.f32 %v3036_v2, %v8023_v18  ;;  %v7300_v60 = vadd.f32 %v6823_v42, %v7899_v3  ;;  %v8025_v18 = vld [vmem:[#allocation42_spill] sm:$0xff] }
 0x6b7   : > { %v7292_v46 = vpop.eup %4456  ;;  %v2893_v32 = vadd.f32 1.0, %v4455_v43  ;;  %v2533_v38 = vadd.f32 %v2405_v29, %v7259_v5  ;;  %v2654_v10 = vmul.f32 0.7978846, %v2526_v45  ;;  %3388 = vmatpush1.bf16.msra.mxu1 %v3239_v47  ;;  %v3172_v41 = vmul.f32 %v3044_v26, %v8024_v63 }
 0x6b8   : > { %v2285_v39 = vmul.f32 %v2157_v24, %v7284_v14  ;;  %v4459_v61 = vpop.eup %4458  ;;  %v2534_v22 = vadd.f32 %v2406_v59, %v7268_v40  ;;  %v2924_v29 = vadd.f32 1.0, %v6859_v48  ;;  %v7307_v26 = vmul.f32 %v3005_v4, %v7128_v17 }
 0x6b9   : > { %v3021_v49 = vmul.f32 0.5, %v2893_v32  ;;  %v2661_v19 = vmul.f32 0.7978846, %v2533_v38  ;;  %v2901_v20 = vadd.f32 1.0, %v4459_v61  ;;  %4464 = vtanh.f32 %v2654_v10 }
 0x6ba   : > { %v3248_v2 = vpack.c.bf16 %v3172_v41, %v3164_v7  ;;  %v2413_v43 = vmul.f32 0.044715, %v2285_v39  ;;  %v7304_v47 = vpop.eup %4460  ;;  %v7310_v45 = vmul.f32 %v3013_v28, %v7149_v31  ;;  %v2158_v3 = vmul.f32 %v7300_v60, %v7300_v60 }
 0x6bb   : > { %4466 = vtanh.f32 %v2661_v19  ;;  %v7315_v42 = vmul.f32 %v3021_v49, %v7191_v53  ;;  %v2932_v32 = vadd.f32 1.0, %v6947_v8  ;;  %v3052_v24 = vmul.f32 0.5, %v2924_v29 }
 0x6bc   : > { %3389 = vmatprep.subr.bf16.mxu1 %v3248_v2  ;;  %v2541_v48 = vadd.f32 %v2413_v43, %v7284_v14  ;;  %v2662_v38 = vmul.f32 0.7978846, %v2534_v22  ;;  %v2286_v17 = vmul.f32 %v2158_v3, %v7300_v60  ;;  %v7322_v31 = vadd.f32 %v6826_v35, %v7916_v25 }
 0x6bd   : > { %3390 = vmatpush1.bf16.msra.mxu1 %v3247_v54  ;;  %v7326_v19 = vadd.f32 %v6873_v56, %v7916_v25  ;;  %v4463_v53 = vpop.eup %4462  ;;  %v3029_v4 = vmul.f32 0.5, %v2901_v20  ;;  %v3060_v59 = vmul.f32 0.5, %v2932_v32  ;;  %v3180_v7 = vmul.f32 %v3052_v24, %v8025_v18 }
 0x6be   : > { %v2669_v28 = vmul.f32 0.7978846, %v2541_v48  ;;  %v2909_v8 = vadd.f32 1.0, %v4463_v53  ;;  %v2414_v10 = vmul.f32 0.044715, %v2286_v17  ;;  %v2165_v54 = vmul.f32 %v7322_v31, %v7322_v31  ;;  %v8026_v17 = vld [vmem:[#allocation106_spill] sm:$0xff] }
 0x6bf   : > { %v2166_v63 = vmul.f32 %v7326_v19, %v7326_v19  ;;  %v3188_v35 = vmul.f32 %v3060_v59, %v6790_v15  ;;  %v3255_v25 = vpack.c.bf16 %v6970_v21, %v6901_v23  ;;  %v2814_v56 = vadd.f32 1.0, %v7047_v0 }
 0x6c0   : > { %4468 = vtanh.f32 %v2669_v28  ;;  %v3037_v41 = vmul.f32 0.5, %v2909_v8  ;;  %v2542_v39 = vadd.f32 %v2414_v10, %v7300_v60  ;;  %v2293_v61 = vmul.f32 %v2165_v54, %v7322_v31  ;;  %v7358_v10 = vld [vmem:[%s7582_s6] sm:$0xff]   ;;  %v8028_v54 = vld [vmem:[#allocation85_spill] sm:$0xff] }
 0x6c1   : > { %v2294_v49 = vmul.f32 %v2166_v63, %v7326_v19  ;;  %v3256_v22 = vpack.c.bf16 %v3188_v35, %v3180_v7  ;;  %v2822_v29 = vadd.f32 1.0, %v7052_v52  ;;  %v2942_v20 = vmul.f32 0.5, %v2814_v56 }
 0x6c2   : > { %v3201_v2 = vpack.c.bf16 %v7096_v27, %v7059_v34  ;;  %4470 = vtanh.f32 %v2662_v38  ;;  %v2670_v15 = vmul.f32 0.7978846, %v2542_v39  ;;  %v2421_v43 = vmul.f32 0.044715, %v2293_v61 }
 0x6c3   : > { %v2422_v23 = vmul.f32 0.044715, %v2294_v49  ;;  %v7343_v21 = vpop.eup %4464  ;;  %3391 = vmatprep.subr.bf16.mxu1 %v3256_v22  ;;  %v2950_v0 = vmul.f32 0.5, %v2822_v29  ;;  %v3070_v3 = vmul.f32 %v2942_v20, %v6931_v57  ;;  %v2830_v48 = vadd.f32 1.0, %v7093_v58  ;;  %v8029_v22 = vld [vmem:[#allocation50_spill] sm:$0xff] }
 0x6c4   : > { %v2838_v32 = vadd.f32 1.0, %v7109_v55  ;;  %4472 = vtanh.f32 %v2670_v15  ;;  %v2549_v52 = vadd.f32 %v2421_v43, %v7322_v31  ;;  %3392 = vmatpush1.bf16.msra.mxu1 %v3255_v25  ;;  %v3209_v27 = vpack.c.bf16 %v7123_v37, %v7120_v1  ;;  %v8027_v1 = vld [vmem:[#allocation75_spill] sm:$0xff]  ;;  %v8030_v20 = vld [vmem:[#allocation58_spill] sm:$0xff] }
 0x6c5   : > { %v4467_v24 = vpop.eup %4466  ;;  %v2550_v34 = vadd.f32 %v2422_v23, %v7326_v19  ;;  %v3078_v53 = vmul.f32 %v2950_v0, %v8026_v17  ;;  %v2958_v28 = vmul.f32 0.5, %v2830_v48  ;;  %v2846_v58 = vadd.f32 1.0, %v7139_v13 }
 0x6c6   : > { %v2917_v38 = vadd.f32 1.0, %v4467_v24  ;;  %v2966_v59 = vmul.f32 0.5, %v2838_v32  ;;  %v2677_v57 = vmul.f32 0.7978846, %v2549_v52  ;;  %v2854_v55 = vadd.f32 1.0, %v7156_v33  ;;  %v8033_v52 = vld [vmem:[#allocation100_spill] sm:$0xff] }
 0x6c7   : > { %v2678_v18 = vmul.f32 0.7978846, %v2550_v34  ;;  %v3202_v8 = vpack.c.bf16 %v3078_v53, %v3070_v3  ;;  %3410 = vmatmul.mubr.bf16.vlgmr.msra.gmra.mrb[60].mxu1 %v7358_v10  ;;  %v3086_v37 = vmul.f32 %v2958_v28, %v8027_v1  ;;  %v2974_v35 = vmul.f32 0.5, %v2846_v58  ;;  %v8035_v58 = vld [vmem:[#allocation108_spill] sm:$0xff] }
 0x6c8   : > { %v3045_v7 = vmul.f32 0.5, %v2917_v38  ;;  %v3094_v63 = vmul.f32 %v2966_v59, %v8028_v54  ;;  %4474 = vtanh.f32 %v2677_v57  ;;  %v2982_v25 = vmul.f32 0.5, %v2854_v55  ;;  %3419 = vmatprep.mubr.bf16.mxu1 %v7913_v51  ;;  %v8036_v55 = vld [vmem:[#allocation105_spill] sm:$0xff] }
 0x6c9   : > { %v3217_v13 = vpack.c.bf16 %v7181_v36, %v7177_v6  ;;  %v7367_v56 = vmul.f32 %v3029_v4, %v7211_v11  ;;  %4476 = vtanh.f32 %v2678_v18  ;;  %3430 = vmatprep.subr.bf16.mxu1 %v3202_v8  ;;  %v2862_v61 = vadd.f32 1.0, %v7174_v9 }
 0x6ca   : > { %v4469_v33 = vpop.eup %4468  ;;  %v3210_v39 = vpack.c.bf16 %v3094_v63, %v3086_v37  ;;  %v7371_v49 = vmul.f32 %v3037_v41, %v7232_v12  ;;  %3431 = vmatpush1.bf16.msra.mxu1 %v3201_v2  ;;  %v3102_v29 = vmul.f32 %v2974_v35, %v8029_v22  ;;  %v3110_v15 = vmul.f32 %v2982_v25, %v8030_v20  ;;  %v8037_v63 = vld [vmem:[#allocation109_spill] sm:$0xff]  ;;  %v4505_v22 = vld [vmem:[%s7579_s3] sm:$0xff] }
 0x6cb   : > { %v2870_v6 = vadd.f32 1.0, %v7194_v30  ;;  %v2990_v36 = vmul.f32 0.5, %v2862_v61  ;;  %v3225_v11 = vpack.c.bf16 %v7249_v44, %v7187_v16  ;;  %v2878_v4 = vadd.f32 1.0, %v7238_v62  ;;  %v8031_v16 = vld [vmem:[#allocation95_spill] sm:$0xff]  ;;  %v8032_v44 = vld [vmem:[#allocation97_spill] sm:$0xff] }
 0x6cc   : > { %3432 = vmatprep.subr.bf16.mxu1 %v3210_v39  ;;  %v2886_v43 = vadd.f32 1.0, %v7274_v50  ;;  %v4471_v9 = vpop.eup %4470  ;;  %v7381_v12 = vmul.f32 %v3045_v7, %v7259_v5  ;;  %v3218_v41 = vpack.c.bf16 %v3110_v15, %v3102_v29  ;;  %v3233_v23 = vpack.c.bf16 %v7310_v45, %v7307_v26  ;;  %v8034_v26 = vld [vmem:[#allocation52_spill] sm:$0xff] }
 0x6cd   : > { %v2998_v2 = vmul.f32 0.5, %v2870_v6  ;;  %v2925_v0 = vadd.f32 1.0, %v4469_v33  ;;  %v3006_v30 = vmul.f32 0.5, %v2878_v4  ;;  %v2894_v48 = vadd.f32 1.0, %v7292_v46  ;;  %v4503_v46 = vld [vmem:[%s7582_s6 + $0x8] sm:$0xff]   ;;  %v4506_v4 = vld [vmem:[%s7579_s3 + $0x10] sm:$0xff] }
 0x6ce   : > { %v3014_v3 = vmul.f32 0.5, %v2886_v43  ;;  %v4473_v32 = vpop.eup %4472  ;;  %3433 = vmatpush1.bf16.msra.mxu1 %v3209_v27  ;;  %v3118_v62 = vmul.f32 %v2990_v36, %v8031_v16  ;;  %v2902_v24 = vadd.f32 1.0, %v7304_v47  ;;  %v3241_v5 = vpack.c.bf16 %v7367_v56, %v7315_v42  ;;  %v8044_v16 = vld [vmem:[#allocation5_spill] sm:$0xff] }
 0x6cf   : > { %v3126_v50 = vmul.f32 %v2998_v2, %v8032_v44  ;;  %3434 = vmatprep.subr.bf16.mxu1 %v3218_v41  ;;  %v3134_v34 = vmul.f32 %v3006_v30, %v8033_v52  ;;  %v3022_v38 = vmul.f32 0.5, %v2894_v48  ;;  %v2910_v17 = vadd.f32 1.0, %v7343_v21  ;;  %3420 = vmatmul.mubr.bf16.gmra.mrb[64].mxu1 %v4503_v46  ;;  %v8039_v41 = vld [vmem:[#allocation14_spill] sm:$0xff]  ;;  %v8043_v48 = vld [vmem:[#allocation13_spill] sm:$0xff] }
 0x6d0   : > { %v3142_v45 = vmul.f32 %v3014_v3, %v8034_v26  ;;  %v3030_v53 = vmul.f32 0.5, %v2902_v24  ;;  %v2918_v28 = vadd.f32 1.0, %v4471_v9  ;;  %v3249_v47 = vpack.c.bf16 %v7381_v12, %v7371_v49  ;;  %3462 = vmatprep.mubr.bf16.mxu1 %v7913_v51  ;;  %v3582_v9 = vld [vmem:[%s7584_s8 + $0x18] sm:$0xff]  ;;  %v8038_v12 = vld [vmem:[#allocation8_spill] sm:$0xff]  ;;  %v8042_v3 = vld [vmem:[#allocation6_spill] sm:$0xff] }
 0x6d1   : > { %v3226_v27 = vpack.c.bf16 %v3126_v50, %v3118_v62  ;;  %v3038_v59 = vmul.f32 0.5, %v2910_v17  ;;  %v2926_v57 = vadd.f32 1.0, %v4473_v32  ;;  %v3150_v21 = vmul.f32 %v3022_v38, %v8035_v58  ;;  %v8045_v62 = vld [vmem:[#allocation9_spill] sm:$0xff]  ;;  %v8046_v50 = vld [vmem:[#allocation16_spill] sm:$0xff]  ;;  %v8050_v17 = vld [vmem:[#allocation19_spill] sm:$0xff] }
 0x6d2   : > { %v3234_v42 = vpack.c.bf16 %v3142_v45, %v3134_v34  ;;  %v4475_v18 = vpop.eup %4474  ;;  %3435 = vmatpush1.bf16.msra.mxu1 %v3217_v13  ;;  %v3158_v7 = vmul.f32 %v3030_v53, %v8036_v55  ;;  %v3046_v8 = vmul.f32 0.5, %v2918_v28  ;;  %v3053_v37 = vmul.f32 0.5, %v2925_v0  ;;  %v4504_v13 = vld [vmem:[%s7579_s3 + $0x8] sm:$0xff]  ;;  %v8041_v0 = vld [vmem:[#allocation10_spill] sm:$0xff]  ;;  %v8048_v34 = vld [vmem:[#allocation15_spill] sm:$0xff] }
 0x6d3   : > { %v4477_v1 = vpop.eup %4476  ;;  %v2933_v54 = vadd.f32 1.0, %v4475_v18  ;;  %3436 = vmatprep.subr.bf16.mxu1 %v3226_v27  ;;  %v3166_v35 = vmul.f32 %v3038_v59, %v8037_v63  ;;  %v4577_v25 = vmov 3   ;;  %v3054_v61 = vmul.f32 0.5, %v2926_v57  ;;  %v8049_v45 = vld [vmem:[#allocation11_spill] sm:$0xff]  ;;  %v8051_v53 = vld [vmem:[#allocation17_spill] sm:$0xff]  ;;  %v8052_v59 = vld [vmem:[#allocation20_spill] sm:$0xff] }
 0x6d4   : > { %4129 = vset.pattern.permute.xlu1 %v4577_v25  ;;  %v3242_v33 = vpack.c.bf16 %v3158_v7, %v3150_v21  ;;  %v3174_v56 = vmul.f32 %v3046_v8, %v7268_v40  ;;  %v2934_v39 = vadd.f32 1.0, %v4477_v1  ;;  %4128 = vset.pattern.permute.xlu0 %v4577_v25  ;;  %v3181_v15 = vmul.f32 %v3053_v37, %v7284_v14  ;;  %v8053_v21 = vld [vmem:[#allocation18_spill] sm:$0xff] }
 0x6d5   : > { %3552 = vperm.xlu1 %4129, %v4504_v13   ;;  %v3061_v49 = vmul.f32 0.5, %v2933_v54  ;;  %3548 = vperm.xlu0 %4128, %v4505_v22   ;;  %v3182_v6 = vmul.f32 %v3054_v61, %v7300_v60  ;;  %v3579_v60 = vld [vmem:[%s7584_s8] sm:$0xff]  ;;  %v4013_v2 = vadd.f32 %v8039_v41, %v8038_v12  ;;  %v4021_v32 = vadd.f32 %v8043_v48, %v8042_v3 }
 0x6d6   : > { %3437 = vmatpush1.bf16.msra.mxu1 %v3225_v11  ;;  %v3250_v29 = vpack.c.bf16 %v3174_v56, %v3166_v35  ;;  %v3062_v20 = vmul.f32 0.5, %v2934_v39  ;;  %v4507_v11 = vld [vmem:[%s7579_s3 + $0x18] sm:$0xff]  ;;  %v4025_v44 = vadd.f32 %v8045_v62, %v8044_v16  ;;  %v4148_v16 = vld [vmem:[%s7583_s7] sm:$0xff]   ;;  %v4149_v62 = vld [vmem:[%s7583_s7 + $0x8] sm:$0xff]  }
 0x6d7   : > { %v3189_v40 = vmul.f32 %v3061_v49, %v7322_v31  ;;  %3438 = vmatprep.subr.bf16.mxu1 %v3234_v42  ;;  %v3580_v31 = vld [vmem:[%s7584_s8 + $0x8] sm:$0xff]  ;;  %v4014_v24 = vadd.f32 %v4013_v2, %v8046_v50  ;;  %v4022_v26 = vadd.f32 %v4021_v32, %v8048_v34 }
 0x6d8   : > { %v3190_v36 = vmul.f32 %v3062_v20, %v7326_v19  ;;  %v3581_v19 = vld [vmem:[%s7584_s8 + $0x10] sm:$0xff]  ;;  %v4026_v38 = vadd.f32 %v4025_v44, %v8049_v45 }
 0x6d9   : > { %3556 = vperm.xlu1 %4129, %v4506_v4   ;;  %v3257_v43 = vpack.c.bf16 %v3189_v40, %v3181_v15  ;;  %3560 = vperm.xlu0 %4128, %v4507_v11   ;;  %v4023_v57 = vadd.f32 %v4022_v26, %v8052_v59  ;;  %v8056_v11 = vld [vmem:[#allocation23_spill] sm:$0xff] }
 0x6da   : > { %3439 = vmatpush1.bf16.msra.mxu1 %v3233_v23  ;;  %v3258_v14 = vpack.c.bf16 %v3190_v36, %v3182_v6  ;;  %v8040_v23 = vld [vmem:[#allocation7_spill] sm:$0xff]  ;;  %v4027_v55 = vadd.f32 %v4026_v38, %v8053_v21  ;;  %v8055_v6 = vld [vmem:[#allocation22_spill] sm:$0xff] }
 0x6db   : > { %3440 = vmatprep.subr.bf16.mxu1 %v3242_v33  ;;  %v4017_v30 = vadd.f32 %v8041_v0, %v8040_v23 }
 0x6dd   : > { %4130 = vset.pattern.permute.xlu1 %v7913_v51  ;;  %4131 = vset.pattern.permute.xlu0 %v7913_v51 }
 0x6de   : > { %3441 = vmatpush1.bf16.msra.mxu1 %v3241_v5  ;;  %3585 = vperm.xlu1 %4130, %v3579_v60   ;;  %v8047_v5 = vld [vmem:[#allocation12_spill] sm:$0xff] }
 0x6df   : > { %3442 = vmatprep.subr.bf16.mxu1 %v3250_v29  ;;  %3590 = vperm.xlu0 %4131, %v3580_v31   ;;  %v4018_v52 = vadd.f32 %v4017_v30, %v8047_v5  ;;  %v8054_v29 = vld [vmem:[#allocation21_spill] sm:$0xff] }
 0x6e1   : > { %v4019_v28 = vadd.f32 %v4018_v52, %v8051_v53 }
 0x6e2   : > { %3443 = vmatpush1.bf16.msra.mxu1 %v3249_v47  ;;  %3595 = vperm.xlu1 %4130, %v3581_v19  }
 0x6e3   : > { %3444 = vmatprep.subr.bf16.mxu1 %v3258_v14 }
 0x6e6   : > { %3445 = vmatpush1.bf16.msra.mxu1 %v3257_v43  ;;  %3600 = vperm.xlu1 %4130, %v3582_v9  }
 0x6e9   : > { %3463 = vmatmul.mubr.bf16.vlgmr.msra.gmra.mrb[60].mxu1 %v7358_v10  ;;  %v3749_v10 = vld [vmem:[%s7586_s10] sm:$0x3] }
 0x6ea   : > { %3472 = vmatprep.mubr.bf16.mxu1 %v7913_v51  ;;  %3752 = vperm.xlu0 %4131, %v3749_v10   ;;  %v8057_v10 = vld [vmem:[#allocation24_spill] sm:$0xff] }
 0x6f1   : > { %3473 = vmatmul.mubr.bf16.gmra.mrb[64].mxu1 %v4503_v46  ;;  %v4015_v46 = vadd.f32 %v4014_v24, %v8050_v17 }
 0x754   : > { %v3553_v54 = vpop.permute.xlu1 %3552  ;;  %v3549_v35 = vpop.permute.xlu0 %3548 }
 0x758   : > { %v3557_v31 = vpop.permute.xlu1 %3556  ;;  %v3561_v41 = vpop.permute.xlu0 %3560 }
 0x75d   : > { %v3586_v44 = vpop.permute.xlu1 %3585 }
 0x75e   : > { %v3591_v24 = vpop.permute.xlu0 %3590 }
 0x7bc   : > { %v3464_v27 = vpop.f32.mrb[60].mxu1 }
 0x7bd   : > { %v4016_v47 = vadd.f32 %v4015_v46, %v3464_v27  ;;  %v3466_v42 = vpop.f32.mrb[61].mxu1  ;;  %v3596_v27 = vpop.permute.xlu1 %3595 }
 0x7be   : > { %v4020_v18 = vadd.f32 %v4019_v28, %v3466_v42  ;;  %v3468_v58 = vpop.f32.mrb[62].mxu1 }
 0x7bf   : > { %v3539_v7 = vmul.f32 0.25, %v4016_v47  ;;  %v4024_v8 = vadd.f32 %v4023_v57, %v3468_v58  ;;  %v3470_v1 = vpop.f32.mrb[63].mxu1 }
 0x7c0   : > { %v3540_v37 = vmul.f32 0.25, %v4020_v18  ;;  %v4028_v63 = vadd.f32 %v4027_v55, %v3470_v1 }
 0x7c1   : > { %v3541_v25 = vmul.f32 0.25, %v4024_v8  ;;  %v3563_v39 = vadd.f32 %v3549_v35, %v3539_v7 }
 0x7c2   : > { %v3542_v33 = vmul.f32 0.25, %v4028_v63  ;;  %v3564_v13 = vadd.f32 %v3549_v35, %v3540_v37 }
 0x7c3   : > { %v3565_v56 = vadd.f32 %v3553_v54, %v3541_v25  ;;  %v3601_v25 = vpop.permute.xlu1 %3600 }
 0x7c4   : > { %v3566_v61 = vadd.f32 %v3553_v54, %v3542_v33  ;;  %v3474_v49 = vpop.f32.mrb[64].mxu1 }
 0x7c5   : > { %v3575_v22 = vpack.c.bf16 %v3565_v56, %v3563_v39  ;;  %v4032_v20 = vadd.f32 %v8054_v29, %v3474_v49  ;;  %v3476_v15 = vpop.f32.mrb[65].mxu1 }
 0x7c6   : > { %v3576_v40 = vpack.c.bf16 %v3566_v61, %v3564_v13  ;;  %v4036_v36 = vadd.f32 %v8055_v6, %v3476_v15  ;;  %v3478_v4 = vpop.f32.mrb[66].mxu1 }
 0x7c7   : > { %v3543_v43 = vmul.f32 0.25, %v4032_v20  ;;  %v4040_v14 = vadd.f32 %v8056_v11, %v3478_v4  ;;  %v3480_v60 = vpop.f32.mrb[67].mxu1 }
 0x7c8   : > { %v3544_v19 = vmul.f32 0.25, %v4036_v36  ;;  %v4044_v9 = vadd.f32 %v8057_v10, %v3480_v60  ;;  %3619 = vmatprep.subr.bf16.mxu0 %v3576_v40 }
 0x7c9   : > { %v3545_v12 = vmul.f32 0.25, %v4040_v14  ;;  %3620 = vmatpush1.bf16.msra.mxu0 %v3575_v22  ;;  %v3567_v23 = vadd.f32 %v3557_v31, %v3543_v43 }
 0x7ca   : > { %v3546_v2 = vmul.f32 0.25, %v4044_v9  ;;  %v3568_v30 = vadd.f32 %v3557_v31, %v3544_v19 }
 0x7cb   : > { %v3569_v0 = vadd.f32 %v3561_v41, %v3545_v12 }
 0x7cc   : > { %v3570_v3 = vadd.f32 %v3561_v41, %v3546_v2 }
 0x7cd   : > { %v3577_v48 = vpack.c.bf16 %v3569_v0, %v3567_v23 }
 0x7ce   : > { %v3578_v32 = vpack.c.bf16 %v3570_v3, %v3568_v30 }
 0x7d0   : > { %3621 = vmatprep.subr.bf16.mxu0 %v3578_v32 }
 0x7d1   : > { %3622 = vmatpush1.bf16.msra.mxu0 %v3577_v48 }
 0x7d4   : > { %3966 = vmatmul.mubr.msk.bf16.vlgmr.msra.gmra.mrb[104].mxu0 %vm829_vm2, %v4148_v16 }
 0x7d5   : > { %3661 = vmatprep.mubr.bf16.mxu0 %v7913_v51 }
 0x7dc   : > { %3967 = vmatmul.mubr.msk.bf16.gmra.mrb[108].mxu0 %vm829_vm2, %v4149_v62 }
 0x7dd   : > { %3790 = vmatprep.mubr.bf16.mxu0 %v7913_v51 }
 0x8a7   : > { %v3653_v50 = vpop.f32.mrb[104].mxu0 }
 0x8a8   : > { %v7469_v5 = vadd.f32 %v3653_v50, %v3586_v44  ;;  %v3655_v52 = vpop.f32.mrb[105].mxu0 }
 0x8a9   : > { %v7471_v34 = vadd.f32 %v3655_v52, %v3586_v44  ;;  %v3657_v26 = vpop.f32.mrb[106].mxu0 }
 0x8aa   : > { %v3672_v45 = vmul.f32 %v7469_v5, %v7469_v5  ;;  %v3659_v38 = vpop.f32.mrb[107].mxu0  ;;  %v7475_v17 = vadd.f32 %v3657_v26, %v3591_v24 }
 0x8ab   : > { %v3673_v46 = vmul.f32 %v7471_v34, %v7471_v34  ;;  %v7479_v51 = vadd.f32 %v3659_v38, %v3591_v24 }
 0x8ac   : > { %v3680_v53 = vmul.f32 %v3672_v45, %v7469_v5  ;;  %v3674_v28 = vmul.f32 %v7475_v17, %v7475_v17 }
 0x8ad   : > { %v3681_v47 = vmul.f32 %v3673_v46, %v7471_v34  ;;  %v3675_v42 = vmul.f32 %v7479_v51, %v7479_v51 }
 0x8ae   : > { %v3688_v59 = vmul.f32 0.044715, %v3680_v53  ;;  %v3682_v57 = vmul.f32 %v3674_v28, %v7475_v17 }
 0x8af   : > { %v3689_v18 = vmul.f32 0.044715, %v3681_v47  ;;  %v3683_v58 = vmul.f32 %v3675_v42, %v7479_v51  ;;  %v3663_v21 = vpop.f32.mrb[108].mxu0 }
 0x8b0   : > { %v3696_v55 = vadd.f32 %v3688_v59, %v7469_v5  ;;  %v3690_v7 = vmul.f32 0.044715, %v3682_v57  ;;  %v7490_v8 = vadd.f32 %v3663_v21, %v3596_v27  ;;  %v3665_v1 = vpop.f32.mrb[109].mxu0 }
 0x8b1   : > { %v3697_v37 = vadd.f32 %v3689_v18, %v7471_v34  ;;  %v3691_v54 = vmul.f32 0.044715, %v3683_v58  ;;  %v7493_v63 = vadd.f32 %v3665_v1, %v3596_v27  ;;  %v3667_v35 = vpop.f32.mrb[110].mxu0 }
 0x8b2   : > { %v3704_v33 = vmul.f32 0.7978846, %v3696_v55  ;;  %v3698_v56 = vadd.f32 %v3690_v7, %v7475_v17  ;;  %v3676_v39 = vmul.f32 %v7490_v8, %v7490_v8  ;;  %v7498_v61 = vadd.f32 %v3667_v35, %v3601_v25  ;;  %v3669_v13 = vpop.f32.mrb[111].mxu0 }
 0x8b3   : > { %v3705_v49 = vmul.f32 0.7978846, %v3697_v37  ;;  %v3699_v22 = vadd.f32 %v3691_v54, %v7479_v51  ;;  %v3677_v29 = vmul.f32 %v7493_v63, %v7493_v63  ;;  %v7503_v20 = vadd.f32 %v3669_v13, %v3601_v25  ;;  %v3744_v13 = vld [vmem:[%s7585_s9] sm:$0x1] }
 0x8b4   : > { %4478 = vtanh.f32 %v3704_v33  ;;  %v3706_v15 = vmul.f32 0.7978846, %v3698_v56  ;;  %v3684_v40 = vmul.f32 %v3676_v39, %v7490_v8  ;;  %v3678_v6 = vmul.f32 %v7498_v61, %v7498_v61 }
 0x8b5   : > { %4480 = vtanh.f32 %v3705_v49  ;;  %v3707_v36 = vmul.f32 0.7978846, %v3699_v22  ;;  %v3685_v4 = vmul.f32 %v3677_v29, %v7493_v63  ;;  %v3679_v43 = vmul.f32 %v7503_v20, %v7503_v20  ;;  %v3753_v49 = vpop.permute.xlu0 %3752 }
 0x8b6   : > { %4482 = vtanh.f32 %v3706_v15  ;;  %v3692_v11 = vmul.f32 0.044715, %v3684_v40  ;;  %v3686_v14 = vmul.f32 %v3678_v6, %v7498_v61 }
 0x8b7   : > { %4484 = vtanh.f32 %v3707_v36  ;;  %v3693_v60 = vmul.f32 0.044715, %v3685_v4  ;;  %v3687_v31 = vmul.f32 %v3679_v43, %v7503_v20 }
 0x8b8   : > { %v3700_v19 = vadd.f32 %v3692_v11, %v7490_v8  ;;  %v3694_v10 = vmul.f32 0.044715, %v3686_v14 }
 0x8b9   : > { %v3701_v9 = vadd.f32 %v3693_v60, %v7493_v63  ;;  %v3695_v12 = vmul.f32 0.044715, %v3687_v31 }
 0x8ba   : > { %v3708_v41 = vmul.f32 0.7978846, %v3700_v19  ;;  %v3702_v2 = vadd.f32 %v3694_v10, %v7498_v61 }
 0x8bb   : > { %v3709_v23 = vmul.f32 0.7978846, %v3701_v9  ;;  %v3703_v0 = vadd.f32 %v3695_v12, %v7503_v20 }
 0x8bc   : > { %4486 = vtanh.f32 %v3708_v41  ;;  %v3710_v30 = vmul.f32 0.7978846, %v3702_v2 }
 0x8bd   : > { %4488 = vtanh.f32 %v3709_v23  ;;  %v3711_v3 = vmul.f32 0.7978846, %v3703_v0 }
 0x8be   : > { %v4479_v48 = vpop.eup %4478  ;;  %4490 = vtanh.f32 %v3710_v30 }
 0x8bf   : > { %v4481_v32 = vpop.eup %4480  ;;  %v3720_v16 = vadd.f32 1.0, %v4479_v48  ;;  %4492 = vtanh.f32 %v3711_v3 }
 0x8c0   : > { %v4483_v62 = vpop.eup %4482  ;;  %v3721_v44 = vadd.f32 1.0, %v4481_v32 }
 0x8c1   : > { %v4485_v50 = vpop.eup %4484  ;;  %v3728_v24 = vmul.f32 0.5, %v3720_v16  ;;  %v3722_v52 = vadd.f32 1.0, %v4483_v62 }
 0x8c2   : > { %v3723_v26 = vadd.f32 1.0, %v4485_v50  ;;  %v3729_v45 = vmul.f32 0.5, %v3721_v44 }
 0x8c3   : > { %v3730_v38 = vmul.f32 0.5, %v3722_v52  ;;  %v3736_v27 = vmul.f32 %v3728_v24, %v7469_v5 }
 0x8c4   : > { %v3731_v46 = vmul.f32 0.5, %v3723_v26  ;;  %v3737_v47 = vmul.f32 %v3729_v45, %v7471_v34 }
 0x8c5   : > { %v3738_v53 = vmul.f32 %v3730_v38, %v7475_v17 }
 0x8c6   : > { %v4487_v28 = vpop.eup %4486  ;;  %v3739_v42 = vmul.f32 %v3731_v46, %v7479_v51 }
 0x8c7   : > { %v4489_v59 = vpop.eup %4488  ;;  %v3724_v57 = vadd.f32 1.0, %v4487_v28  ;;  %v3745_v18 = vpack.c.bf16 %v3738_v53, %v3736_v27 }
 0x8c8   : > { %v4491_v58 = vpop.eup %4490  ;;  %v3746_v21 = vpack.c.bf16 %v3739_v42, %v3737_v47  ;;  %v3725_v55 = vadd.f32 1.0, %v4489_v59 }
 0x8c9   : > { %v4493_v7 = vpop.eup %4492  ;;  %v3732_v1 = vmul.f32 0.5, %v3724_v57  ;;  %v3726_v37 = vadd.f32 1.0, %v4491_v58 }
 0x8ca   : > { %3758 = vmatprep.subr.bf16.mxu0 %v3746_v21  ;;  %v3727_v54 = vadd.f32 1.0, %v4493_v7  ;;  %v3733_v35 = vmul.f32 0.5, %v3725_v55 }
 0x8cb   : > { %v3734_v5 = vmul.f32 0.5, %v3726_v37  ;;  %3759 = vmatpush1.bf16.msra.mxu0 %v3745_v18  ;;  %v3740_v25 = vmul.f32 %v3732_v1, %v7490_v8 }
 0x8cc   : > { %v3735_v17 = vmul.f32 0.5, %v3727_v54  ;;  %v3741_v51 = vmul.f32 %v3733_v35, %v7493_v63 }
 0x8cd   : > { %v3742_v34 = vmul.f32 %v3734_v5, %v7498_v61 }
 0x8ce   : > { %v3743_v33 = vmul.f32 %v3735_v17, %v7503_v20 }
 0x8cf   : > { %v3747_v56 = vpack.c.bf16 %v3742_v34, %v3740_v25 }
 0x8d0   : > { %v3748_v39 = vpack.c.bf16 %v3743_v33, %v3741_v51 }
 0x8d2   : > { %3760 = vmatprep.subr.bf16.mxu0 %v3748_v39 }
 0x8d3   : > { %3761 = vmatpush1.bf16.msra.mxu0 %v3747_v56 }
 0x8d6   : > { %3968 = vmatmul.mubr.msk.bf16.vlgmr.msra.gmra.mrb[112].mxu0 %vm829_vm2, %v3744_v13 }
 0x9a9   : > { %v3792_v22 = vpop.f32.mrb[112].mxu0 }
 0x9aa   : > { %v3793_v8 = vadd.f32 %v3792_v22, %v3753_v49  ;;  %v3794_v29 = vpop.f32.mrb[113].mxu0 }
 0x9ab   : > { %v3795_v61 = vadd.f32 %v3794_v29, %v3753_v49  ;;  %v3796_v63 = vpop.f32.mrb[114].mxu0 }
 0x9ac   : > { %v3969_v15 = vmul.f32 -1.442695, %v3793_v8  ;;  %v3797_v20 = vpop.f32.mrb[115].mxu0 }
 0x9ad   : > { %v3970_v40 = vmul.f32 -1.442695, %v3795_v61 }
 0x9ae   : > { %4494 = vpow2.f32 %v3969_v15 }
 0x9af   : > { %4496 = vpow2.f32 %v3970_v40 }
 0x9b8   : > { %v4495_v6 = vpop.eup %4494 }
 0x9b9   : > { %v4497_v36 = vpop.eup %4496  ;;  %v3805_v4 = vadd.f32 1.0, %v4495_v6 }
 0x9ba   : > { %v3806_v43 = vadd.f32 1.0, %v4497_v36 }
 0x9bb   : > { %4498 = vrcp.f32 %v3805_v4 }
 0x9bc   : > { %4500 = vrcp.f32 %v3806_v43 }
 0x9c5   : > { %v4499_v11 = vpop.eup %4498 }
 0x9c6   : > { %v4501_v14 = vpop.eup %4500 }
 0x9c7   : > { %v3813_v60 = vcombine.low %v4499_v11, %v4501_v14 }
 0x9c9   : > { %3971 = vst.sshfl [vmem:[%s379_s30] sm:$0x33 pattern:$0x76325410] %v3813_v60 }
 0x9ca   : > { %4521 = shalt.err (!%p4518_p3)
}
 0x9cb   : > { %s4522_s24 = scalar_lea.hbm %s7534_s15, 64  ;;  %s4526_s13 = scalar_lea.hbm %s7587_s11, 128 }
 0x9cc   : > { %p4523_p4 = scmp.ne.s32.totalorder %s7534_s15, %s4522_s24  ;;  %p4527_p9 = scmp.lt.u32.totalorder %s7534_s15, %s7587_s11 }
 0x9cd   : > { %p4528_p10 = scmp.lt.u32.totalorder %s4526_s13, %s4522_s24  ;;  %p4530_p12 = scmp.lt.u32.totalorder %s4522_s24, %s7534_s15 }
 0x9ce   : > { %p4524_p7 = pnand %p4523_p4, %p4677_p5 }
 0x9cf   : > { %p4529_p11 = por %p4528_p10, %p4527_p9 }
 0x9d0   : > { %p4525_p8 = pneg %p4524_p7 }
 0x9d1   : > { %p4531_p13 = por %p4530_p12, %p4529_p11 }
 0x9d3   : > { %p4532_p0 = pnand %p4531_p13, %p4525_p8 }
 0x9d5   : > { %4535 = shalt.err (!%p4532_p0)
}
 0x9d6   : > { %4069 = dma.vmem_to_hbm [thread:$0]  (%p4677_p5), %s7536_s12, 64, %s7534_s15, %s3824_s16  }
 0x9d7 PF: > { %p4075_p1 = scmp.ge.s32.totalorder %s4570_s20, 2  ;;  %s3850_s0 = sand.u32 1, %s4558_s17  }
 0x9d8   : > { %s3851_s22 = scalar_lea.sflag [#allocation3], %s3850_s0 }
 0x9d9   : > { %p4072_p2 = pnand %p4075_p1, %p4681_p6 }
 0x9db   : > { %4553 = dma.done.wait (!%p4072_p2), %s3851_s22, 64  }
 0x9dc   : > { %4555 = vsyncadd (!%p4072_p2), %s3851_s22, 4294967232  ;;  %p21_p3 = scmp.ge.s32.totalorder %s4664_s23, 4   ;;  %s8058_s17 = smov %s4562_s18 }
 0x9dd   : > { %s8059_s18 = smov %s4566_s19  ;;  %s8060_s19 = smov %s4675_s26 }
 0x9de   : > { %s8061_s20 = smov %s4664_s23  ;;  %23 = sbr.rel (!%p21_p3) target bundleno = 5 (0x5), region = 99 }
 0x9e5   :  { %3856 = vsyncpa [#allocation3], 1 }
 0x9e6   :  { %3858 = vsyncpa [#allocation3 + $0x1], 1 }

</bundles_post_ra>
